<compile_context>
chip_gen: v7x
topology: tpu7x:2x2x1
jax: 0.10.0
libtpu: 0.0.40
codegen_flags: <defaults>
</compile_context>

<pallas_src>
import functools

import jax
import jax.numpy as jnp
from jax.experimental import pallas as pl
from jax.experimental.pallas import tpu as pltpu

EPS_SERIES = 1e-5   # torch.sqrt(var + 1e-5) in the non-stationary normalization
EPS_LN = 1e-5       # nn.LayerNorm default eps


# ----------------------------- Fused Pallas kernel -----------------------------

def _ln(x, g, b):
    # LayerNorm over the last axis (rsqrt -> EUP slot instead of VALU divide).
    mu = jnp.mean(x, axis=-1, keepdims=True)
    xc = x - mu
    var = jnp.mean(xc * xc, axis=-1, keepdims=True)
    return xc * jax.lax.rsqrt(var + EPS_LN) * g + b


def _itransformer_kernel(
    x_ref, xm_ref,                                  # (BB, L, N), (BB, L, C)
    wemb_ref,                                       # (L+1, D)   row L = bias
    wqkv_ref,                                       # (E, D+1, 3D) row D = bias; Wq/bq pre-scaled
    wo_ref,                                         # (E, D+1, D)
    ln_ref,                                         # (E, 4, D)  [g1, be1, g2, be2]
    wf1_ref,                                        # (E, D+1, Fd)
    wf2_ref,                                        # (E, Fd+1, D)
    gbf_ref,                                        # (2, D)     final encoder LayerNorm
    wp_ref,                                         # (D, P)
    bp_ref,                                         # (P, 1)     column bias for (P, N) output
    o_ref,                                          # (BB, P, N) output
    *, n_heads, e_layers, n_vars, seq_len, d_model, d_ff, batch_block):
    N = n_vars
    L = seq_len
    D = d_model
    Fd = d_ff
    dh = D // n_heads

    # ---- Load / unpack all weights once (shared across the unrolled batch) ----
    w_emb_all = wemb_ref[...]
    w_emb = w_emb_all[0:L, :]                       # (L, D)
    b_emb = w_emb_all[L:L + 1, :]                   # (1, D)
    gf = gbf_ref[0:1, :]
    bfin = gbf_ref[1:2, :]
    wp = wp_ref[...]                                # (D, P)
    bp = bp_ref[...]                                # (P, 1)

    layer_w = []
    for l in range(e_layers):
        wqkv_all = wqkv_ref[l]                      # (D+1, 3D)
        wo_all = wo_ref[l]                          # (D+1, D)
        wf1_all = wf1_ref[l]                        # (D+1, Fd)
        wf2_all = wf2_ref[l]                        # (Fd+1, D)
        ln = ln_ref[l]                              # (4, D)
        layer_w.append((
            wqkv_all[0:D, :], wqkv_all[D:D + 1, :],
            wo_all[0:D, :], wo_all[D:D + 1, :],
            ln[0:1, :], ln[1:2, :], ln[2:3, :], ln[3:4, :],
            wf1_all[0:D, :], wf1_all[D:D + 1, :],
            wf2_all[0:Fd, :], wf2_all[Fd:Fd + 1, :],
        ))

    cdim_time = (((0,), (0,)), ((), ()))            # contract dim 0 of both sides
    cdim_qk = (((1,), (1,)), ((), ()))              # q @ k^T

    for bi in range(batch_block):                   # unrolled: independent work per batch elem
        x = x_ref[bi]                               # (L, N)
        xm = xm_ref[bi]                             # (L, C)

        # ---- use_norm: per-series (over time) normalization -------------------
        mean = jnp.mean(x, axis=0, keepdims=True)   # (1, N)
        xc = x - mean
        var = jnp.mean(xc * xc, axis=0, keepdims=True)   # biased (unbiased=False)
        std = jnp.sqrt(var + EPS_SERIES)            # exact sqrt for de-normalization
        xn = xc * jax.lax.rsqrt(var + EPS_SERIES)   # (L, N)

        # ---- DataEmbedding_inverted: single contraction over the time axis ----
        tok_in = jnp.concatenate([xn, xm], axis=1)  # (L, T) variates | marks
        h = jax.lax.dot_general(tok_in, w_emb, cdim_time,
                                preferred_element_type=jnp.float32) + b_emb   # (T, D)

        # ---- Encoder layers (unrolled, all weights resident in vregs/VMEM) ----
        for (wqkv, bqkv, wo, bo, g1, be1, g2, be2, wf1, bf1, wf2, bf2) in layer_w:
            qkv = jnp.dot(h, wqkv, preferred_element_type=jnp.float32) + bqkv  # (T, 3D)

            heads = []
            for hd in range(n_heads):
                qh = qkv[:, hd * dh:(hd + 1) * dh]                  # (T, dh) (pre-scaled)
                kh = qkv[:, D + hd * dh:D + (hd + 1) * dh]
                vh = qkv[:, 2 * D + hd * dh:2 * D + (hd + 1) * dh]
                s = jax.lax.dot_general(qh, kh, cdim_qk,
                                        preferred_element_type=jnp.float32)     # (T, T)
                s = s - jnp.max(s, axis=-1, keepdims=True)
                p = jnp.exp(s)
                p = p * pl.reciprocal(jnp.sum(p, axis=-1, keepdims=True), approx=False)
                heads.append(jnp.dot(p, vh, preferred_element_type=jnp.float32))

            att = jnp.dot(jnp.concatenate(heads, axis=1), wo,
                          preferred_element_type=jnp.float32) + bo              # (T, D)

            x1 = _ln(h + att, g1, be1)
            y = jnp.dot(x1, wf1, preferred_element_type=jnp.float32) + bf1
            y = jnp.maximum(y, 0.0)                  # activation == 'relu'
            y = jnp.dot(y, wf2, preferred_element_type=jnp.float32) + bf2
            h = _ln(x1 + y, g2, be2)

        # ---- Final LayerNorm + pred_len projection + de-normalization ---------
        # Only the first N (variate) tokens survive the .permute(0,2,1)[:, :, :N].
        hv = _ln(h[0:N, :], gf, bfin)                # (N, D)
        # dec[p, n] = sum_d w_proj[d, p] * hv[n, d]  -> (P, N), no in-kernel transpose
        dec = jax.lax.dot_general(wp, hv, (((0,), (1,)), ((), ())),
                                  preferred_element_type=jnp.float32) + bp
        o_ref[bi] = dec * std + mean                 # de-normalize


# ----------------------------- pallas_call wrapper -----------------------------

def _full_spec(shape):
    nd = len(shape)
    return pl.BlockSpec(shape, lambda b, _nd=nd: (0,) * _nd)


def itransformer_forecast(packed, x_enc, x_mark_enc, cfg, batch_block=None):
    B, L, N = x_enc.shape
    C = x_mark_enc.shape[-1]
    D, Fd, P, E, H = cfg['d_model'], cfg['d_ff'], cfg['pred_len'], cfg['e_layers'], cfg['n_heads']

    if batch_block is None:
        # Fold the whole batch into one grid step (best on single-TC v5e/v6e).
        # Use batch_block=1 to split batch elements across the two v7x TensorCores.
        batch_block = B
    assert B % batch_block == 0
    grid = (B // batch_block,)

    kernel = functools.partial(
        _itransformer_kernel, n_heads=H, e_layers=E, n_vars=N,
        seq_len=L, d_model=D, d_ff=Fd, batch_block=batch_block)

    in_specs = [
        pl.BlockSpec((batch_block, L, N), lambda b: (b, 0, 0)),   # x_enc
        pl.BlockSpec((batch_block, L, C), lambda b: (b, 0, 0)),   # x_mark_enc
        _full_spec((L + 1, D)),          # w_emb | b_emb
        _full_spec((E, D + 1, 3 * D)),   # Wq*scale|Wk|Wv  with bias row
        _full_spec((E, D + 1, D)),       # Wo with bias row
        _full_spec((E, 4, D)),           # g1, be1, g2, be2
        _full_spec((E, D + 1, Fd)),      # conv1 (1x1) Linear D->d_ff with bias row
        _full_spec((E, Fd + 1, D)),      # conv2 (1x1) Linear d_ff->D with bias row
        _full_spec((2, D)),              # final norm gamma/beta
        _full_spec((D, P)),              # projection W
        _full_spec((P, 1)),              # projection bias (column)
    ]

    return pl.pallas_call(
        kernel,
        out_shape=jax.ShapeDtypeStruct((B, P, N), jnp.float32),
        grid=grid,
        in_specs=in_specs,
        out_specs=pl.BlockSpec((batch_block, P, N), lambda b: (b, 0, 0)),
        compiler_params=pltpu.CompilerParams(
            dimension_semantics=("parallel",)),
    )(x_enc, x_mark_enc,
      packed['w_emb_b'], packed['wqkv_b'], packed['wo_b'], packed['ln12'],
      packed['wf1_b'], packed['wf2_b'], packed['gbf'],
      packed['w_proj'], packed['b_proj'])


# ----------------------------- Parameter packing (one-time) -----------------------------

def pack_params(params, cfg):
    """One-time transform of the 'natural' parameter set into the packed kernel operands."""
    D, H = cfg['d_model'], cfg['n_heads']
    dh = D // H
    scale = 1.0 / (dh ** 0.5)
    wq = params['wq'] * scale                        # fold 1/sqrt(dh) into Wq / bq
    bq = params['bq'] * scale
    wqkv = jnp.concatenate([wq, params['wk'], params['wv']], axis=-1)     # (E, D, 3D)
    bqkv = jnp.concatenate([bq, params['bk'], params['bv']], axis=-1)     # (E, 1, 3D)
    return dict(
        w_emb_b=jnp.concatenate([params['w_emb'], params['b_emb']], axis=0),      # (L+1, D)
        wqkv_b=jnp.concatenate([wqkv, bqkv], axis=1),                             # (E, D+1, 3D)
        wo_b=jnp.concatenate([params['wo'], params['bo']], axis=1),               # (E, D+1, D)
        ln12=jnp.concatenate([params['g1'], params['be1'],
                              params['g2'], params['be2']], axis=1),              # (E, 4, D)
        wf1_b=jnp.concatenate([params['wf1'], params['bf1']], axis=1),            # (E, D+1, Fd)
        wf2_b=jnp.concatenate([params['wf2'], params['bf2']], axis=1),            # (E, Fd+1, D)
        gbf=jnp.concatenate([params['g_f'], params['b_f']], axis=0),              # (2, D)
        w_proj=params['w_proj'],                                                  # (D, P)
        b_proj=params['b_proj'],                                                  # (P, 1)
    )


# ----------------------------- Pure-JAX reference -----------------------------

def _ref_ln(x, g, b):
    mu = jnp.mean(x, axis=-1, keepdims=True)
    var = jnp.mean((x - mu) ** 2, axis=-1, keepdims=True)
    return (x - mu) / jnp.sqrt(var + EPS_LN) * g + b


def ref_forecast(params, x_enc, x_mark_enc, cfg):
    B, L, N = x_enc.shape
    H, D, E = cfg['n_heads'], cfg['d_model'], cfg['e_layers']
    dh = D // H
    means = jnp.mean(x_enc, axis=1, keepdims=True)
    xc = x_enc - means
    stdev = jnp.sqrt(jnp.mean(xc ** 2, axis=1, keepdims=True) + EPS_SERIES)
    xn = xc / stdev
    tokens = jnp.concatenate([jnp.transpose(xn, (0, 2, 1)),
                              jnp.transpose(x_mark_enc, (0, 2, 1))], axis=1)   # (B, T, L)
    h = tokens @ params['w_emb'] + params['b_emb']
    for l in range(E):
        q = h @ params['wq'][l] + params['bq'][l]
        k = h @ params['wk'][l] + params['bk'][l]
        v = h @ params['wv'][l] + params['bv'][l]
        T = q.shape[1]
        qh = q.reshape(B, T, H, dh); kh = k.reshape(B, T, H, dh); vh = v.reshape(B, T, H, dh)
        s = jnp.einsum('blhe,bshe->bhls', qh, kh) / (dh ** 0.5)
        a = jax.nn.softmax(s, axis=-1)
        o = jnp.einsum('bhls,bshe->blhe', a, vh).reshape(B, T, D)
        o = o @ params['wo'][l] + params['bo'][l]
        x1 = _ref_ln(h + o, params['g1'][l], params['be1'][l])
        y = jnp.maximum(x1 @ params['wf1'][l] + params['bf1'][l], 0.0) @ params['wf2'][l] + params['bf2'][l]
        h = _ref_ln(x1 + y, params['g2'][l], params['be2'][l])
    h = _ref_ln(h, params['g_f'], params['b_f'])
    proj = h @ params['w_proj'] + params['b_proj'].reshape(1, 1, -1)
    dec = jnp.transpose(proj, (0, 2, 1))[:, :, :N]
    dec = dec * stdev[:, 0, :][:, None, :] + means[:, 0, :][:, None, :]
    return dec


# ----------------------------- Parameter init -----------------------------

def init_params(key, cfg):
    L, D, Fd, P, E = cfg['seq_len'], cfg['d_model'], cfg['d_ff'], cfg['pred_len'], cfg['e_layers']

    def nrm(k, shape, scale=0.2):
        return scale * jax.random.normal(k, shape, jnp.float32)

    keys = iter(jax.random.split(key, 4 + 12 * E))
    params = dict(
        w_emb=nrm(next(keys), (L, D)), b_emb=nrm(next(keys), (1, D)),
        g_f=jnp.ones((1, D), jnp.float32), b_f=jnp.zeros((1, D), jnp.float32),
        w_proj=nrm(next(keys), (D, P)), b_proj=nrm(next(keys), (P, 1)),
    )
    names = ('wq', 'bq', 'wk', 'bk', 'wv', 'bv', 'wo', 'bo',
             'g1', 'be1', 'wf1', 'bf1', 'wf2', 'bf2', 'g2', 'be2')
    per_layer = {n: [] for n in names}
    for _ in range(E):
        per_layer['wq'].append(nrm(next(keys), (D, D))); per_layer['bq'].append(nrm(next(keys), (1, D)))
        per_layer['wk'].append(nrm(next(keys), (D, D))); per_layer['bk'].append(nrm(next(keys), (1, D)))
        per_layer['wv'].append(nrm(next(keys), (D, D))); per_layer['bv'].append(nrm(next(keys), (1, D)))
        per_layer['wo'].append(nrm(next(keys), (D, D))); per_layer['bo'].append(nrm(next(keys), (1, D)))
        per_layer['g1'].append(jnp.ones((1, D), jnp.float32))
        per_layer['be1'].append(jnp.zeros((1, D), jnp.float32))
        per_layer['wf1'].append(nrm(next(keys), (D, Fd))); per_layer['bf1'].append(nrm(next(keys), (1, Fd)))
        per_layer['wf2'].append(nrm(next(keys), (Fd, D))); per_layer['bf2'].append(nrm(next(keys), (1, D)))
        per_layer['g2'].append(jnp.ones((1, D), jnp.float32))
        per_layer['be2'].append(jnp.zeros((1, D), jnp.float32))
    for n in names:
        params[n] = jnp.stack(per_layer[n], axis=0)   # stacked across layers: (E, ...)
    return params


# ----------------------------- Main -----------------------------

if __name__ == "__main__":
    cfg = dict(task_name='long_term_forecast', seq_len=16, pred_len=8,
               d_model=32, n_heads=4, d_ff=64, e_layers=2, enc_in=4, c_mark=3)

    key = jax.random.PRNGKey(0)
    k_x, k_m, k_p = jax.random.split(key, 3)
    B = 2
    x_enc = jax.random.normal(k_x, (B, cfg['seq_len'], cfg['enc_in']), jnp.float32)
    x_mark_enc = jax.random.normal(k_m, (B, cfg['seq_len'], cfg['c_mark']), jnp.float32)
    # x_dec / x_mark_dec are unused by the forecast path of iTransformer.

    params = init_params(k_p, cfg)
    packed = pack_params(params, cfg)                 # one-time parameter transform

    forecast = jax.jit(functools.partial(itransformer_forecast, cfg=cfg))
    out = jax.block_until_ready(forecast(packed, x_enc, x_mark_enc))

    ref = jax.block_until_ready(ref_forecast(params, x_enc, x_mark_enc, cfg))
    assert out.shape == (B, cfg['pred_len'], cfg['enc_in'])
    max_err = float(jnp.max(jnp.abs(out - ref)))
    assert jnp.allclose(out, ref, atol=3e-3, rtol=3e-3), f"max_err={max_err}"

    print("KERNEL_OK")
</pallas_src>

<mosaic_0001>
module attributes {stable_mosaic.version = 11 : i64} {
  func.func @_itransformer_kernel(%arg0: i32, %arg1: memref<2x16x4xf32, #tpu.memory_space<vmem>>, %arg2: memref<2x16x3xf32, #tpu.memory_space<vmem>>, %arg3: memref<17x32xf32, #tpu.memory_space<vmem>>, %arg4: memref<2x33x96xf32, #tpu.memory_space<vmem>>, %arg5: memref<2x33x32xf32, #tpu.memory_space<vmem>>, %arg6: memref<2x4x32xf32, #tpu.memory_space<vmem>>, %arg7: memref<2x33x64xf32, #tpu.memory_space<vmem>>, %arg8: memref<2x65x32xf32, #tpu.memory_space<vmem>>, %arg9: memref<2x32xf32, #tpu.memory_space<vmem>>, %arg10: memref<32x8xf32, #tpu.memory_space<vmem>>, %arg11: memref<8x1xf32, #tpu.memory_space<vmem>>, %arg12: memref<2x8x4xf32, #tpu.memory_space<vmem>>) attributes {dimension_semantics = [#tpu.dimension_semantics<parallel>], iteration_bounds = array<i64: 1>, scalar_prefetch = 0 : i64, scratch_operands = 0 : i64, tpu.core_type = #tpu.core_type<tc>, window_params = [{transform_indices = @transform_0, window_bounds = array<i64: 2, 16, 4>}, {transform_indices = @transform_1, window_bounds = array<i64: 2, 16, 3>}, {pipeline_mode = #tpu.pipeline_mode<synchronous>, transform_indices = @transform_2, window_bounds = array<i64: 17, 32>}, {pipeline_mode = #tpu.pipeline_mode<synchronous>, transform_indices = @transform_3, window_bounds = array<i64: 2, 33, 96>}, {pipeline_mode = #tpu.pipeline_mode<synchronous>, transform_indices = @transform_4, window_bounds = array<i64: 2, 33, 32>}, {pipeline_mode = #tpu.pipeline_mode<synchronous>, transform_indices = @transform_5, window_bounds = array<i64: 2, 4, 32>}, {pipeline_mode = #tpu.pipeline_mode<synchronous>, transform_indices = @transform_6, window_bounds = array<i64: 2, 33, 64>}, {pipeline_mode = #tpu.pipeline_mode<synchronous>, transform_indices = @transform_7, window_bounds = array<i64: 2, 65, 32>}, {pipeline_mode = #tpu.pipeline_mode<synchronous>, transform_indices = @transform_8, window_bounds = array<i64: 2, 32>}, {pipeline_mode = #tpu.pipeline_mode<synchronous>, transform_indices = @transform_9, window_bounds = array<i64: 32, 8>}, {pipeline_mode = #tpu.pipeline_mode<synchronous>, transform_indices = @transform_10, window_bounds = array<i64: 8, 1>}, {transform_indices = @transform_11, window_bounds = array<i64: 2, 8, 4>}]} {
    %c0 = arith.constant 0 : index
    %c0_0 = arith.constant 0 : index
    %0 = vector.load %arg3[%c0, %c0_0] : memref<17x32xf32, #tpu.memory_space<vmem>>, vector<17x32xf32>
    %1 = vector.extract_strided_slice %0 {offsets = [0, 0], sizes = [16, 32], strides = [1, 1]} : vector<17x32xf32> to vector<16x32xf32>
    %2 = vector.extract_strided_slice %0 {offsets = [16, 0], sizes = [1, 32], strides = [1, 1]} : vector<17x32xf32> to vector<1x32xf32>
    %c0_1 = arith.constant 0 : index
    %c0_2 = arith.constant 0 : index
    %3 = vector.load %arg9[%c0_1, %c0_2] : memref<2x32xf32, #tpu.memory_space<vmem>>, vector<1x32xf32>
    %c1 = arith.constant 1 : index
    %c0_3 = arith.constant 0 : index
    %4 = vector.load %arg9[%c1, %c0_3] : memref<2x32xf32, #tpu.memory_space<vmem>>, vector<1x32xf32>
    %c0_4 = arith.constant 0 : index
    %c0_5 = arith.constant 0 : index
    %5 = vector.load %arg10[%c0_4, %c0_5] : memref<32x8xf32, #tpu.memory_space<vmem>>, vector<32x8xf32>
    %c0_6 = arith.constant 0 : index
    %c0_7 = arith.constant 0 : index
    %6 = vector.load %arg11[%c0_6, %c0_7] : memref<8x1xf32, #tpu.memory_space<vmem>>, vector<8x1xf32>
    %c0_8 = arith.constant 0 : index
    %c0_9 = arith.constant 0 : index
    %c0_10 = arith.constant 0 : index
    %7 = vector.load %arg4[%c0_8, %c0_9, %c0_10] : memref<2x33x96xf32, #tpu.memory_space<vmem>>, vector<1x33x96xf32>
    %8 = vector.shape_cast %7 : vector<1x33x96xf32> to vector<33x96xf32>
    %c0_11 = arith.constant 0 : index
    %c0_12 = arith.constant 0 : index
    %c0_13 = arith.constant 0 : index
    %9 = vector.load %arg5[%c0_11, %c0_12, %c0_13] : memref<2x33x32xf32, #tpu.memory_space<vmem>>, vector<1x33x32xf32>
    %10 = vector.shape_cast %9 : vector<1x33x32xf32> to vector<33x32xf32>
    %c0_14 = arith.constant 0 : index
    %c0_15 = arith.constant 0 : index
    %c0_16 = arith.constant 0 : index
    %11 = vector.load %arg7[%c0_14, %c0_15, %c0_16] : memref<2x33x64xf32, #tpu.memory_space<vmem>>, vector<1x33x64xf32>
    %12 = vector.shape_cast %11 : vector<1x33x64xf32> to vector<33x64xf32>
    %c0_17 = arith.constant 0 : index
    %c0_18 = arith.constant 0 : index
    %c0_19 = arith.constant 0 : index
    %13 = vector.load %arg8[%c0_17, %c0_18, %c0_19] : memref<2x65x32xf32, #tpu.memory_space<vmem>>, vector<1x65x32xf32>
    %14 = vector.shape_cast %13 : vector<1x65x32xf32> to vector<65x32xf32>
    %c0_20 = arith.constant 0 : index
    %c0_21 = arith.constant 0 : index
    %c0_22 = arith.constant 0 : index
    %15 = vector.load %arg6[%c0_20, %c0_21, %c0_22] : memref<2x4x32xf32, #tpu.memory_space<vmem>>, vector<1x4x32xf32>
    %16 = vector.shape_cast %15 : vector<1x4x32xf32> to vector<4x32xf32>
    %17 = vector.extract_strided_slice %8 {offsets = [0, 0], sizes = [32, 96], strides = [1, 1]} : vector<33x96xf32> to vector<32x96xf32>
    %18 = vector.extract_strided_slice %8 {offsets = [32, 0], sizes = [1, 96], strides = [1, 1]} : vector<33x96xf32> to vector<1x96xf32>
    %19 = vector.extract_strided_slice %10 {offsets = [0, 0], sizes = [32, 32], strides = [1, 1]} : vector<33x32xf32> to vector<32x32xf32>
    %20 = vector.extract_strided_slice %10 {offsets = [32, 0], sizes = [1, 32], strides = [1, 1]} : vector<33x32xf32> to vector<1x32xf32>
    %21 = vector.extract_strided_slice %16 {offsets = [0, 0], sizes = [1, 32], strides = [1, 1]} : vector<4x32xf32> to vector<1x32xf32>
    %22 = vector.extract_strided_slice %16 {offsets = [1, 0], sizes = [1, 32], strides = [1, 1]} : vector<4x32xf32> to vector<1x32xf32>
    %23 = vector.extract_strided_slice %16 {offsets = [2, 0], sizes = [1, 32], strides = [1, 1]} : vector<4x32xf32> to vector<1x32xf32>
    %24 = vector.extract_strided_slice %16 {offsets = [3, 0], sizes = [1, 32], strides = [1, 1]} : vector<4x32xf32> to vector<1x32xf32>
    %25 = vector.extract_strided_slice %12 {offsets = [0, 0], sizes = [32, 64], strides = [1, 1]} : vector<33x64xf32> to vector<32x64xf32>
    %26 = vector.extract_strided_slice %12 {offsets = [32, 0], sizes = [1, 64], strides = [1, 1]} : vector<33x64xf32> to vector<1x64xf32>
    %27 = vector.extract_strided_slice %14 {offsets = [0, 0], sizes = [64, 32], strides = [1, 1]} : vector<65x32xf32> to vector<64x32xf32>
    %28 = vector.extract_strided_slice %14 {offsets = [64, 0], sizes = [1, 32], strides = [1, 1]} : vector<65x32xf32> to vector<1x32xf32>
    %c1_23 = arith.constant 1 : index
    %c0_24 = arith.constant 0 : index
    %c0_25 = arith.constant 0 : index
    %29 = vector.load %arg4[%c1_23, %c0_24, %c0_25] : memref<2x33x96xf32, #tpu.memory_space<vmem>>, vector<1x33x96xf32>
    %30 = vector.shape_cast %29 : vector<1x33x96xf32> to vector<33x96xf32>
    %c1_26 = arith.constant 1 : index
    %c0_27 = arith.constant 0 : index
    %c0_28 = arith.constant 0 : index
    %31 = vector.load %arg5[%c1_26, %c0_27, %c0_28] : memref<2x33x32xf32, #tpu.memory_space<vmem>>, vector<1x33x32xf32>
    %32 = vector.shape_cast %31 : vector<1x33x32xf32> to vector<33x32xf32>
    %c1_29 = arith.constant 1 : index
    %c0_30 = arith.constant 0 : index
    %c0_31 = arith.constant 0 : index
    %33 = vector.load %arg7[%c1_29, %c0_30, %c0_31] : memref<2x33x64xf32, #tpu.memory_space<vmem>>, vector<1x33x64xf32>
    %34 = vector.shape_cast %33 : vector<1x33x64xf32> to vector<33x64xf32>
    %c1_32 = arith.constant 1 : index
    %c0_33 = arith.constant 0 : index
    %c0_34 = arith.constant 0 : index
    %35 = vector.load %arg8[%c1_32, %c0_33, %c0_34] : memref<2x65x32xf32, #tpu.memory_space<vmem>>, vector<1x65x32xf32>
    %36 = vector.shape_cast %35 : vector<1x65x32xf32> to vector<65x32xf32>
    %c1_35 = arith.constant 1 : index
    %c0_36 = arith.constant 0 : index
    %c0_37 = arith.constant 0 : index
    %37 = vector.load %arg6[%c1_35, %c0_36, %c0_37] : memref<2x4x32xf32, #tpu.memory_space<vmem>>, vector<1x4x32xf32>
    %38 = vector.shape_cast %37 : vector<1x4x32xf32> to vector<4x32xf32>
    %39 = vector.extract_strided_slice %30 {offsets = [0, 0], sizes = [32, 96], strides = [1, 1]} : vector<33x96xf32> to vector<32x96xf32>
    %40 = vector.extract_strided_slice %30 {offsets = [32, 0], sizes = [1, 96], strides = [1, 1]} : vector<33x96xf32> to vector<1x96xf32>
    %41 = vector.extract_strided_slice %32 {offsets = [0, 0], sizes = [32, 32], strides = [1, 1]} : vector<33x32xf32> to vector<32x32xf32>
    %42 = vector.extract_strided_slice %32 {offsets = [32, 0], sizes = [1, 32], strides = [1, 1]} : vector<33x32xf32> to vector<1x32xf32>
    %43 = vector.extract_strided_slice %38 {offsets = [0, 0], sizes = [1, 32], strides = [1, 1]} : vector<4x32xf32> to vector<1x32xf32>
    %44 = vector.extract_strided_slice %38 {offsets = [1, 0], sizes = [1, 32], strides = [1, 1]} : vector<4x32xf32> to vector<1x32xf32>
    %45 = vector.extract_strided_slice %38 {offsets = [2, 0], sizes = [1, 32], strides = [1, 1]} : vector<4x32xf32> to vector<1x32xf32>
    %46 = vector.extract_strided_slice %38 {offsets = [3, 0], sizes = [1, 32], strides = [1, 1]} : vector<4x32xf32> to vector<1x32xf32>
    %47 = vector.extract_strided_slice %34 {offsets = [0, 0], sizes = [32, 64], strides = [1, 1]} : vector<33x64xf32> to vector<32x64xf32>
    %48 = vector.extract_strided_slice %34 {offsets = [32, 0], sizes = [1, 64], strides = [1, 1]} : vector<33x64xf32> to vector<1x64xf32>
    %49 = vector.extract_strided_slice %36 {offsets = [0, 0], sizes = [64, 32], strides = [1, 1]} : vector<65x32xf32> to vector<64x32xf32>
    %50 = vector.extract_strided_slice %36 {offsets = [64, 0], sizes = [1, 32], strides = [1, 1]} : vector<65x32xf32> to vector<1x32xf32>
    %c0_38 = arith.constant 0 : index
    %c0_39 = arith.constant 0 : index
    %c0_40 = arith.constant 0 : index
    %51 = vector.load %arg1[%c0_38, %c0_39, %c0_40] : memref<2x16x4xf32, #tpu.memory_space<vmem>>, vector<1x16x4xf32>
    %52 = vector.shape_cast %51 : vector<1x16x4xf32> to vector<16x4xf32>
    %c0_41 = arith.constant 0 : index
    %c0_42 = arith.constant 0 : index
    %c0_43 = arith.constant 0 : index
    %53 = vector.load %arg2[%c0_41, %c0_42, %c0_43] : memref<2x16x3xf32, #tpu.memory_space<vmem>>, vector<1x16x3xf32>
    %54 = vector.shape_cast %53 : vector<1x16x3xf32> to vector<16x3xf32>
    %cst = arith.constant dense<0.000000e+00> : vector<4xf32>
    %55 = vector.multi_reduction <add>, %52, %cst [0] : vector<16x4xf32> to vector<4xf32>
    %56 = vector.shape_cast %55 : vector<4xf32> to vector<1x4xf32>
    %cst_44 = arith.constant 1.600000e+01 : f32
    %57 = vector.broadcast %cst_44 : f32 to vector<1x4xf32>
    %58 = arith.divf %56, %57 : vector<1x4xf32>
    %59 = vector.broadcast %58 : vector<1x4xf32> to vector<16x4xf32>
    %60 = arith.subf %52, %59 : vector<16x4xf32>
    %61 = arith.mulf %60, %60 : vector<16x4xf32>
    %cst_45 = arith.constant dense<0.000000e+00> : vector<4xf32>
    %62 = vector.multi_reduction <add>, %61, %cst_45 [0] : vector<16x4xf32> to vector<4xf32>
    %63 = vector.shape_cast %62 : vector<4xf32> to vector<1x4xf32>
    %cst_46 = arith.constant 1.600000e+01 : f32
    %64 = vector.broadcast %cst_46 : f32 to vector<1x4xf32>
    %65 = arith.divf %63, %64 : vector<1x4xf32>
    %cst_47 = arith.constant 9.99999974E-6 : f32
    %66 = vector.broadcast %cst_47 : f32 to vector<1x4xf32>
    %67 = arith.addf %65, %66 : vector<1x4xf32>
    %68 = math.sqrt %67 : vector<1x4xf32>
    %cst_48 = arith.constant 9.99999974E-6 : f32
    %69 = vector.broadcast %cst_48 : f32 to vector<1x4xf32>
    %70 = arith.addf %65, %69 : vector<1x4xf32>
    %71 = math.rsqrt %70 : vector<1x4xf32>
    %72 = vector.broadcast %71 : vector<1x4xf32> to vector<16x4xf32>
    %73 = arith.mulf %60, %72 : vector<16x4xf32>
    %74 = tpu.concatenate %73, %54 in 1 : vector<16x4xf32>, vector<16x3xf32> -> vector<16x7xf32>
    %cst_49 = arith.constant dense<0.000000e+00> : vector<7x32xf32>
    %75 = tpu.matmul %74, %1, %cst_49 {dimension_numbers = #tpu.dot_dimension_numbers<[0], [0], [1], [1], [0, 1, 1, 1], [], []>} : vector<16x7xf32>, vector<16x32xf32>, vector<7x32xf32> -> vector<7x32xf32>
    %76 = vector.broadcast %2 : vector<1x32xf32> to vector<7x32xf32>
    %77 = arith.addf %75, %76 : vector<7x32xf32>
    %cst_50 = arith.constant dense<0.000000e+00> : vector<7x96xf32>
    %78 = tpu.matmul %77, %17, %cst_50 {dimension_numbers = #tpu.dot_dimension_numbers<[1], [0], [0], [1], [0, 0, 1, 1], [], []>} : vector<7x32xf32>, vector<32x96xf32>, vector<7x96xf32> -> vector<7x96xf32>
    %79 = vector.broadcast %18 : vector<1x96xf32> to vector<7x96xf32>
    %80 = arith.addf %78, %79 : vector<7x96xf32>
    %81 = vector.extract_strided_slice %80 {offsets = [0, 0], sizes = [7, 8], strides = [1, 1]} : vector<7x96xf32> to vector<7x8xf32>
    %82 = vector.extract_strided_slice %80 {offsets = [0, 32], sizes = [7, 8], strides = [1, 1]} : vector<7x96xf32> to vector<7x8xf32>
    %83 = vector.extract_strided_slice %80 {offsets = [0, 64], sizes = [7, 8], strides = [1, 1]} : vector<7x96xf32> to vector<7x8xf32>
    %cst_51 = arith.constant dense<0.000000e+00> : vector<7x7xf32>
    %84 = tpu.matmul %81, %82, %cst_51 {dimension_numbers = #tpu.dot_dimension_numbers<[1], [1], [0], [0], [0, 0, 1, 0], [], []>} : vector<7x8xf32>, vector<7x8xf32>, vector<7x7xf32> -> vector<7x7xf32>
    %cst_52 = arith.constant dense<0xFF800000> : vector<7xf32>
    %85 = vector.multi_reduction <maximumf>, %84, %cst_52 [1] : vector<7x7xf32> to vector<7xf32>
    %86 = vector.shape_cast %85 : vector<7xf32> to vector<7x1xf32>
    %87 = vector.broadcast %86 : vector<7x1xf32> to vector<7x7xf32>
    %88 = arith.subf %84, %87 : vector<7x7xf32>
    %89 = math.exp %88 : vector<7x7xf32>
    %cst_53 = arith.constant dense<0.000000e+00> : vector<7xf32>
    %90 = vector.multi_reduction <add>, %89, %cst_53 [1] : vector<7x7xf32> to vector<7xf32>
    %91 = vector.shape_cast %90 : vector<7xf32> to vector<7x1xf32>
    %92 = tpu.reciprocal %91 : vector<7x1xf32> -> vector<7x1xf32>
    %93 = vector.broadcast %92 : vector<7x1xf32> to vector<7x7xf32>
    %94 = arith.mulf %89, %93 : vector<7x7xf32>
    %cst_54 = arith.constant dense<0.000000e+00> : vector<7x8xf32>
    %95 = tpu.matmul %94, %83, %cst_54 {dimension_numbers = #tpu.dot_dimension_numbers<[1], [0], [0], [1], [0, 0, 1, 1], [], []>} : vector<7x7xf32>, vector<7x8xf32>, vector<7x8xf32> -> vector<7x8xf32>
    %96 = vector.extract_strided_slice %80 {offsets = [0, 8], sizes = [7, 8], strides = [1, 1]} : vector<7x96xf32> to vector<7x8xf32>
    %97 = vector.extract_strided_slice %80 {offsets = [0, 40], sizes = [7, 8], strides = [1, 1]} : vector<7x96xf32> to vector<7x8xf32>
    %98 = vector.extract_strided_slice %80 {offsets = [0, 72], sizes = [7, 8], strides = [1, 1]} : vector<7x96xf32> to vector<7x8xf32>
    %cst_55 = arith.constant dense<0.000000e+00> : vector<7x7xf32>
    %99 = tpu.matmul %96, %97, %cst_55 {dimension_numbers = #tpu.dot_dimension_numbers<[1], [1], [0], [0], [0, 0, 1, 0], [], []>} : vector<7x8xf32>, vector<7x8xf32>, vector<7x7xf32> -> vector<7x7xf32>
    %cst_56 = arith.constant dense<0xFF800000> : vector<7xf32>
    %100 = vector.multi_reduction <maximumf>, %99, %cst_56 [1] : vector<7x7xf32> to vector<7xf32>
    %101 = vector.shape_cast %100 : vector<7xf32> to vector<7x1xf32>
    %102 = vector.broadcast %101 : vector<7x1xf32> to vector<7x7xf32>
    %103 = arith.subf %99, %102 : vector<7x7xf32>
    %104 = math.exp %103 : vector<7x7xf32>
    %cst_57 = arith.constant dense<0.000000e+00> : vector<7xf32>
    %105 = vector.multi_reduction <add>, %104, %cst_57 [1] : vector<7x7xf32> to vector<7xf32>
    %106 = vector.shape_cast %105 : vector<7xf32> to vector<7x1xf32>
    %107 = tpu.reciprocal %106 : vector<7x1xf32> -> vector<7x1xf32>
    %108 = vector.broadcast %107 : vector<7x1xf32> to vector<7x7xf32>
    %109 = arith.mulf %104, %108 : vector<7x7xf32>
    %cst_58 = arith.constant dense<0.000000e+00> : vector<7x8xf32>
    %110 = tpu.matmul %109, %98, %cst_58 {dimension_numbers = #tpu.dot_dimension_numbers<[1], [0], [0], [1], [0, 0, 1, 1], [], []>} : vector<7x7xf32>, vector<7x8xf32>, vector<7x8xf32> -> vector<7x8xf32>
    %111 = vector.extract_strided_slice %80 {offsets = [0, 16], sizes = [7, 8], strides = [1, 1]} : vector<7x96xf32> to vector<7x8xf32>
    %112 = vector.extract_strided_slice %80 {offsets = [0, 48], sizes = [7, 8], strides = [1, 1]} : vector<7x96xf32> to vector<7x8xf32>
    %113 = vector.extract_strided_slice %80 {offsets = [0, 80], sizes = [7, 8], strides = [1, 1]} : vector<7x96xf32> to vector<7x8xf32>
    %cst_59 = arith.constant dense<0.000000e+00> : vector<7x7xf32>
    %114 = tpu.matmul %111, %112, %cst_59 {dimension_numbers = #tpu.dot_dimension_numbers<[1], [1], [0], [0], [0, 0, 1, 0], [], []>} : vector<7x8xf32>, vector<7x8xf32>, vector<7x7xf32> -> vector<7x7xf32>
    %cst_60 = arith.constant dense<0xFF800000> : vector<7xf32>
    %115 = vector.multi_reduction <maximumf>, %114, %cst_60 [1] : vector<7x7xf32> to vector<7xf32>
    %116 = vector.shape_cast %115 : vector<7xf32> to vector<7x1xf32>
    %117 = vector.broadcast %116 : vector<7x1xf32> to vector<7x7xf32>
    %118 = arith.subf %114, %117 : vector<7x7xf32>
    %119 = math.exp %118 : vector<7x7xf32>
    %cst_61 = arith.constant dense<0.000000e+00> : vector<7xf32>
    %120 = vector.multi_reduction <add>, %119, %cst_61 [1] : vector<7x7xf32> to vector<7xf32>
    %121 = vector.shape_cast %120 : vector<7xf32> to vector<7x1xf32>
    %122 = tpu.reciprocal %121 : vector<7x1xf32> -> vector<7x1xf32>
    %123 = vector.broadcast %122 : vector<7x1xf32> to vector<7x7xf32>
    %124 = arith.mulf %119, %123 : vector<7x7xf32>
    %cst_62 = arith.constant dense<0.000000e+00> : vector<7x8xf32>
    %125 = tpu.matmul %124, %113, %cst_62 {dimension_numbers = #tpu.dot_dimension_numbers<[1], [0], [0], [1], [0, 0, 1, 1], [], []>} : vector<7x7xf32>, vector<7x8xf32>, vector<7x8xf32> -> vector<7x8xf32>
    %126 = vector.extract_strided_slice %80 {offsets = [0, 24], sizes = [7, 8], strides = [1, 1]} : vector<7x96xf32> to vector<7x8xf32>
    %127 = vector.extract_strided_slice %80 {offsets = [0, 56], sizes = [7, 8], strides = [1, 1]} : vector<7x96xf32> to vector<7x8xf32>
    %128 = vector.extract_strided_slice %80 {offsets = [0, 88], sizes = [7, 8], strides = [1, 1]} : vector<7x96xf32> to vector<7x8xf32>
    %cst_63 = arith.constant dense<0.000000e+00> : vector<7x7xf32>
    %129 = tpu.matmul %126, %127, %cst_63 {dimension_numbers = #tpu.dot_dimension_numbers<[1], [1], [0], [0], [0, 0, 1, 0], [], []>} : vector<7x8xf32>, vector<7x8xf32>, vector<7x7xf32> -> vector<7x7xf32>
    %cst_64 = arith.constant dense<0xFF800000> : vector<7xf32>
    %130 = vector.multi_reduction <maximumf>, %129, %cst_64 [1] : vector<7x7xf32> to vector<7xf32>
    %131 = vector.shape_cast %130 : vector<7xf32> to vector<7x1xf32>
    %132 = vector.broadcast %131 : vector<7x1xf32> to vector<7x7xf32>
    %133 = arith.subf %129, %132 : vector<7x7xf32>
    %134 = math.exp %133 : vector<7x7xf32>
    %cst_65 = arith.constant dense<0.000000e+00> : vector<7xf32>
    %135 = vector.multi_reduction <add>, %134, %cst_65 [1] : vector<7x7xf32> to vector<7xf32>
    %136 = vector.shape_cast %135 : vector<7xf32> to vector<7x1xf32>
    %137 = tpu.reciprocal %136 : vector<7x1xf32> -> vector<7x1xf32>
    %138 = vector.broadcast %137 : vector<7x1xf32> to vector<7x7xf32>
    %139 = arith.mulf %134, %138 : vector<7x7xf32>
    %cst_66 = arith.constant dense<0.000000e+00> : vector<7x8xf32>
    %140 = tpu.matmul %139, %128, %cst_66 {dimension_numbers = #tpu.dot_dimension_numbers<[1], [0], [0], [1], [0, 0, 1, 1], [], []>} : vector<7x7xf32>, vector<7x8xf32>, vector<7x8xf32> -> vector<7x8xf32>
    %141 = tpu.concatenate %95, %110, %125, %140 in 1 : vector<7x8xf32>, vector<7x8xf32>, vector<7x8xf32>, vector<7x8xf32> -> vector<7x32xf32>
    %cst_67 = arith.constant dense<0.000000e+00> : vector<7x32xf32>
    %142 = tpu.matmul %141, %19, %cst_67 {dimension_numbers = #tpu.dot_dimension_numbers<[1], [0], [0], [1], [0, 0, 1, 1], [], []>} : vector<7x32xf32>, vector<32x32xf32>, vector<7x32xf32> -> vector<7x32xf32>
    %143 = vector.broadcast %20 : vector<1x32xf32> to vector<7x32xf32>
    %144 = arith.addf %142, %143 : vector<7x32xf32>
    %145 = arith.addf %77, %144 : vector<7x32xf32>
    %cst_68 = arith.constant dense<0.000000e+00> : vector<7xf32>
    %146 = vector.multi_reduction <add>, %145, %cst_68 [1] : vector<7x32xf32> to vector<7xf32>
    %147 = vector.shape_cast %146 : vector<7xf32> to vector<7x1xf32>
    %cst_69 = arith.constant 3.200000e+01 : f32
    %148 = vector.broadcast %cst_69 : f32 to vector<7x1xf32>
    %149 = arith.divf %147, %148 : vector<7x1xf32>
    %150 = vector.broadcast %149 : vector<7x1xf32> to vector<7x32xf32>
    %151 = arith.subf %145, %150 : vector<7x32xf32>
    %152 = arith.mulf %151, %151 : vector<7x32xf32>
    %cst_70 = arith.constant dense<0.000000e+00> : vector<7xf32>
    %153 = vector.multi_reduction <add>, %152, %cst_70 [1] : vector<7x32xf32> to vector<7xf32>
    %154 = vector.shape_cast %153 : vector<7xf32> to vector<7x1xf32>
    %cst_71 = arith.constant 3.200000e+01 : f32
    %155 = vector.broadcast %cst_71 : f32 to vector<7x1xf32>
    %156 = arith.divf %154, %155 : vector<7x1xf32>
    %cst_72 = arith.constant 9.99999974E-6 : f32
    %157 = vector.broadcast %cst_72 : f32 to vector<7x1xf32>
    %158 = arith.addf %156, %157 : vector<7x1xf32>
    %159 = math.rsqrt %158 : vector<7x1xf32>
    %160 = vector.broadcast %159 : vector<7x1xf32> to vector<7x32xf32>
    %161 = arith.mulf %151, %160 : vector<7x32xf32>
    %162 = vector.broadcast %21 : vector<1x32xf32> to vector<7x32xf32>
    %163 = arith.mulf %161, %162 : vector<7x32xf32>
    %164 = vector.broadcast %22 : vector<1x32xf32> to vector<7x32xf32>
    %165 = arith.addf %163, %164 : vector<7x32xf32>
    %cst_73 = arith.constant dense<0.000000e+00> : vector<7x64xf32>
    %166 = tpu.matmul %165, %25, %cst_73 {dimension_numbers = #tpu.dot_dimension_numbers<[1], [0], [0], [1], [0, 0, 1, 1], [], []>} : vector<7x32xf32>, vector<32x64xf32>, vector<7x64xf32> -> vector<7x64xf32>
    %167 = vector.broadcast %26 : vector<1x64xf32> to vector<7x64xf32>
    %168 = arith.addf %166, %167 : vector<7x64xf32>
    %cst_74 = arith.constant 0.000000e+00 : f32
    %169 = vector.broadcast %cst_74 : f32 to vector<7x64xf32>
    %170 = arith.maximumf %168, %169 : vector<7x64xf32>
    %cst_75 = arith.constant dense<0.000000e+00> : vector<7x32xf32>
    %171 = tpu.matmul %170, %27, %cst_75 {dimension_numbers = #tpu.dot_dimension_numbers<[1], [0], [0], [1], [0, 0, 1, 1], [], []>} : vector<7x64xf32>, vector<64x32xf32>, vector<7x32xf32> -> vector<7x32xf32>
    %172 = vector.broadcast %28 : vector<1x32xf32> to vector<7x32xf32>
    %173 = arith.addf %171, %172 : vector<7x32xf32>
    %174 = arith.addf %165, %173 : vector<7x32xf32>
    %cst_76 = arith.constant dense<0.000000e+00> : vector<7xf32>
    %175 = vector.multi_reduction <add>, %174, %cst_76 [1] : vector<7x32xf32> to vector<7xf32>
    %176 = vector.shape_cast %175 : vector<7xf32> to vector<7x1xf32>
    %cst_77 = arith.constant 3.200000e+01 : f32
    %177 = vector.broadcast %cst_77 : f32 to vector<7x1xf32>
    %178 = arith.divf %176, %177 : vector<7x1xf32>
    %179 = vector.broadcast %178 : vector<7x1xf32> to vector<7x32xf32>
    %180 = arith.subf %174, %179 : vector<7x32xf32>
    %181 = arith.mulf %180, %180 : vector<7x32xf32>
    %cst_78 = arith.constant dense<0.000000e+00> : vector<7xf32>
    %182 = vector.multi_reduction <add>, %181, %cst_78 [1] : vector<7x32xf32> to vector<7xf32>
    %183 = vector.shape_cast %182 : vector<7xf32> to vector<7x1xf32>
    %cst_79 = arith.constant 3.200000e+01 : f32
    %184 = vector.broadcast %cst_79 : f32 to vector<7x1xf32>
    %185 = arith.divf %183, %184 : vector<7x1xf32>
    %cst_80 = arith.constant 9.99999974E-6 : f32
    %186 = vector.broadcast %cst_80 : f32 to vector<7x1xf32>
    %187 = arith.addf %185, %186 : vector<7x1xf32>
    %188 = math.rsqrt %187 : vector<7x1xf32>
    %189 = vector.broadcast %188 : vector<7x1xf32> to vector<7x32xf32>
    %190 = arith.mulf %180, %189 : vector<7x32xf32>
    %191 = vector.broadcast %23 : vector<1x32xf32> to vector<7x32xf32>
    %192 = arith.mulf %190, %191 : vector<7x32xf32>
    %193 = vector.broadcast %24 : vector<1x32xf32> to vector<7x32xf32>
    %194 = arith.addf %192, %193 : vector<7x32xf32>
    %cst_81 = arith.constant dense<0.000000e+00> : vector<7x96xf32>
    %195 = tpu.matmul %194, %39, %cst_81 {dimension_numbers = #tpu.dot_dimension_numbers<[1], [0], [0], [1], [0, 0, 1, 1], [], []>} : vector<7x32xf32>, vector<32x96xf32>, vector<7x96xf32> -> vector<7x96xf32>
    %196 = vector.broadcast %40 : vector<1x96xf32> to vector<7x96xf32>
    %197 = arith.addf %195, %196 : vector<7x96xf32>
    %198 = vector.extract_strided_slice %197 {offsets = [0, 0], sizes = [7, 8], strides = [1, 1]} : vector<7x96xf32> to vector<7x8xf32>
    %199 = vector.extract_strided_slice %197 {offsets = [0, 32], sizes = [7, 8], strides = [1, 1]} : vector<7x96xf32> to vector<7x8xf32>
    %200 = vector.extract_strided_slice %197 {offsets = [0, 64], sizes = [7, 8], strides = [1, 1]} : vector<7x96xf32> to vector<7x8xf32>
    %cst_82 = arith.constant dense<0.000000e+00> : vector<7x7xf32>
    %201 = tpu.matmul %198, %199, %cst_82 {dimension_numbers = #tpu.dot_dimension_numbers<[1], [1], [0], [0], [0, 0, 1, 0], [], []>} : vector<7x8xf32>, vector<7x8xf32>, vector<7x7xf32> -> vector<7x7xf32>
    %cst_83 = arith.constant dense<0xFF800000> : vector<7xf32>
    %202 = vector.multi_reduction <maximumf>, %201, %cst_83 [1] : vector<7x7xf32> to vector<7xf32>
    %203 = vector.shape_cast %202 : vector<7xf32> to vector<7x1xf32>
    %204 = vector.broadcast %203 : vector<7x1xf32> to vector<7x7xf32>
    %205 = arith.subf %201, %204 : vector<7x7xf32>
    %206 = math.exp %205 : vector<7x7xf32>
    %cst_84 = arith.constant dense<0.000000e+00> : vector<7xf32>
    %207 = vector.multi_reduction <add>, %206, %cst_84 [1] : vector<7x7xf32> to vector<7xf32>
    %208 = vector.shape_cast %207 : vector<7xf32> to vector<7x1xf32>
    %209 = tpu.reciprocal %208 : vector<7x1xf32> -> vector<7x1xf32>
    %210 = vector.broadcast %209 : vector<7x1xf32> to vector<7x7xf32>
    %211 = arith.mulf %206, %210 : vector<7x7xf32>
    %cst_85 = arith.constant dense<0.000000e+00> : vector<7x8xf32>
    %212 = tpu.matmul %211, %200, %cst_85 {dimension_numbers = #tpu.dot_dimension_numbers<[1], [0], [0], [1], [0, 0, 1, 1], [], []>} : vector<7x7xf32>, vector<7x8xf32>, vector<7x8xf32> -> vector<7x8xf32>
    %213 = vector.extract_strided_slice %197 {offsets = [0, 8], sizes = [7, 8], strides = [1, 1]} : vector<7x96xf32> to vector<7x8xf32>
    %214 = vector.extract_strided_slice %197 {offsets = [0, 40], sizes = [7, 8], strides = [1, 1]} : vector<7x96xf32> to vector<7x8xf32>
    %215 = vector.extract_strided_slice %197 {offsets = [0, 72], sizes = [7, 8], strides = [1, 1]} : vector<7x96xf32> to vector<7x8xf32>
    %cst_86 = arith.constant dense<0.000000e+00> : vector<7x7xf32>
    %216 = tpu.matmul %213, %214, %cst_86 {dimension_numbers = #tpu.dot_dimension_numbers<[1], [1], [0], [0], [0, 0, 1, 0], [], []>} : vector<7x8xf32>, vector<7x8xf32>, vector<7x7xf32> -> vector<7x7xf32>
    %cst_87 = arith.constant dense<0xFF800000> : vector<7xf32>
    %217 = vector.multi_reduction <maximumf>, %216, %cst_87 [1] : vector<7x7xf32> to vector<7xf32>
    %218 = vector.shape_cast %217 : vector<7xf32> to vector<7x1xf32>
    %219 = vector.broadcast %218 : vector<7x1xf32> to vector<7x7xf32>
    %220 = arith.subf %216, %219 : vector<7x7xf32>
    %221 = math.exp %220 : vector<7x7xf32>
    %cst_88 = arith.constant dense<0.000000e+00> : vector<7xf32>
    %222 = vector.multi_reduction <add>, %221, %cst_88 [1] : vector<7x7xf32> to vector<7xf32>
    %223 = vector.shape_cast %222 : vector<7xf32> to vector<7x1xf32>
    %224 = tpu.reciprocal %223 : vector<7x1xf32> -> vector<7x1xf32>
    %225 = vector.broadcast %224 : vector<7x1xf32> to vector<7x7xf32>
    %226 = arith.mulf %221, %225 : vector<7x7xf32>
    %cst_89 = arith.constant dense<0.000000e+00> : vector<7x8xf32>
    %227 = tpu.matmul %226, %215, %cst_89 {dimension_numbers = #tpu.dot_dimension_numbers<[1], [0], [0], [1], [0, 0, 1, 1], [], []>} : vector<7x7xf32>, vector<7x8xf32>, vector<7x8xf32> -> vector<7x8xf32>
    %228 = vector.extract_strided_slice %197 {offsets = [0, 16], sizes = [7, 8], strides = [1, 1]} : vector<7x96xf32> to vector<7x8xf32>
    %229 = vector.extract_strided_slice %197 {offsets = [0, 48], sizes = [7, 8], strides = [1, 1]} : vector<7x96xf32> to vector<7x8xf32>
    %230 = vector.extract_strided_slice %197 {offsets = [0, 80], sizes = [7, 8], strides = [1, 1]} : vector<7x96xf32> to vector<7x8xf32>
    %cst_90 = arith.constant dense<0.000000e+00> : vector<7x7xf32>
    %231 = tpu.matmul %228, %229, %cst_90 {dimension_numbers = #tpu.dot_dimension_numbers<[1], [1], [0], [0], [0, 0, 1, 0], [], []>} : vector<7x8xf32>, vector<7x8xf32>, vector<7x7xf32> -> vector<7x7xf32>
    %cst_91 = arith.constant dense<0xFF800000> : vector<7xf32>
    %232 = vector.multi_reduction <maximumf>, %231, %cst_91 [1] : vector<7x7xf32> to vector<7xf32>
    %233 = vector.shape_cast %232 : vector<7xf32> to vector<7x1xf32>
    %234 = vector.broadcast %233 : vector<7x1xf32> to vector<7x7xf32>
    %235 = arith.subf %231, %234 : vector<7x7xf32>
    %236 = math.exp %235 : vector<7x7xf32>
    %cst_92 = arith.constant dense<0.000000e+00> : vector<7xf32>
    %237 = vector.multi_reduction <add>, %236, %cst_92 [1] : vector<7x7xf32> to vector<7xf32>
    %238 = vector.shape_cast %237 : vector<7xf32> to vector<7x1xf32>
    %239 = tpu.reciprocal %238 : vector<7x1xf32> -> vector<7x1xf32>
    %240 = vector.broadcast %239 : vector<7x1xf32> to vector<7x7xf32>
    %241 = arith.mulf %236, %240 : vector<7x7xf32>
    %cst_93 = arith.constant dense<0.000000e+00> : vector<7x8xf32>
    %242 = tpu.matmul %241, %230, %cst_93 {dimension_numbers = #tpu.dot_dimension_numbers<[1], [0], [0], [1], [0, 0, 1, 1], [], []>} : vector<7x7xf32>, vector<7x8xf32>, vector<7x8xf32> -> vector<7x8xf32>
    %243 = vector.extract_strided_slice %197 {offsets = [0, 24], sizes = [7, 8], strides = [1, 1]} : vector<7x96xf32> to vector<7x8xf32>
    %244 = vector.extract_strided_slice %197 {offsets = [0, 56], sizes = [7, 8], strides = [1, 1]} : vector<7x96xf32> to vector<7x8xf32>
    %245 = vector.extract_strided_slice %197 {offsets = [0, 88], sizes = [7, 8], strides = [1, 1]} : vector<7x96xf32> to vector<7x8xf32>
    %cst_94 = arith.constant dense<0.000000e+00> : vector<7x7xf32>
    %246 = tpu.matmul %243, %244, %cst_94 {dimension_numbers = #tpu.dot_dimension_numbers<[1], [1], [0], [0], [0, 0, 1, 0], [], []>} : vector<7x8xf32>, vector<7x8xf32>, vector<7x7xf32> -> vector<7x7xf32>
    %cst_95 = arith.constant dense<0xFF800000> : vector<7xf32>
    %247 = vector.multi_reduction <maximumf>, %246, %cst_95 [1] : vector<7x7xf32> to vector<7xf32>
    %248 = vector.shape_cast %247 : vector<7xf32> to vector<7x1xf32>
    %249 = vector.broadcast %248 : vector<7x1xf32> to vector<7x7xf32>
    %250 = arith.subf %246, %249 : vector<7x7xf32>
    %251 = math.exp %250 : vector<7x7xf32>
    %cst_96 = arith.constant dense<0.000000e+00> : vector<7xf32>
    %252 = vector.multi_reduction <add>, %251, %cst_96 [1] : vector<7x7xf32> to vector<7xf32>
    %253 = vector.shape_cast %252 : vector<7xf32> to vector<7x1xf32>
    %254 = tpu.reciprocal %253 : vector<7x1xf32> -> vector<7x1xf32>
    %255 = vector.broadcast %254 : vector<7x1xf32> to vector<7x7xf32>
    %256 = arith.mulf %251, %255 : vector<7x7xf32>
    %cst_97 = arith.constant dense<0.000000e+00> : vector<7x8xf32>
    %257 = tpu.matmul %256, %245, %cst_97 {dimension_numbers = #tpu.dot_dimension_numbers<[1], [0], [0], [1], [0, 0, 1, 1], [], []>} : vector<7x7xf32>, vector<7x8xf32>, vector<7x8xf32> -> vector<7x8xf32>
    %258 = tpu.concatenate %212, %227, %242, %257 in 1 : vector<7x8xf32>, vector<7x8xf32>, vector<7x8xf32>, vector<7x8xf32> -> vector<7x32xf32>
    %cst_98 = arith.constant dense<0.000000e+00> : vector<7x32xf32>
    %259 = tpu.matmul %258, %41, %cst_98 {dimension_numbers = #tpu.dot_dimension_numbers<[1], [0], [0], [1], [0, 0, 1, 1], [], []>} : vector<7x32xf32>, vector<32x32xf32>, vector<7x32xf32> -> vector<7x32xf32>
    %260 = vector.broadcast %42 : vector<1x32xf32> to vector<7x32xf32>
    %261 = arith.addf %259, %260 : vector<7x32xf32>
    %262 = arith.addf %194, %261 : vector<7x32xf32>
    %cst_99 = arith.constant dense<0.000000e+00> : vector<7xf32>
    %263 = vector.multi_reduction <add>, %262, %cst_99 [1] : vector<7x32xf32> to vector<7xf32>
    %264 = vector.shape_cast %263 : vector<7xf32> to vector<7x1xf32>
    %cst_100 = arith.constant 3.200000e+01 : f32
    %265 = vector.broadcast %cst_100 : f32 to vector<7x1xf32>
    %266 = arith.divf %264, %265 : vector<7x1xf32>
    %267 = vector.broadcast %266 : vector<7x1xf32> to vector<7x32xf32>
    %268 = arith.subf %262, %267 : vector<7x32xf32>
    %269 = arith.mulf %268, %268 : vector<7x32xf32>
    %cst_101 = arith.constant dense<0.000000e+00> : vector<7xf32>
    %270 = vector.multi_reduction <add>, %269, %cst_101 [1] : vector<7x32xf32> to vector<7xf32>
    %271 = vector.shape_cast %270 : vector<7xf32> to vector<7x1xf32>
    %cst_102 = arith.constant 3.200000e+01 : f32
    %272 = vector.broadcast %cst_102 : f32 to vector<7x1xf32>
    %273 = arith.divf %271, %272 : vector<7x1xf32>
    %cst_103 = arith.constant 9.99999974E-6 : f32
    %274 = vector.broadcast %cst_103 : f32 to vector<7x1xf32>
    %275 = arith.addf %273, %274 : vector<7x1xf32>
    %276 = math.rsqrt %275 : vector<7x1xf32>
    %277 = vector.broadcast %276 : vector<7x1xf32> to vector<7x32xf32>
    %278 = arith.mulf %268, %277 : vector<7x32xf32>
    %279 = vector.broadcast %43 : vector<1x32xf32> to vector<7x32xf32>
    %280 = arith.mulf %278, %279 : vector<7x32xf32>
    %281 = vector.broadcast %44 : vector<1x32xf32> to vector<7x32xf32>
    %282 = arith.addf %280, %281 : vector<7x32xf32>
    %cst_104 = arith.constant dense<0.000000e+00> : vector<7x64xf32>
    %283 = tpu.matmul %282, %47, %cst_104 {dimension_numbers = #tpu.dot_dimension_numbers<[1], [0], [0], [1], [0, 0, 1, 1], [], []>} : vector<7x32xf32>, vector<32x64xf32>, vector<7x64xf32> -> vector<7x64xf32>
    %284 = vector.broadcast %48 : vector<1x64xf32> to vector<7x64xf32>
    %285 = arith.addf %283, %284 : vector<7x64xf32>
    %cst_105 = arith.constant 0.000000e+00 : f32
    %286 = vector.broadcast %cst_105 : f32 to vector<7x64xf32>
    %287 = arith.maximumf %285, %286 : vector<7x64xf32>
    %cst_106 = arith.constant dense<0.000000e+00> : vector<7x32xf32>
    %288 = tpu.matmul %287, %49, %cst_106 {dimension_numbers = #tpu.dot_dimension_numbers<[1], [0], [0], [1], [0, 0, 1, 1], [], []>} : vector<7x64xf32>, vector<64x32xf32>, vector<7x32xf32> -> vector<7x32xf32>
    %289 = vector.broadcast %50 : vector<1x32xf32> to vector<7x32xf32>
    %290 = arith.addf %288, %289 : vector<7x32xf32>
    %291 = arith.addf %282, %290 : vector<7x32xf32>
    %cst_107 = arith.constant dense<0.000000e+00> : vector<7xf32>
    %292 = vector.multi_reduction <add>, %291, %cst_107 [1] : vector<7x32xf32> to vector<7xf32>
    %293 = vector.shape_cast %292 : vector<7xf32> to vector<7x1xf32>
    %cst_108 = arith.constant 3.200000e+01 : f32
    %294 = vector.broadcast %cst_108 : f32 to vector<7x1xf32>
    %295 = arith.divf %293, %294 : vector<7x1xf32>
    %296 = vector.broadcast %295 : vector<7x1xf32> to vector<7x32xf32>
    %297 = arith.subf %291, %296 : vector<7x32xf32>
    %298 = arith.mulf %297, %297 : vector<7x32xf32>
    %cst_109 = arith.constant dense<0.000000e+00> : vector<7xf32>
    %299 = vector.multi_reduction <add>, %298, %cst_109 [1] : vector<7x32xf32> to vector<7xf32>
    %300 = vector.shape_cast %299 : vector<7xf32> to vector<7x1xf32>
    %cst_110 = arith.constant 3.200000e+01 : f32
    %301 = vector.broadcast %cst_110 : f32 to vector<7x1xf32>
    %302 = arith.divf %300, %301 : vector<7x1xf32>
    %cst_111 = arith.constant 9.99999974E-6 : f32
    %303 = vector.broadcast %cst_111 : f32 to vector<7x1xf32>
    %304 = arith.addf %302, %303 : vector<7x1xf32>
    %305 = math.rsqrt %304 : vector<7x1xf32>
    %306 = vector.broadcast %305 : vector<7x1xf32> to vector<7x32xf32>
    %307 = arith.mulf %297, %306 : vector<7x32xf32>
    %308 = vector.broadcast %45 : vector<1x32xf32> to vector<7x32xf32>
    %309 = arith.mulf %307, %308 : vector<7x32xf32>
    %310 = vector.broadcast %46 : vector<1x32xf32> to vector<7x32xf32>
    %311 = arith.addf %309, %310 : vector<7x32xf32>
    %312 = vector.extract_strided_slice %311 {offsets = [0, 0], sizes = [4, 32], strides = [1, 1]} : vector<7x32xf32> to vector<4x32xf32>
    %cst_112 = arith.constant dense<0.000000e+00> : vector<4xf32>
    %313 = vector.multi_reduction <add>, %312, %cst_112 [1] : vector<4x32xf32> to vector<4xf32>
    %314 = vector.shape_cast %313 : vector<4xf32> to vector<4x1xf32>
    %cst_113 = arith.constant 3.200000e+01 : f32
    %315 = vector.broadcast %cst_113 : f32 to vector<4x1xf32>
    %316 = arith.divf %314, %315 : vector<4x1xf32>
    %317 = vector.broadcast %316 : vector<4x1xf32> to vector<4x32xf32>
    %318 = arith.subf %312, %317 : vector<4x32xf32>
    %319 = arith.mulf %318, %318 : vector<4x32xf32>
    %cst_114 = arith.constant dense<0.000000e+00> : vector<4xf32>
    %320 = vector.multi_reduction <add>, %319, %cst_114 [1] : vector<4x32xf32> to vector<4xf32>
    %321 = vector.shape_cast %320 : vector<4xf32> to vector<4x1xf32>
    %cst_115 = arith.constant 3.200000e+01 : f32
    %322 = vector.broadcast %cst_115 : f32 to vector<4x1xf32>
    %323 = arith.divf %321, %322 : vector<4x1xf32>
    %cst_116 = arith.constant 9.99999974E-6 : f32
    %324 = vector.broadcast %cst_116 : f32 to vector<4x1xf32>
    %325 = arith.addf %323, %324 : vector<4x1xf32>
    %326 = math.rsqrt %325 : vector<4x1xf32>
    %327 = vector.broadcast %326 : vector<4x1xf32> to vector<4x32xf32>
    %328 = arith.mulf %318, %327 : vector<4x32xf32>
    %329 = vector.broadcast %3 : vector<1x32xf32> to vector<4x32xf32>
    %330 = arith.mulf %328, %329 : vector<4x32xf32>
    %331 = vector.broadcast %4 : vector<1x32xf32> to vector<4x32xf32>
    %332 = arith.addf %330, %331 : vector<4x32xf32>
    %cst_117 = arith.constant dense<0.000000e+00> : vector<8x4xf32>
    %333 = tpu.matmul %5, %332, %cst_117 {dimension_numbers = #tpu.dot_dimension_numbers<[0], [1], [1], [0], [0, 1, 1, 0], [], []>} : vector<32x8xf32>, vector<4x32xf32>, vector<8x4xf32> -> vector<8x4xf32>
    %334 = vector.broadcast %6 : vector<8x1xf32> to vector<8x4xf32>
    %335 = arith.addf %333, %334 : vector<8x4xf32>
    %336 = vector.broadcast %68 : vector<1x4xf32> to vector<8x4xf32>
    %337 = arith.mulf %335, %336 : vector<8x4xf32>
    %338 = vector.broadcast %58 : vector<1x4xf32> to vector<8x4xf32>
    %339 = arith.addf %337, %338 : vector<8x4xf32>
    %c0_118 = arith.constant 0 : index
    %c0_119 = arith.constant 0 : index
    %c0_120 = arith.constant 0 : index
    %340 = vector.load %arg12[%c0_118, %c0_119, %c0_120] : memref<2x8x4xf32, #tpu.memory_space<vmem>>, vector<1x8x4xf32>
    %341 = vector.shape_cast %340 : vector<1x8x4xf32> to vector<8x4xf32>
    %342 = vector.shape_cast %339 : vector<8x4xf32> to vector<1x8x4xf32>
    tpu.vector_store %arg12[%c0_118, %c0_119, %c0_120], %342 {strides = array<i32>} : memref<2x8x4xf32, #tpu.memory_space<vmem>>, vector<1x8x4xf32>,
    %c1_121 = arith.constant 1 : index
    %c0_122 = arith.constant 0 : index
    %c0_123 = arith.constant 0 : index
    %343 = vector.load %arg1[%c1_121, %c0_122, %c0_123] : memref<2x16x4xf32, #tpu.memory_space<vmem>>, vector<1x16x4xf32>
    %344 = vector.shape_cast %343 : vector<1x16x4xf32> to vector<16x4xf32>
    %c1_124 = arith.constant 1 : index
    %c0_125 = arith.constant 0 : index
    %c0_126 = arith.constant 0 : index
    %345 = vector.load %arg2[%c1_124, %c0_125, %c0_126] : memref<2x16x3xf32, #tpu.memory_space<vmem>>, vector<1x16x3xf32>
    %346 = vector.shape_cast %345 : vector<1x16x3xf32> to vector<16x3xf32>
    %cst_127 = arith.constant dense<0.000000e+00> : vector<4xf32>
    %347 = vector.multi_reduction <add>, %344, %cst_127 [0] : vector<16x4xf32> to vector<4xf32>
    %348 = vector.shape_cast %347 : vector<4xf32> to vector<1x4xf32>
    %cst_128 = arith.constant 1.600000e+01 : f32
    %349 = vector.broadcast %cst_128 : f32 to vector<1x4xf32>
    %350 = arith.divf %348, %349 : vector<1x4xf32>
    %351 = vector.broadcast %350 : vector<1x4xf32> to vector<16x4xf32>
    %352 = arith.subf %344, %351 : vector<16x4xf32>
    %353 = arith.mulf %352, %352 : vector<16x4xf32>
    %cst_129 = arith.constant dense<0.000000e+00> : vector<4xf32>
    %354 = vector.multi_reduction <add>, %353, %cst_129 [0] : vector<16x4xf32> to vector<4xf32>
    %355 = vector.shape_cast %354 : vector<4xf32> to vector<1x4xf32>
    %cst_130 = arith.constant 1.600000e+01 : f32
    %356 = vector.broadcast %cst_130 : f32 to vector<1x4xf32>
    %357 = arith.divf %355, %356 : vector<1x4xf32>
    %cst_131 = arith.constant 9.99999974E-6 : f32
    %358 = vector.broadcast %cst_131 : f32 to vector<1x4xf32>
    %359 = arith.addf %357, %358 : vector<1x4xf32>
    %360 = math.sqrt %359 : vector<1x4xf32>
    %cst_132 = arith.constant 9.99999974E-6 : f32
    %361 = vector.broadcast %cst_132 : f32 to vector<1x4xf32>
    %362 = arith.addf %357, %361 : vector<1x4xf32>
    %363 = math.rsqrt %362 : vector<1x4xf32>
    %364 = vector.broadcast %363 : vector<1x4xf32> to vector<16x4xf32>
    %365 = arith.mulf %352, %364 : vector<16x4xf32>
    %366 = tpu.concatenate %365, %346 in 1 : vector<16x4xf32>, vector<16x3xf32> -> vector<16x7xf32>
    %cst_133 = arith.constant dense<0.000000e+00> : vector<7x32xf32>
    %367 = tpu.matmul %366, %1, %cst_133 {dimension_numbers = #tpu.dot_dimension_numbers<[0], [0], [1], [1], [0, 1, 1, 1], [], []>} : vector<16x7xf32>, vector<16x32xf32>, vector<7x32xf32> -> vector<7x32xf32>
    %368 = vector.broadcast %2 : vector<1x32xf32> to vector<7x32xf32>
    %369 = arith.addf %367, %368 : vector<7x32xf32>
    %cst_134 = arith.constant dense<0.000000e+00> : vector<7x96xf32>
    %370 = tpu.matmul %369, %17, %cst_134 {dimension_numbers = #tpu.dot_dimension_numbers<[1], [0], [0], [1], [0, 0, 1, 1], [], []>} : vector<7x32xf32>, vector<32x96xf32>, vector<7x96xf32> -> vector<7x96xf32>
    %371 = vector.broadcast %18 : vector<1x96xf32> to vector<7x96xf32>
    %372 = arith.addf %370, %371 : vector<7x96xf32>
    %373 = vector.extract_strided_slice %372 {offsets = [0, 0], sizes = [7, 8], strides = [1, 1]} : vector<7x96xf32> to vector<7x8xf32>
    %374 = vector.extract_strided_slice %372 {offsets = [0, 32], sizes = [7, 8], strides = [1, 1]} : vector<7x96xf32> to vector<7x8xf32>
    %375 = vector.extract_strided_slice %372 {offsets = [0, 64], sizes = [7, 8], strides = [1, 1]} : vector<7x96xf32> to vector<7x8xf32>
    %cst_135 = arith.constant dense<0.000000e+00> : vector<7x7xf32>
    %376 = tpu.matmul %373, %374, %cst_135 {dimension_numbers = #tpu.dot_dimension_numbers<[1], [1], [0], [0], [0, 0, 1, 0], [], []>} : vector<7x8xf32>, vector<7x8xf32>, vector<7x7xf32> -> vector<7x7xf32>
    %cst_136 = arith.constant dense<0xFF800000> : vector<7xf32>
    %377 = vector.multi_reduction <maximumf>, %376, %cst_136 [1] : vector<7x7xf32> to vector<7xf32>
    %378 = vector.shape_cast %377 : vector<7xf32> to vector<7x1xf32>
    %379 = vector.broadcast %378 : vector<7x1xf32> to vector<7x7xf32>
    %380 = arith.subf %376, %379 : vector<7x7xf32>
    %381 = math.exp %380 : vector<7x7xf32>
    %cst_137 = arith.constant dense<0.000000e+00> : vector<7xf32>
    %382 = vector.multi_reduction <add>, %381, %cst_137 [1] : vector<7x7xf32> to vector<7xf32>
    %383 = vector.shape_cast %382 : vector<7xf32> to vector<7x1xf32>
    %384 = tpu.reciprocal %383 : vector<7x1xf32> -> vector<7x1xf32>
    %385 = vector.broadcast %384 : vector<7x1xf32> to vector<7x7xf32>
    %386 = arith.mulf %381, %385 : vector<7x7xf32>
    %cst_138 = arith.constant dense<0.000000e+00> : vector<7x8xf32>
    %387 = tpu.matmul %386, %375, %cst_138 {dimension_numbers = #tpu.dot_dimension_numbers<[1], [0], [0], [1], [0, 0, 1, 1], [], []>} : vector<7x7xf32>, vector<7x8xf32>, vector<7x8xf32> -> vector<7x8xf32>
    %388 = vector.extract_strided_slice %372 {offsets = [0, 8], sizes = [7, 8], strides = [1, 1]} : vector<7x96xf32> to vector<7x8xf32>
    %389 = vector.extract_strided_slice %372 {offsets = [0, 40], sizes = [7, 8], strides = [1, 1]} : vector<7x96xf32> to vector<7x8xf32>
    %390 = vector.extract_strided_slice %372 {offsets = [0, 72], sizes = [7, 8], strides = [1, 1]} : vector<7x96xf32> to vector<7x8xf32>
    %cst_139 = arith.constant dense<0.000000e+00> : vector<7x7xf32>
    %391 = tpu.matmul %388, %389, %cst_139 {dimension_numbers = #tpu.dot_dimension_numbers<[1], [1], [0], [0], [0, 0, 1, 0], [], []>} : vector<7x8xf32>, vector<7x8xf32>, vector<7x7xf32> -> vector<7x7xf32>
    %cst_140 = arith.constant dense<0xFF800000> : vector<7xf32>
    %392 = vector.multi_reduction <maximumf>, %391, %cst_140 [1] : vector<7x7xf32> to vector<7xf32>
    %393 = vector.shape_cast %392 : vector<7xf32> to vector<7x1xf32>
    %394 = vector.broadcast %393 : vector<7x1xf32> to vector<7x7xf32>
    %395 = arith.subf %391, %394 : vector<7x7xf32>
    %396 = math.exp %395 : vector<7x7xf32>
    %cst_141 = arith.constant dense<0.000000e+00> : vector<7xf32>
    %397 = vector.multi_reduction <add>, %396, %cst_141 [1] : vector<7x7xf32> to vector<7xf32>
    %398 = vector.shape_cast %397 : vector<7xf32> to vector<7x1xf32>
    %399 = tpu.reciprocal %398 : vector<7x1xf32> -> vector<7x1xf32>
    %400 = vector.broadcast %399 : vector<7x1xf32> to vector<7x7xf32>
    %401 = arith.mulf %396, %400 : vector<7x7xf32>
    %cst_142 = arith.constant dense<0.000000e+00> : vector<7x8xf32>
    %402 = tpu.matmul %401, %390, %cst_142 {dimension_numbers = #tpu.dot_dimension_numbers<[1], [0], [0], [1], [0, 0, 1, 1], [], []>} : vector<7x7xf32>, vector<7x8xf32>, vector<7x8xf32> -> vector<7x8xf32>
    %403 = vector.extract_strided_slice %372 {offsets = [0, 16], sizes = [7, 8], strides = [1, 1]} : vector<7x96xf32> to vector<7x8xf32>
    %404 = vector.extract_strided_slice %372 {offsets = [0, 48], sizes = [7, 8], strides = [1, 1]} : vector<7x96xf32> to vector<7x8xf32>
    %405 = vector.extract_strided_slice %372 {offsets = [0, 80], sizes = [7, 8], strides = [1, 1]} : vector<7x96xf32> to vector<7x8xf32>
    %cst_143 = arith.constant dense<0.000000e+00> : vector<7x7xf32>
    %406 = tpu.matmul %403, %404, %cst_143 {dimension_numbers = #tpu.dot_dimension_numbers<[1], [1], [0], [0], [0, 0, 1, 0], [], []>} : vector<7x8xf32>, vector<7x8xf32>, vector<7x7xf32> -> vector<7x7xf32>
    %cst_144 = arith.constant dense<0xFF800000> : vector<7xf32>
    %407 = vector.multi_reduction <maximumf>, %406, %cst_144 [1] : vector<7x7xf32> to vector<7xf32>
    %408 = vector.shape_cast %407 : vector<7xf32> to vector<7x1xf32>
    %409 = vector.broadcast %408 : vector<7x1xf32> to vector<7x7xf32>
    %410 = arith.subf %406, %409 : vector<7x7xf32>
    %411 = math.exp %410 : vector<7x7xf32>
    %cst_145 = arith.constant dense<0.000000e+00> : vector<7xf32>
    %412 = vector.multi_reduction <add>, %411, %cst_145 [1] : vector<7x7xf32> to vector<7xf32>
    %413 = vector.shape_cast %412 : vector<7xf32> to vector<7x1xf32>
    %414 = tpu.reciprocal %413 : vector<7x1xf32> -> vector<7x1xf32>
    %415 = vector.broadcast %414 : vector<7x1xf32> to vector<7x7xf32>
    %416 = arith.mulf %411, %415 : vector<7x7xf32>
    %cst_146 = arith.constant dense<0.000000e+00> : vector<7x8xf32>
    %417 = tpu.matmul %416, %405, %cst_146 {dimension_numbers = #tpu.dot_dimension_numbers<[1], [0], [0], [1], [0, 0, 1, 1], [], []>} : vector<7x7xf32>, vector<7x8xf32>, vector<7x8xf32> -> vector<7x8xf32>
    %418 = vector.extract_strided_slice %372 {offsets = [0, 24], sizes = [7, 8], strides = [1, 1]} : vector<7x96xf32> to vector<7x8xf32>
    %419 = vector.extract_strided_slice %372 {offsets = [0, 56], sizes = [7, 8], strides = [1, 1]} : vector<7x96xf32> to vector<7x8xf32>
    %420 = vector.extract_strided_slice %372 {offsets = [0, 88], sizes = [7, 8], strides = [1, 1]} : vector<7x96xf32> to vector<7x8xf32>
    %cst_147 = arith.constant dense<0.000000e+00> : vector<7x7xf32>
    %421 = tpu.matmul %418, %419, %cst_147 {dimension_numbers = #tpu.dot_dimension_numbers<[1], [1], [0], [0], [0, 0, 1, 0], [], []>} : vector<7x8xf32>, vector<7x8xf32>, vector<7x7xf32> -> vector<7x7xf32>
    %cst_148 = arith.constant dense<0xFF800000> : vector<7xf32>
    %422 = vector.multi_reduction <maximumf>, %421, %cst_148 [1] : vector<7x7xf32> to vector<7xf32>
    %423 = vector.shape_cast %422 : vector<7xf32> to vector<7x1xf32>
    %424 = vector.broadcast %423 : vector<7x1xf32> to vector<7x7xf32>
    %425 = arith.subf %421, %424 : vector<7x7xf32>
    %426 = math.exp %425 : vector<7x7xf32>
    %cst_149 = arith.constant dense<0.000000e+00> : vector<7xf32>
    %427 = vector.multi_reduction <add>, %426, %cst_149 [1] : vector<7x7xf32> to vector<7xf32>
    %428 = vector.shape_cast %427 : vector<7xf32> to vector<7x1xf32>
    %429 = tpu.reciprocal %428 : vector<7x1xf32> -> vector<7x1xf32>
    %430 = vector.broadcast %429 : vector<7x1xf32> to vector<7x7xf32>
    %431 = arith.mulf %426, %430 : vector<7x7xf32>
    %cst_150 = arith.constant dense<0.000000e+00> : vector<7x8xf32>
    %432 = tpu.matmul %431, %420, %cst_150 {dimension_numbers = #tpu.dot_dimension_numbers<[1], [0], [0], [1], [0, 0, 1, 1], [], []>} : vector<7x7xf32>, vector<7x8xf32>, vector<7x8xf32> -> vector<7x8xf32>
    %433 = tpu.concatenate %387, %402, %417, %432 in 1 : vector<7x8xf32>, vector<7x8xf32>, vector<7x8xf32>, vector<7x8xf32> -> vector<7x32xf32>
    %cst_151 = arith.constant dense<0.000000e+00> : vector<7x32xf32>
    %434 = tpu.matmul %433, %19, %cst_151 {dimension_numbers = #tpu.dot_dimension_numbers<[1], [0], [0], [1], [0, 0, 1, 1], [], []>} : vector<7x32xf32>, vector<32x32xf32>, vector<7x32xf32> -> vector<7x32xf32>
    %435 = vector.broadcast %20 : vector<1x32xf32> to vector<7x32xf32>
    %436 = arith.addf %434, %435 : vector<7x32xf32>
    %437 = arith.addf %369, %436 : vector<7x32xf32>
    %cst_152 = arith.constant dense<0.000000e+00> : vector<7xf32>
    %438 = vector.multi_reduction <add>, %437, %cst_152 [1] : vector<7x32xf32> to vector<7xf32>
    %439 = vector.shape_cast %438 : vector<7xf32> to vector<7x1xf32>
    %cst_153 = arith.constant 3.200000e+01 : f32
    %440 = vector.broadcast %cst_153 : f32 to vector<7x1xf32>
    %441 = arith.divf %439, %440 : vector<7x1xf32>
    %442 = vector.broadcast %441 : vector<7x1xf32> to vector<7x32xf32>
    %443 = arith.subf %437, %442 : vector<7x32xf32>
    %444 = arith.mulf %443, %443 : vector<7x32xf32>
    %cst_154 = arith.constant dense<0.000000e+00> : vector<7xf32>
    %445 = vector.multi_reduction <add>, %444, %cst_154 [1] : vector<7x32xf32> to vector<7xf32>
    %446 = vector.shape_cast %445 : vector<7xf32> to vector<7x1xf32>
    %cst_155 = arith.constant 3.200000e+01 : f32
    %447 = vector.broadcast %cst_155 : f32 to vector<7x1xf32>
    %448 = arith.divf %446, %447 : vector<7x1xf32>
    %cst_156 = arith.constant 9.99999974E-6 : f32
    %449 = vector.broadcast %cst_156 : f32 to vector<7x1xf32>
    %450 = arith.addf %448, %449 : vector<7x1xf32>
    %451 = math.rsqrt %450 : vector<7x1xf32>
    %452 = vector.broadcast %451 : vector<7x1xf32> to vector<7x32xf32>
    %453 = arith.mulf %443, %452 : vector<7x32xf32>
    %454 = vector.broadcast %21 : vector<1x32xf32> to vector<7x32xf32>
    %455 = arith.mulf %453, %454 : vector<7x32xf32>
    %456 = vector.broadcast %22 : vector<1x32xf32> to vector<7x32xf32>
    %457 = arith.addf %455, %456 : vector<7x32xf32>
    %cst_157 = arith.constant dense<0.000000e+00> : vector<7x64xf32>
    %458 = tpu.matmul %457, %25, %cst_157 {dimension_numbers = #tpu.dot_dimension_numbers<[1], [0], [0], [1], [0, 0, 1, 1], [], []>} : vector<7x32xf32>, vector<32x64xf32>, vector<7x64xf32> -> vector<7x64xf32>
    %459 = vector.broadcast %26 : vector<1x64xf32> to vector<7x64xf32>
    %460 = arith.addf %458, %459 : vector<7x64xf32>
    %cst_158 = arith.constant 0.000000e+00 : f32
    %461 = vector.broadcast %cst_158 : f32 to vector<7x64xf32>
    %462 = arith.maximumf %460, %461 : vector<7x64xf32>
    %cst_159 = arith.constant dense<0.000000e+00> : vector<7x32xf32>
    %463 = tpu.matmul %462, %27, %cst_159 {dimension_numbers = #tpu.dot_dimension_numbers<[1], [0], [0], [1], [0, 0, 1, 1], [], []>} : vector<7x64xf32>, vector<64x32xf32>, vector<7x32xf32> -> vector<7x32xf32>
    %464 = vector.broadcast %28 : vector<1x32xf32> to vector<7x32xf32>
    %465 = arith.addf %463, %464 : vector<7x32xf32>
    %466 = arith.addf %457, %465 : vector<7x32xf32>
    %cst_160 = arith.constant dense<0.000000e+00> : vector<7xf32>
    %467 = vector.multi_reduction <add>, %466, %cst_160 [1] : vector<7x32xf32> to vector<7xf32>
    %468 = vector.shape_cast %467 : vector<7xf32> to vector<7x1xf32>
    %cst_161 = arith.constant 3.200000e+01 : f32
    %469 = vector.broadcast %cst_161 : f32 to vector<7x1xf32>
    %470 = arith.divf %468, %469 : vector<7x1xf32>
    %471 = vector.broadcast %470 : vector<7x1xf32> to vector<7x32xf32>
    %472 = arith.subf %466, %471 : vector<7x32xf32>
    %473 = arith.mulf %472, %472 : vector<7x32xf32>
    %cst_162 = arith.constant dense<0.000000e+00> : vector<7xf32>
    %474 = vector.multi_reduction <add>, %473, %cst_162 [1] : vector<7x32xf32> to vector<7xf32>
    %475 = vector.shape_cast %474 : vector<7xf32> to vector<7x1xf32>
    %cst_163 = arith.constant 3.200000e+01 : f32
    %476 = vector.broadcast %cst_163 : f32 to vector<7x1xf32>
    %477 = arith.divf %475, %476 : vector<7x1xf32>
    %cst_164 = arith.constant 9.99999974E-6 : f32
    %478 = vector.broadcast %cst_164 : f32 to vector<7x1xf32>
    %479 = arith.addf %477, %478 : vector<7x1xf32>
    %480 = math.rsqrt %479 : vector<7x1xf32>
    %481 = vector.broadcast %480 : vector<7x1xf32> to vector<7x32xf32>
    %482 = arith.mulf %472, %481 : vector<7x32xf32>
    %483 = vector.broadcast %23 : vector<1x32xf32> to vector<7x32xf32>
    %484 = arith.mulf %482, %483 : vector<7x32xf32>
    %485 = vector.broadcast %24 : vector<1x32xf32> to vector<7x32xf32>
    %486 = arith.addf %484, %485 : vector<7x32xf32>
    %cst_165 = arith.constant dense<0.000000e+00> : vector<7x96xf32>
    %487 = tpu.matmul %486, %39, %cst_165 {dimension_numbers = #tpu.dot_dimension_numbers<[1], [0], [0], [1], [0, 0, 1, 1], [], []>} : vector<7x32xf32>, vector<32x96xf32>, vector<7x96xf32> -> vector<7x96xf32>
    %488 = vector.broadcast %40 : vector<1x96xf32> to vector<7x96xf32>
    %489 = arith.addf %487, %488 : vector<7x96xf32>
    %490 = vector.extract_strided_slice %489 {offsets = [0, 0], sizes = [7, 8], strides = [1, 1]} : vector<7x96xf32> to vector<7x8xf32>
    %491 = vector.extract_strided_slice %489 {offsets = [0, 32], sizes = [7, 8], strides = [1, 1]} : vector<7x96xf32> to vector<7x8xf32>
    %492 = vector.extract_strided_slice %489 {offsets = [0, 64], sizes = [7, 8], strides = [1, 1]} : vector<7x96xf32> to vector<7x8xf32>
    %cst_166 = arith.constant dense<0.000000e+00> : vector<7x7xf32>
    %493 = tpu.matmul %490, %491, %cst_166 {dimension_numbers = #tpu.dot_dimension_numbers<[1], [1], [0], [0], [0, 0, 1, 0], [], []>} : vector<7x8xf32>, vector<7x8xf32>, vector<7x7xf32> -> vector<7x7xf32>
    %cst_167 = arith.constant dense<0xFF800000> : vector<7xf32>
    %494 = vector.multi_reduction <maximumf>, %493, %cst_167 [1] : vector<7x7xf32> to vector<7xf32>
    %495 = vector.shape_cast %494 : vector<7xf32> to vector<7x1xf32>
    %496 = vector.broadcast %495 : vector<7x1xf32> to vector<7x7xf32>
    %497 = arith.subf %493, %496 : vector<7x7xf32>
    %498 = math.exp %497 : vector<7x7xf32>
    %cst_168 = arith.constant dense<0.000000e+00> : vector<7xf32>
    %499 = vector.multi_reduction <add>, %498, %cst_168 [1] : vector<7x7xf32> to vector<7xf32>
    %500 = vector.shape_cast %499 : vector<7xf32> to vector<7x1xf32>
    %501 = tpu.reciprocal %500 : vector<7x1xf32> -> vector<7x1xf32>
    %502 = vector.broadcast %501 : vector<7x1xf32> to vector<7x7xf32>
    %503 = arith.mulf %498, %502 : vector<7x7xf32>
    %cst_169 = arith.constant dense<0.000000e+00> : vector<7x8xf32>
    %504 = tpu.matmul %503, %492, %cst_169 {dimension_numbers = #tpu.dot_dimension_numbers<[1], [0], [0], [1], [0, 0, 1, 1], [], []>} : vector<7x7xf32>, vector<7x8xf32>, vector<7x8xf32> -> vector<7x8xf32>
    %505 = vector.extract_strided_slice %489 {offsets = [0, 8], sizes = [7, 8], strides = [1, 1]} : vector<7x96xf32> to vector<7x8xf32>
    %506 = vector.extract_strided_slice %489 {offsets = [0, 40], sizes = [7, 8], strides = [1, 1]} : vector<7x96xf32> to vector<7x8xf32>
    %507 = vector.extract_strided_slice %489 {offsets = [0, 72], sizes = [7, 8], strides = [1, 1]} : vector<7x96xf32> to vector<7x8xf32>
    %cst_170 = arith.constant dense<0.000000e+00> : vector<7x7xf32>
    %508 = tpu.matmul %505, %506, %cst_170 {dimension_numbers = #tpu.dot_dimension_numbers<[1], [1], [0], [0], [0, 0, 1, 0], [], []>} : vector<7x8xf32>, vector<7x8xf32>, vector<7x7xf32> -> vector<7x7xf32>
    %cst_171 = arith.constant dense<0xFF800000> : vector<7xf32>
    %509 = vector.multi_reduction <maximumf>, %508, %cst_171 [1] : vector<7x7xf32> to vector<7xf32>
    %510 = vector.shape_cast %509 : vector<7xf32> to vector<7x1xf32>
    %511 = vector.broadcast %510 : vector<7x1xf32> to vector<7x7xf32>
    %512 = arith.subf %508, %511 : vector<7x7xf32>
    %513 = math.exp %512 : vector<7x7xf32>
    %cst_172 = arith.constant dense<0.000000e+00> : vector<7xf32>
    %514 = vector.multi_reduction <add>, %513, %cst_172 [1] : vector<7x7xf32> to vector<7xf32>
    %515 = vector.shape_cast %514 : vector<7xf32> to vector<7x1xf32>
    %516 = tpu.reciprocal %515 : vector<7x1xf32> -> vector<7x1xf32>
    %517 = vector.broadcast %516 : vector<7x1xf32> to vector<7x7xf32>
    %518 = arith.mulf %513, %517 : vector<7x7xf32>
    %cst_173 = arith.constant dense<0.000000e+00> : vector<7x8xf32>
    %519 = tpu.matmul %518, %507, %cst_173 {dimension_numbers = #tpu.dot_dimension_numbers<[1], [0], [0], [1], [0, 0, 1, 1], [], []>} : vector<7x7xf32>, vector<7x8xf32>, vector<7x8xf32> -> vector<7x8xf32>
    %520 = vector.extract_strided_slice %489 {offsets = [0, 16], sizes = [7, 8], strides = [1, 1]} : vector<7x96xf32> to vector<7x8xf32>
    %521 = vector.extract_strided_slice %489 {offsets = [0, 48], sizes = [7, 8], strides = [1, 1]} : vector<7x96xf32> to vector<7x8xf32>
    %522 = vector.extract_strided_slice %489 {offsets = [0, 80], sizes = [7, 8], strides = [1, 1]} : vector<7x96xf32> to vector<7x8xf32>
    %cst_174 = arith.constant dense<0.000000e+00> : vector<7x7xf32>
    %523 = tpu.matmul %520, %521, %cst_174 {dimension_numbers = #tpu.dot_dimension_numbers<[1], [1], [0], [0], [0, 0, 1, 0], [], []>} : vector<7x8xf32>, vector<7x8xf32>, vector<7x7xf32> -> vector<7x7xf32>
    %cst_175 = arith.constant dense<0xFF800000> : vector<7xf32>
    %524 = vector.multi_reduction <maximumf>, %523, %cst_175 [1] : vector<7x7xf32> to vector<7xf32>
    %525 = vector.shape_cast %524 : vector<7xf32> to vector<7x1xf32>
    %526 = vector.broadcast %525 : vector<7x1xf32> to vector<7x7xf32>
    %527 = arith.subf %523, %526 : vector<7x7xf32>
    %528 = math.exp %527 : vector<7x7xf32>
    %cst_176 = arith.constant dense<0.000000e+00> : vector<7xf32>
    %529 = vector.multi_reduction <add>, %528, %cst_176 [1] : vector<7x7xf32> to vector<7xf32>
    %530 = vector.shape_cast %529 : vector<7xf32> to vector<7x1xf32>
    %531 = tpu.reciprocal %530 : vector<7x1xf32> -> vector<7x1xf32>
    %532 = vector.broadcast %531 : vector<7x1xf32> to vector<7x7xf32>
    %533 = arith.mulf %528, %532 : vector<7x7xf32>
    %cst_177 = arith.constant dense<0.000000e+00> : vector<7x8xf32>
    %534 = tpu.matmul %533, %522, %cst_177 {dimension_numbers = #tpu.dot_dimension_numbers<[1], [0], [0], [1], [0, 0, 1, 1], [], []>} : vector<7x7xf32>, vector<7x8xf32>, vector<7x8xf32> -> vector<7x8xf32>
    %535 = vector.extract_strided_slice %489 {offsets = [0, 24], sizes = [7, 8], strides = [1, 1]} : vector<7x96xf32> to vector<7x8xf32>
    %536 = vector.extract_strided_slice %489 {offsets = [0, 56], sizes = [7, 8], strides = [1, 1]} : vector<7x96xf32> to vector<7x8xf32>
    %537 = vector.extract_strided_slice %489 {offsets = [0, 88], sizes = [7, 8], strides = [1, 1]} : vector<7x96xf32> to vector<7x8xf32>
    %cst_178 = arith.constant dense<0.000000e+00> : vector<7x7xf32>
    %538 = tpu.matmul %535, %536, %cst_178 {dimension_numbers = #tpu.dot_dimension_numbers<[1], [1], [0], [0], [0, 0, 1, 0], [], []>} : vector<7x8xf32>, vector<7x8xf32>, vector<7x7xf32> -> vector<7x7xf32>
    %cst_179 = arith.constant dense<0xFF800000> : vector<7xf32>
    %539 = vector.multi_reduction <maximumf>, %538, %cst_179 [1] : vector<7x7xf32> to vector<7xf32>
    %540 = vector.shape_cast %539 : vector<7xf32> to vector<7x1xf32>
    %541 = vector.broadcast %540 : vector<7x1xf32> to vector<7x7xf32>
    %542 = arith.subf %538, %541 : vector<7x7xf32>
    %543 = math.exp %542 : vector<7x7xf32>
    %cst_180 = arith.constant dense<0.000000e+00> : vector<7xf32>
    %544 = vector.multi_reduction <add>, %543, %cst_180 [1] : vector<7x7xf32> to vector<7xf32>
    %545 = vector.shape_cast %544 : vector<7xf32> to vector<7x1xf32>
    %546 = tpu.reciprocal %545 : vector<7x1xf32> -> vector<7x1xf32>
    %547 = vector.broadcast %546 : vector<7x1xf32> to vector<7x7xf32>
    %548 = arith.mulf %543, %547 : vector<7x7xf32>
    %cst_181 = arith.constant dense<0.000000e+00> : vector<7x8xf32>
    %549 = tpu.matmul %548, %537, %cst_181 {dimension_numbers = #tpu.dot_dimension_numbers<[1], [0], [0], [1], [0, 0, 1, 1], [], []>} : vector<7x7xf32>, vector<7x8xf32>, vector<7x8xf32> -> vector<7x8xf32>
    %550 = tpu.concatenate %504, %519, %534, %549 in 1 : vector<7x8xf32>, vector<7x8xf32>, vector<7x8xf32>, vector<7x8xf32> -> vector<7x32xf32>
    %cst_182 = arith.constant dense<0.000000e+00> : vector<7x32xf32>
    %551 = tpu.matmul %550, %41, %cst_182 {dimension_numbers = #tpu.dot_dimension_numbers<[1], [0], [0], [1], [0, 0, 1, 1], [], []>} : vector<7x32xf32>, vector<32x32xf32>, vector<7x32xf32> -> vector<7x32xf32>
    %552 = vector.broadcast %42 : vector<1x32xf32> to vector<7x32xf32>
    %553 = arith.addf %551, %552 : vector<7x32xf32>
    %554 = arith.addf %486, %553 : vector<7x32xf32>
    %cst_183 = arith.constant dense<0.000000e+00> : vector<7xf32>
    %555 = vector.multi_reduction <add>, %554, %cst_183 [1] : vector<7x32xf32> to vector<7xf32>
    %556 = vector.shape_cast %555 : vector<7xf32> to vector<7x1xf32>
    %cst_184 = arith.constant 3.200000e+01 : f32
    %557 = vector.broadcast %cst_184 : f32 to vector<7x1xf32>
    %558 = arith.divf %556, %557 : vector<7x1xf32>
    %559 = vector.broadcast %558 : vector<7x1xf32> to vector<7x32xf32>
    %560 = arith.subf %554, %559 : vector<7x32xf32>
    %561 = arith.mulf %560, %560 : vector<7x32xf32>
    %cst_185 = arith.constant dense<0.000000e+00> : vector<7xf32>
    %562 = vector.multi_reduction <add>, %561, %cst_185 [1] : vector<7x32xf32> to vector<7xf32>
    %563 = vector.shape_cast %562 : vector<7xf32> to vector<7x1xf32>
    %cst_186 = arith.constant 3.200000e+01 : f32
    %564 = vector.broadcast %cst_186 : f32 to vector<7x1xf32>
    %565 = arith.divf %563, %564 : vector<7x1xf32>
    %cst_187 = arith.constant 9.99999974E-6 : f32
    %566 = vector.broadcast %cst_187 : f32 to vector<7x1xf32>
    %567 = arith.addf %565, %566 : vector<7x1xf32>
    %568 = math.rsqrt %567 : vector<7x1xf32>
    %569 = vector.broadcast %568 : vector<7x1xf32> to vector<7x32xf32>
    %570 = arith.mulf %560, %569 : vector<7x32xf32>
    %571 = vector.broadcast %43 : vector<1x32xf32> to vector<7x32xf32>
    %572 = arith.mulf %570, %571 : vector<7x32xf32>
    %573 = vector.broadcast %44 : vector<1x32xf32> to vector<7x32xf32>
    %574 = arith.addf %572, %573 : vector<7x32xf32>
    %cst_188 = arith.constant dense<0.000000e+00> : vector<7x64xf32>
    %575 = tpu.matmul %574, %47, %cst_188 {dimension_numbers = #tpu.dot_dimension_numbers<[1], [0], [0], [1], [0, 0, 1, 1], [], []>} : vector<7x32xf32>, vector<32x64xf32>, vector<7x64xf32> -> vector<7x64xf32>
    %576 = vector.broadcast %48 : vector<1x64xf32> to vector<7x64xf32>
    %577 = arith.addf %575, %576 : vector<7x64xf32>
    %cst_189 = arith.constant 0.000000e+00 : f32
    %578 = vector.broadcast %cst_189 : f32 to vector<7x64xf32>
    %579 = arith.maximumf %577, %578 : vector<7x64xf32>
    %cst_190 = arith.constant dense<0.000000e+00> : vector<7x32xf32>
    %580 = tpu.matmul %579, %49, %cst_190 {dimension_numbers = #tpu.dot_dimension_numbers<[1], [0], [0], [1], [0, 0, 1, 1], [], []>} : vector<7x64xf32>, vector<64x32xf32>, vector<7x32xf32> -> vector<7x32xf32>
    %581 = vector.broadcast %50 : vector<1x32xf32> to vector<7x32xf32>
    %582 = arith.addf %580, %581 : vector<7x32xf32>
    %583 = arith.addf %574, %582 : vector<7x32xf32>
    %cst_191 = arith.constant dense<0.000000e+00> : vector<7xf32>
    %584 = vector.multi_reduction <add>, %583, %cst_191 [1] : vector<7x32xf32> to vector<7xf32>
    %585 = vector.shape_cast %584 : vector<7xf32> to vector<7x1xf32>
    %cst_192 = arith.constant 3.200000e+01 : f32
    %586 = vector.broadcast %cst_192 : f32 to vector<7x1xf32>
    %587 = arith.divf %585, %586 : vector<7x1xf32>
    %588 = vector.broadcast %587 : vector<7x1xf32> to vector<7x32xf32>
    %589 = arith.subf %583, %588 : vector<7x32xf32>
    %590 = arith.mulf %589, %589 : vector<7x32xf32>
    %cst_193 = arith.constant dense<0.000000e+00> : vector<7xf32>
    %591 = vector.multi_reduction <add>, %590, %cst_193 [1] : vector<7x32xf32> to vector<7xf32>
    %592 = vector.shape_cast %591 : vector<7xf32> to vector<7x1xf32>
    %cst_194 = arith.constant 3.200000e+01 : f32
    %593 = vector.broadcast %cst_194 : f32 to vector<7x1xf32>
    %594 = arith.divf %592, %593 : vector<7x1xf32>
    %cst_195 = arith.constant 9.99999974E-6 : f32
    %595 = vector.broadcast %cst_195 : f32 to vector<7x1xf32>
    %596 = arith.addf %594, %595 : vector<7x1xf32>
    %597 = math.rsqrt %596 : vector<7x1xf32>
    %598 = vector.broadcast %597 : vector<7x1xf32> to vector<7x32xf32>
    %599 = arith.mulf %589, %598 : vector<7x32xf32>
    %600 = vector.broadcast %45 : vector<1x32xf32> to vector<7x32xf32>
    %601 = arith.mulf %599, %600 : vector<7x32xf32>
    %602 = vector.broadcast %46 : vector<1x32xf32> to vector<7x32xf32>
    %603 = arith.addf %601, %602 : vector<7x32xf32>
    %604 = vector.extract_strided_slice %603 {offsets = [0, 0], sizes = [4, 32], strides = [1, 1]} : vector<7x32xf32> to vector<4x32xf32>
    %cst_196 = arith.constant dense<0.000000e+00> : vector<4xf32>
    %605 = vector.multi_reduction <add>, %604, %cst_196 [1] : vector<4x32xf32> to vector<4xf32>
    %606 = vector.shape_cast %605 : vector<4xf32> to vector<4x1xf32>
    %cst_197 = arith.constant 3.200000e+01 : f32
    %607 = vector.broadcast %cst_197 : f32 to vector<4x1xf32>
    %608 = arith.divf %606, %607 : vector<4x1xf32>
    %609 = vector.broadcast %608 : vector<4x1xf32> to vector<4x32xf32>
    %610 = arith.subf %604, %609 : vector<4x32xf32>
    %611 = arith.mulf %610, %610 : vector<4x32xf32>
    %cst_198 = arith.constant dense<0.000000e+00> : vector<4xf32>
    %612 = vector.multi_reduction <add>, %611, %cst_198 [1] : vector<4x32xf32> to vector<4xf32>
    %613 = vector.shape_cast %612 : vector<4xf32> to vector<4x1xf32>
    %cst_199 = arith.constant 3.200000e+01 : f32
    %614 = vector.broadcast %cst_199 : f32 to vector<4x1xf32>
    %615 = arith.divf %613, %614 : vector<4x1xf32>
    %cst_200 = arith.constant 9.99999974E-6 : f32
    %616 = vector.broadcast %cst_200 : f32 to vector<4x1xf32>
    %617 = arith.addf %615, %616 : vector<4x1xf32>
    %618 = math.rsqrt %617 : vector<4x1xf32>
    %619 = vector.broadcast %618 : vector<4x1xf32> to vector<4x32xf32>
    %620 = arith.mulf %610, %619 : vector<4x32xf32>
    %621 = vector.broadcast %3 : vector<1x32xf32> to vector<4x32xf32>
    %622 = arith.mulf %620, %621 : vector<4x32xf32>
    %623 = vector.broadcast %4 : vector<1x32xf32> to vector<4x32xf32>
    %624 = arith.addf %622, %623 : vector<4x32xf32>
    %cst_201 = arith.constant dense<0.000000e+00> : vector<8x4xf32>
    %625 = tpu.matmul %5, %624, %cst_201 {dimension_numbers = #tpu.dot_dimension_numbers<[0], [1], [1], [0], [0, 1, 1, 0], [], []>} : vector<32x8xf32>, vector<4x32xf32>, vector<8x4xf32> -> vector<8x4xf32>
    %626 = vector.broadcast %6 : vector<8x1xf32> to vector<8x4xf32>
    %627 = arith.addf %625, %626 : vector<8x4xf32>
    %628 = vector.broadcast %360 : vector<1x4xf32> to vector<8x4xf32>
    %629 = arith.mulf %627, %628 : vector<8x4xf32>
    %630 = vector.broadcast %350 : vector<1x4xf32> to vector<8x4xf32>
    %631 = arith.addf %629, %630 : vector<8x4xf32>
    %c1_202 = arith.constant 1 : index
    %c0_203 = arith.constant 0 : index
    %c0_204 = arith.constant 0 : index
    %632 = vector.load %arg12[%c1_202, %c0_203, %c0_204] : memref<2x8x4xf32, #tpu.memory_space<vmem>>, vector<1x8x4xf32>
    %633 = vector.shape_cast %632 : vector<1x8x4xf32> to vector<8x4xf32>
    %634 = vector.shape_cast %631 : vector<8x4xf32> to vector<1x8x4xf32>
    tpu.vector_store %arg12[%c1_202, %c0_203, %c0_204], %634 {strides = array<i32>} : memref<2x8x4xf32, #tpu.memory_space<vmem>>, vector<1x8x4xf32>,
    return
  }
  func.func @transform_0(%arg0: i32) -> (i32, i32, i32) {
    %c0_i32 = arith.constant 0 : i32
    %c0_i32_0 = arith.constant 0 : i32
    %c0_i32_1 = arith.constant 0 : i32
    return %arg0, %c0_i32, %c0_i32_0 : i32, i32, i32
  }
  func.func @transform_1(%arg0: i32) -> (i32, i32, i32) {
    %c0_i32 = arith.constant 0 : i32
    %c0_i32_0 = arith.constant 0 : i32
    %c0_i32_1 = arith.constant 0 : i32
    return %arg0, %c0_i32, %c0_i32_0 : i32, i32, i32
  }
  func.func @transform_2(%arg0: i32) -> (i32, i32) {
    %c0_i32 = arith.constant 0 : i32
    %c0_i32_0 = arith.constant 0 : i32
    %c0_i32_1 = arith.constant 0 : i32
    return %c0_i32, %c0_i32_0 : i32, i32
  }
  func.func @transform_3(%arg0: i32) -> (i32, i32, i32) {
    %c0_i32 = arith.constant 0 : i32
    %c0_i32_0 = arith.constant 0 : i32
    %c0_i32_1 = arith.constant 0 : i32
    %c0_i32_2 = arith.constant 0 : i32
    return %c0_i32, %c0_i32_0, %c0_i32_1 : i32, i32, i32
  }
  func.func @transform_4(%arg0: i32) -> (i32, i32, i32) {
    %c0_i32 = arith.constant 0 : i32
    %c0_i32_0 = arith.constant 0 : i32
    %c0_i32_1 = arith.constant 0 : i32
    %c0_i32_2 = arith.constant 0 : i32
    return %c0_i32, %c0_i32_0, %c0_i32_1 : i32, i32, i32
  }
  func.func @transform_5(%arg0: i32) -> (i32, i32, i32) {
    %c0_i32 = arith.constant 0 : i32
    %c0_i32_0 = arith.constant 0 : i32
    %c0_i32_1 = arith.constant 0 : i32
    %c0_i32_2 = arith.constant 0 : i32
    return %c0_i32, %c0_i32_0, %c0_i32_1 : i32, i32, i32
  }
  func.func @transform_6(%arg0: i32) -> (i32, i32, i32) {
    %c0_i32 = arith.constant 0 : i32
    %c0_i32_0 = arith.constant 0 : i32
    %c0_i32_1 = arith.constant 0 : i32
    %c0_i32_2 = arith.constant 0 : i32
    return %c0_i32, %c0_i32_0, %c0_i32_1 : i32, i32, i32
  }
  func.func @transform_7(%arg0: i32) -> (i32, i32, i32) {
    %c0_i32 = arith.constant 0 : i32
    %c0_i32_0 = arith.constant 0 : i32
    %c0_i32_1 = arith.constant 0 : i32
    %c0_i32_2 = arith.constant 0 : i32
    return %c0_i32, %c0_i32_0, %c0_i32_1 : i32, i32, i32
  }
  func.func @transform_8(%arg0: i32) -> (i32, i32) {
    %c0_i32 = arith.constant 0 : i32
    %c0_i32_0 = arith.constant 0 : i32
    %c0_i32_1 = arith.constant 0 : i32
    return %c0_i32, %c0_i32_0 : i32, i32
  }
  func.func @transform_9(%arg0: i32) -> (i32, i32) {
    %c0_i32 = arith.constant 0 : i32
    %c0_i32_0 = arith.constant 0 : i32
    %c0_i32_1 = arith.constant 0 : i32
    return %c0_i32, %c0_i32_0 : i32, i32
  }
  func.func @transform_10(%arg0: i32) -> (i32, i32) {
    %c0_i32 = arith.constant 0 : i32
    %c0_i32_0 = arith.constant 0 : i32
    %c0_i32_1 = arith.constant 0 : i32
    return %c0_i32, %c0_i32_0 : i32, i32
  }
  func.func @transform_11(%arg0: i32) -> (i32, i32, i32) {
    %c0_i32 = arith.constant 0 : i32
    %c0_i32_0 = arith.constant 0 : i32
    %c0_i32_1 = arith.constant 0 : i32
    return %arg0, %c0_i32, %c0_i32_0 : i32, i32, i32
  }
}

</mosaic_0001>

<bundles_post_ra>
// kernel: itransformer_forecast.1
= control target key start
LH: loop header
LB: loop body
LE: loop exit
PB: predicated region body
PF: predicated region fallthrough
CT: control target
= control target key end

     0   :  { %v5671_v1 = vmov 0.0|0.0   ;;  %vm5672_vm0 = vmmov 0   ;;  %v5673_v2 = vmov 0.0   ;;  %s6669_s19 = smov 4   ;;  %vm107_vm1 = vcmask 31744   ;;  %s5675_s24 = smov 96   ;;  %s6657_s1 = inlined_call_operand.vmem [shape: f32[2,16,3], index: 1, kind: input, shape index: {}]   ;;  %s6658_s2 = inlined_call_operand.vmem [shape: f32[17,32], index: 2, kind: input, shape index: {}]   ;;  %s6659_s0 = inlined_call_operand.vmem [shape: f32[2,16,4], index: 0, kind: input, shape index: {}]   ;;  %s6660_s3 = inlined_call_operand.vmem [shape: f32[2,33,96], index: 3, kind: input, shape index: {}]   ;;  %s6661_s4 = inlined_call_operand.vmem [shape: f32[2,33,32], index: 4, kind: input, shape index: {}]   ;;  %s6662_s6 = inlined_call_operand.vmem [shape: f32[2,33,64], index: 6, kind: input, shape index: {}]   ;;  %s6663_s7 = inlined_call_operand.vmem [shape: f32[2,65,32], index: 7, kind: input, shape index: {}]   ;;  %s6664_s5 = inlined_call_operand.vmem [shape: f32[2,4,32], index: 5, kind: input, shape index: {}]   ;;  %s6665_s9 = inlined_call_operand.vmem [shape: f32[32,8], index: 9, kind: input, shape index: {}]   ;;  %s6666_s8 = inlined_call_operand.vmem [shape: f32[2,32], index: 8, kind: input, shape index: {}]   ;;  %s6667_s10 = inlined_call_operand.vmem [shape: f32[8,1], index: 10, kind: input, shape index: {}]   ;;  %s6668_s11 = inlined_call_operand.vmem [shape: f32[2,8,4], index: 11, kind: output, shape index: {}]  }
   0x1   :  { %v105_v0 = vld [vmem:[%s6657_s1] sm:$0xff]  ;;  %5430 = vmatprep.subr.bf16.mxu0 %v5671_v1  ;;  %5042 = vmatprep.mubr.msk.f32.mxu0 %vm5672_vm0, %v5673_v2  ;;  %v39_v4 = vld [vmem:[%s6658_s2 + $0x8] sm:$0xff]  ;;  %vm190_vm2 = vcmask 130048   ;;  %v50_v45 = vld [vmem:[%s6660_s3 + $0x10] sm:$0xff]  ;;  %vm268_vm3 = vcmask 261120   ;;  %vm345_vm4 = vcmask 64512  }
   0x2   :  { %146 = vrot.lane.b32.xlu0 %v105_v0, %s6669_s19  ;;  %v38_v3 = vld [vmem:[%s6658_s2] sm:$0xff]  ;;  %5433 = vmatprep.subr.bf16.mxu1 %v5671_v1  ;;  %v106_v5 = vld [vmem:[%s6657_s1 + $0x8] sm:$0xff]  ;;  %v51_v46 = vld [vmem:[%s6660_s3 + $0x18] sm:$0xff]  ;;  %vm420_vm5 = vcmask 55296   ;;  %s5676_s25 = smov 88   ;;  %s5677_s26 = smov 120  }
   0x3   :  { %v5767_v6 = vpack.c.bf16 %v39_v4, %v38_v3  ;;  %5053 = vmatprep.mubr.msk.f32.mxu1 %vm5672_vm0, %v5673_v2  ;;  %v103_v7 = vld [vmem:[%s6659_s0] sm:$0xff]  ;;  %v104_v8 = vld [vmem:[%s6659_s0 + $0x8] sm:$0xff]  ;;  %v5816_v47 = vpack.c.bf16 %v51_v46, %v50_v45  ;;  %v4766_v48 = vld [vmem:[%s6658_s2 + $0x10] ss:$0 sm:$0xff]  ;;  %s5678_s27 = smov 112   ;;  %s5679_s28 = smov 104  }
   0x4   :  { %v108_v9 = vsel %vm107_vm1, %v103_v7, 0.0  ;;  %v109_v10 = vsel %vm107_vm1, %v104_v8, 0.0  ;;  %v48_v40 = vld [vmem:[%s6660_s3] sm:$0xff]  ;;  %v49_v41 = vld [vmem:[%s6660_s3 + $0x8] sm:$0xff]  ;;  %s5680_s29 = smov 64   ;;  %s5681_s30 = smov 80  }
   0x5   :  { %5432 = vmatpush3.bf16.msra.mxu0 %v5767_v6  ;;  %v110_v11 = vadd.f32 %v109_v10, %v108_v9  ;;  %v5803_v43 = vpack.c.bf16 %v49_v41, %v48_v40  ;;  %v4768_v52 = vld [vmem:[%s6660_s3 + $0x20] ss:$0 sm:$0xff]  ;;  %s5682_s12 = smov 72   ;;  %vm438_vm6 = vcmask 1046528   ;;  %vm434_vm7 = vcmask 56320   ;;  %s6681_s13 = smov 48  }
   0x6   :  { %148 = vrot.lane.b32.xlu0 %v106_v5, %s6669_s19  ;;  %5056 = vmatprep.subr.mxu0 %v5673_v2  ;;  %s6677_s14 = smov 56   ;;  %s6679_s15 = smov 40   ;;  %vm1023_vm8 = vcmask 195584   ;;  %vm1103_vm9 = vcmask 260096   ;;  %vm1210_vm10 = vcmask 523264   ;;  %vm2343_vm11 = vcmask 257024  }
   0x7   :  { %v111_v12 = vrot.slane %v110_v11, 4  ;;  %5435 = vmatpush3.bf16.msra.mxu1 %v5803_v43  ;;  %s6675_s16 = smov 8   ;;  %s6673_s17 = smov 16  }
   0x8   :  { %5436 = vmatprep.subr.bf16.mxu1 %v5671_v1  ;;  %s6671_s18 = smov 24   ;;  %s6683_s21 = smov 8  }
   0x9   :  { %v112_v13 = vadd.f32 %v111_v12, %v110_v11  ;;  %s6684_s22 = smov 16   ;;  %s6685_s23 = smov 24  }
   0xb   :  { %v113_v14 = vrot.slane %v112_v13, 2  ;;  %5438 = vmatpush3.bf16.msra.mxu1 %v5816_v47 }
   0xc   :  { %5076 = vmatprep.subr.mxu1 %v5673_v2 }
   0xd   :  { %v114_v15 = vadd.f32 %v113_v14, %v112_v13 }
   0xf   :  { %v115_v16 = vrot.slane %v114_v15, 1 }
  0x11   :  { %v116_v17 = vadd.f32 %v115_v16, %v114_v15 }
  0x13   :  { %v5782_v18 = vmul.f32 0.0625, %v116_v17 }
  0x15   :  { %v119_v19 = vsub.f32 %v103_v7, %v5782_v18  ;;  %v120_v20 = vsub.f32 %v104_v8, %v5782_v18 }
  0x17   :  { %v121_v21 = vmul.f32 %v119_v19, %v119_v19  ;;  %v122_v22 = vmul.f32 %v120_v20, %v120_v20 }
  0x19   :  { %v123_v23 = vsel %vm107_vm1, %v121_v21, 0.0  ;;  %v124_v24 = vsel %vm107_vm1, %v122_v22, 0.0 }
  0x1a   :  { %v125_v25 = vadd.f32 %v124_v24, %v123_v23 }
  0x1c   :  { %v126_v26 = vrot.slane %v125_v25, 4 }
  0x1e   :  { %v127_v27 = vadd.f32 %v126_v26, %v125_v25 }
  0x20   :  { %v128_v28 = vrot.slane %v127_v27, 2 }
  0x22   :  { %v129_v29 = vadd.f32 %v128_v28, %v127_v27 }
  0x24   :  { %v130_v30 = vrot.slane %v129_v29, 1 }
  0x26   :  { %v131_v31 = vadd.f32 %v130_v30, %v129_v29 }
  0x28   :  { %v132_v32 = vmul.f32 0.0625, %v131_v31 }
  0x2a   :  { %v5788_v33 = vadd.f32 1e-05, %v132_v32 }
  0x2c   :  { %5576 = vrsqrt.f32 %v5788_v33  ;;  %vm136_vm12 = vcmp.eq.f32.partialorder %v5788_v33, inf  ;;  %vm138_vm13 = vcmp.eq.f32.partialorder %v5788_v33, 0.0 }
  0x36   :  { %v5791_v34 = vpop.eup %5576 }
  0x37   :  { %v142_v35 = vmul.f32 %v5791_v34, %v119_v19  ;;  %v143_v38 = vmul.f32 %v5791_v34, %v120_v20 }
  0x74   :  { %v147_v36 = vpop.permute.xlu0 %146 }
  0x75   :  { %v152_v37 = vsel %vm107_vm1, %v142_v35, %v147_v36 }
  0x76   :  { %158 = vxpose.xlu1.b32.start [1/2] (short) (narrow) %v152_v37, 8 }
  0x78   :  { %v149_v39 = vpop.permute.xlu0 %148 }
  0x79   :  { %v153_v42 = vsel %vm107_vm1, %v143_v38, %v149_v39 }
  0x7a   :  { %159 = vxpose.xlu1.b32.end [2/2] (short) (narrow) %v153_v42, 8 }
  0xf6   :  { %v174_v44 = vpop.trf.xlu1 }
  0xf7   :  { %5043 = vmatmul.mubr.msk.f32.vlgmr.msra.gmra.mrb[0].mxu0 %vm190_vm2, %v174_v44 }
  0xf8   :  { %5058 = vmatprep.mubr.msk.f32.mxu0 %vm5672_vm0, %v5673_v2 }
 0x1ca   :  { %v260_v49 = vpop.f32.mrb[0].mxu0 }
 0x1cb   :  { %v5823_v50 = vadd.f32 %v4766_v48, %v260_v49  ;;  %v5044_v51 = vpop.f32.mrb[1].mxu0 }
 0x1cd   :  { %5054 = vmatmul.mubr.msk.f32.vlgmr.msra.gmra.mrb[0].mxu1 %vm268_vm3, %v5823_v50 }
 0x1ce   :  { %5078 = vmatprep.mubr.msk.f32.mxu1 %vm5672_vm0, %v5673_v2 }
 0x2a0   :  { %v338_v53 = vpop.f32.mrb[0].mxu1 }
 0x2a1   :  { %v5832_v54 = vadd.f32 %v4768_v52, %v338_v53  ;;  %v5055_v55 = vpop.f32.mrb[1].mxu1 }
 0x2a3   :  { %343 = vrot.lane.b32.xlu0 %v5832_v54, %s5675_s24 }
 0x315   :  { %v344_v56 = vpop.permute.xlu0 %343 }
 0x316   :  { %5057 = vmatpush3.xpose.msk.msra.mxu0 %vm345_vm4, %v344_v56 }
 0x317   :  { %5061 = vmatprep.subr.mxu0 %v5673_v2 }
 0x319   :  { %5059 = vmatmul.mubr.msk.f32.vlgmr.msra.gmra.mrb[2].mxu0 %vm345_vm4, %v5832_v54 }
 0x31a   :  { %5063 = vmatprep.mubr.msk.f32.mxu0 %vm5672_vm0, %v5673_v2 }
 0x3ec   :  { %v416_v57 = vpop.f32.mrb[2].mxu0 }
 0x3ed   :  { %v5060_v58 = vpop.f32.mrb[3].mxu0  ;;  %v421_v59 = vsel %vm420_vm5, %v416_v57, -inf }
 0x3ee   :  { %422 = vmax.xlane.f32.xlu1 %v421_v59  ;;  %v53_v58 = vld [vmem:[%s6661_s4] sm:$0xff]  ;;  %v54_v59 = vld [vmem:[%s6661_s4 + $0x8] sm:$0xff] }
 0x3ff   :  { %513 = vrot.lane.b32.xlu1 %v5832_v54, %s5676_s25 }
 0x403   :  { %511 = vrot.lane.b32.xlu1 %v5832_v54, %s5677_s26 }
 0x407   :  { %677 = vrot.lane.b32.xlu1 %v5832_v54, %s5678_s27 }
 0x40b   :  { %843 = vrot.lane.b32.xlu1 %v5832_v54, %s5679_s28 }
 0x47b   :  { %v423_v60 = vpop.xlane.xlu1 %422 }
 0x47c   :  { %v424_v61 = vsub.f32 %v416_v57, %v423_v60  ;;  %v5913_v60 = vpack.c.bf16 %v54_v59, %v53_v58 }
 0x47e   :  { %v425_v62 = vmul.f32 1.442695, %v424_v61  ;;  %v55_v61 = vld [vmem:[%s6661_s4 + $0x10] sm:$0xff] }
 0x47f   :  { %v514_v3 = vpop.permute.xlu1 %513 }
 0x480   :  { %5578 = vpow2.f32 %v425_v62  ;;  %v56_v62 = vld [vmem:[%s6661_s4 + $0x18] sm:$0xff] }
 0x483   :  { %v512_v5 = vpop.permute.xlu1 %511 }
 0x487   :  { %v678_v9 = vpop.permute.xlu1 %677 }
 0x48a   :  { %v5579_v63 = vpop.eup %5578 }
 0x48b   :  { %v427_v0 = vsel %vm420_vm5, %v5579_v63, 0.0  ;;  %v844_v13 = vpop.permute.xlu1 %843 }
 0x48c   :  { %428 = vadd.xlane.f32.xlu0 %v427_v0 }
 0x4a2   :  { %432 = vrot.lane.b32.xlu0 %v5832_v54, %s5680_s29 }
 0x4a6   :  { %679 = vrot.lane.b32.xlu0 %v5832_v54, %s5681_s30 }
 0x4aa   :  { %845 = vrot.lane.b32.xlu0 %v5832_v54, %s5682_s12 }
 0x519   :  { %v429_v4 = vpop.xlane.xlu0 %428 }
 0x51a   :  { %5580 = vrcp.f32 %v429_v4 }
 0x51d   :  { %v433_v7 = vpop.permute.xlu0 %432 }
 0x51e   :  { %5062 = vmatpush3.msk.msra.mxu0 %vm438_vm6, %v433_v7 }
 0x51f   :  { %5066 = vmatprep.subr.mxu0 %v5673_v2 }
 0x521   :  { %v680_v8 = vpop.permute.xlu0 %679 }
 0x522   :  { %5077 = vmatpush3.xpose.msk.msra.mxu1 %vm345_vm4, %v680_v8 }
 0x523   :  { %5086 = vmatprep.subr.mxu1 %v5673_v2 }
 0x524   :  { %v5581_v10 = vpop.eup %5580 }
 0x525   :  { %v846_v11 = vpop.permute.xlu0 %845  ;;  %5079 = vmatmul.mubr.msk.f32.vlgmr.msra.gmra.mrb[2].mxu1 %vm345_vm4, %v678_v9  ;;  %v431_v12 = vmul.f32 %v5581_v10, %v5579_v63  ;;  %v5923_v63 = vpack.c.bf16 %v56_v62, %v55_v61  ;;  %v69_v61 = vld [vmem:[%s6663_s7 + $0x30] sm:$0xff]  ;;  %v70_v62 = vld [vmem:[%s6663_s7 + $0x38] sm:$0xff] }
 0x526   :  { %5087 = vmatpush3.xpose.msk.msra.mxu1 %vm345_vm4, %v846_v11  ;;  %5088 = vmatprep.mubr.msk.f32.mxu1 %vm5672_vm0, %v5673_v2 }
 0x527   :  { %5064 = vmatmul.mubr.msk.f32.vlgmr.msra.gmra.mrb[4].mxu0 %vm434_vm7, %v431_v12  ;;  %5439 = vmatprep.subr.bf16.mxu1 %v5671_v1 }
 0x528   :  { %5067 = vmatpush3.xpose.msk.msra.mxu0 %vm345_vm4, %v514_v3  ;;  %5068 = vmatprep.mubr.msk.f32.mxu0 %vm5672_vm0, %v5673_v2 }
 0x529   :  { %5089 = vmatmul.mubr.msk.f32.vlgmr.msra.gmra.mrb[4].mxu1 %vm345_vm4, %v844_v13  ;;  %5071 = vmatprep.subr.mxu0 %v5673_v2 }
 0x52a   :  { %5104 = vmatprep.mubr.msk.f32.mxu1 %vm5672_vm0, %v5673_v2  ;;  %5441 = vmatpush3.bf16.msra.mxu1 %v5913_v60 }
 0x52b   :  { %5069 = vmatmul.mubr.msk.f32.vlgmr.msra.gmra.mrb[6].mxu0 %vm345_vm4, %v512_v5  ;;  %5442 = vmatprep.subr.bf16.mxu1 %v5671_v1 }
 0x52c   :  { %5073 = vmatprep.mubr.msk.f32.mxu0 %vm5672_vm0, %v5673_v2 }
 0x52e   :  { %5444 = vmatpush3.bf16.msra.mxu1 %v5923_v63 }
 0x52f   :  { %5451 = vmatprep.subr.bf16.mxu1 %v5671_v1 }
 0x5f8   :  { %v751_v14 = vpop.f32.mrb[2].mxu1 }
 0x5f9   :  { %v5080_v15 = vpop.f32.mrb[3].mxu1  ;;  %v755_v16 = vsel %vm420_vm5, %v751_v14, -inf }
 0x5fa   :  { %756 = vmax.xlane.f32.xlu1 %v755_v16  ;;  %v5879_v17 = vpop.f32.mrb[4].mxu0  ;;  %v4786_v15 = vld [vmem:[%s6661_s4 + $0x20] ss:$0 sm:$0xff] }
 0x5fb   :  { %v5065_v19 = vpop.f32.mrb[5].mxu0 }
 0x5fc   :  { %v917_v20 = vpop.f32.mrb[4].mxu1 }
 0x5fd   :  { %v5090_v21 = vpop.f32.mrb[5].mxu1  ;;  %v921_v25 = vsel %vm420_vm5, %v917_v20, -inf }
 0x5fe   :  { %v585_v22 = vpop.f32.mrb[6].mxu0 }
 0x5ff   :  { %v5070_v23 = vpop.f32.mrb[7].mxu0  ;;  %v589_v24 = vsel %vm420_vm5, %v585_v22, -inf }
 0x600   :  { %590 = vmax.xlane.f32.xlu0 %v589_v24 }
 0x604   :  { %922 = vmax.xlane.f32.xlu0 %v921_v25 }
 0x687   :  { %v757_v26 = vpop.xlane.xlu1 %756 }
 0x688   :  { %v758_v27 = vsub.f32 %v751_v14, %v757_v26 }
 0x68a   :  { %v759_v28 = vmul.f32 1.442695, %v758_v27  ;;  %v58_v27 = vld [vmem:[%s6662_s6] sm:$0xff] }
 0x68c   :  { %5582 = vpow2.f32 %v759_v28  ;;  %v59_v28 = vld [vmem:[%s6662_s6 + $0x8] sm:$0xff] }
 0x68d   :  { %v591_v29 = vpop.xlane.xlu0 %590 }
 0x68e   :  { %v592_v30 = vsub.f32 %v585_v22, %v591_v29  ;;  %v5949_v29 = vpack.c.bf16 %v59_v28, %v58_v27 }
 0x690   :  { %v593_v31 = vmul.f32 1.442695, %v592_v30  ;;  %v61_v30 = vld [vmem:[%s6662_s6 + $0x18] sm:$0xff] }
 0x691   :  { %v923_v32 = vpop.xlane.xlu0 %922 }
 0x692   :  { %5584 = vpow2.f32 %v593_v31  ;;  %v924_v35 = vsub.f32 %v917_v20, %v923_v32  ;;  %v63_v32 = vld [vmem:[%s6663_s7] sm:$0xff] }
 0x694   :  { %v925_v36 = vmul.f32 1.442695, %v924_v35  ;;  %v64_v35 = vld [vmem:[%s6663_s7 + $0x8] sm:$0xff] }
 0x696   :  { %v5583_v37 = vpop.eup %5582  ;;  %5586 = vpow2.f32 %v925_v36  ;;  %v65_v36 = vld [vmem:[%s6663_s7 + $0x10] sm:$0xff] }
 0x697   :  { %v761_v38 = vsel %vm420_vm5, %v5583_v37, 0.0 }
 0x698   :  { %762 = vadd.xlane.f32.xlu0 %v761_v38  ;;  %v66_v38 = vld [vmem:[%s6663_s7 + $0x18] sm:$0xff] }
 0x69c   :  { %v5585_v39 = vpop.eup %5584 }
 0x69d   :  { %v595_v40 = vsel %vm420_vm5, %v5585_v39, 0.0 }
 0x69e   :  { %596 = vadd.xlane.f32.xlu0 %v595_v40  ;;  %v67_v40 = vld [vmem:[%s6663_s7 + $0x20] sm:$0xff] }
 0x6a0   :  { %v5587_v41 = vpop.eup %5586 }
 0x6a1   :  { %v927_v42 = vsel %vm420_vm5, %v5587_v41, 0.0 }
 0x6a2   :  { %928 = vadd.xlane.f32.xlu1 %v927_v42 }
 0x6b3   :  { %766 = vrot.lane.b32.xlu1 %v5832_v54, %s6681_s13 }
 0x6b4   :  { %600 = vrot.lane.b32.xlu0 %v5832_v54, %s6677_s14 }
 0x6b7   :  { %932 = vrot.lane.b32.xlu1 %v5832_v54, %s6679_s15 }
 0x725   :  { %v763_v44 = vpop.xlane.xlu0 %762 }
 0x72b   :  { %v597_v45 = vpop.xlane.xlu0 %596 }
 0x72c   :  { %5588 = vrcp.f32 %v597_v45 }
 0x72d   :  { %5590 = vrcp.f32 %v763_v44 }
 0x72f   :  { %v929_v46 = vpop.xlane.xlu1 %928  ;;  %v601_v48 = vpop.permute.xlu0 %600 }
 0x730   :  { %5072 = vmatpush3.msk.msra.mxu0 %vm438_vm6, %v601_v48  ;;  %5592 = vrcp.f32 %v929_v46  ;;  %v1118_v46 = vlaneseq }
 0x731   :  { %5081 = vmatprep.subr.mxu0 %v5673_v2 }
 0x733   :  { %v767_v51 = vpop.permute.xlu1 %766 }
 0x736   :  { %v5589_v49 = vpop.eup %5588 }
 0x737   :  { %v599_v52 = vmul.f32 %v5589_v49, %v5585_v39  ;;  %v5591_v53 = vpop.eup %5590  ;;  %v933_v56 = vpop.permute.xlu1 %932  ;;  %v5978_v39 = vpack.c.bf16 %v66_v38, %v65_v36  ;;  %v5993_v49 = vshrl.u32 %v1118_v46, 7 }
 0x738   :  { %v765_v54 = vmul.f32 %v5591_v53, %v5583_v37  ;;  %v5972_v37 = vpack.c.bf16 %v64_v35, %v63_v32 }
 0x739   :  { %5074 = vmatmul.mubr.msk.f32.vlgmr.msra.gmra.mrb[8].mxu0 %vm434_vm7, %v599_v52  ;;  %v72_v52 = vld [vmem:[%s6664_s5] sm:$0xf]  ;;  %v1125_v53 = vsub.s32 1, %v5993_v49  ;;  %v1305_v32 = vsub.s32 3, %v5993_v49 }
 0x73a   :  { %5082 = vmatpush3.msk.msra.mxu0 %vm438_vm6, %v767_v51  ;;  %5083 = vmatprep.mubr.msk.f32.mxu0 %vm5672_vm0, %v5673_v2  ;;  %v5593_v55 = vpop.eup %5592  ;;  %v1120_v51 = vsub.s32 0, %v5993_v49 }
 0x73b   :  { %5091 = vmatprep.subr.mxu0 %v5673_v2  ;;  %v931_v57 = vmul.f32 %v5593_v55, %v5587_v41  ;;  %v68_v41 = vld [vmem:[%s6663_s7 + $0x28] sm:$0xff] }
 0x73c   :  { %v5988_v42 = vpack.c.bf16 %v68_v41, %v67_v40  ;;  %v6062_v40 = vrot.slane %v72_v52, %v1305_v32 }
 0x73d   :  { %5084 = vmatmul.mubr.msk.f32.vlgmr.msra.gmra.mrb[10].mxu0 %vm434_vm7, %v765_v54  ;;  %v6002_v54 = vrot.slane %v72_v52, %v1120_v51 }
 0x73e   :  { %5092 = vmatpush3.msk.msra.mxu0 %vm438_vm6, %v933_v56  ;;  %5093 = vmatprep.mubr.msk.f32.mxu0 %vm5672_vm0, %v5673_v2 }
 0x73f   :  { %5445 = vmatprep.subr.bf16.mxu0 %v5671_v1 }
 0x741   :  { %5094 = vmatmul.mubr.msk.f32.vlgmr.msra.gmra.mrb[12].mxu0 %vm434_vm7, %v931_v57  ;;  %v6006_v57 = vrot.slane %v72_v52, %v1125_v53 }
 0x742   :  { %5115 = vmatprep.mubr.msk.f32.mxu0 %vm5672_vm0, %v5673_v2  ;;  %5447 = vmatpush3.bf16.msra.mxu0 %v5949_v29 }
 0x743   :  { %5448 = vmatprep.subr.bf16.mxu0 %v5671_v1 }
 0x80c   :  { %v673_v0 = vpop.f32.mrb[8].mxu0 }
 0x80d   :  { %1010 = vrot.lane.b32.xlu1 %v673_v0, %s6675_s16  ;;  %v5075_v3 = vpop.f32.mrb[9].mxu0  ;;  %v6019_v0 = vpack.c.bf16 %v70_v62, %v69_v61 }
 0x80e   :  { %v4788_v3 = vld [vmem:[%s6662_s6 + $0x20] ss:$0 sm:$0xff] }
 0x810   :  { %v839_v4 = vpop.f32.mrb[10].mxu0 }
 0x811   :  { %1014 = vrot.lane.b32.xlu0 %v839_v4, %s6673_s17  ;;  %v5085_v5 = vpop.f32.mrb[11].mxu0 }
 0x814   :  { %v1005_v7 = vpop.f32.mrb[12].mxu0 }
 0x815   :  { %1018 = vrot.lane.b32.xlu1 %v1005_v7, %s6671_s18  ;;  %v5095_v8 = vpop.f32.mrb[13].mxu0 }
 0x87f   :  { %v1011_v9 = vpop.permute.xlu1 %1010 }
 0x880   :  { %v1021_v11 = vsel %vm345_vm4, %v5879_v17, %v1011_v9  ;;  %v4790_v9 = vld [vmem:[%s6663_s7 + $0x40] ss:$0 sm:$0xff] }
 0x883   :  { %v1015_v10 = vpop.permute.xlu0 %1014 }
 0x884   :  { %v1022_v12 = vsel %vm190_vm2, %v1021_v11, %v1015_v10 }
 0x887   :  { %v1019_v13 = vpop.permute.xlu1 %1018 }
 0x888   :  { %v1024_v14 = vsel %vm1023_vm8, %v1022_v12, %v1019_v13 }
 0x889   :  { %5105 = vmatmul.mubr.msk.f32.vlgmr.msra.gmra.mrb[6].mxu1 %vm268_vm3, %v1024_v14 }
 0x88a   :  { %5134 = vmatprep.mubr.msk.f32.mxu1 %vm5672_vm0, %v5673_v2  ;;  %5453 = vmatpush3.bf16.msra.mxu1 %v5972_v37 }
 0x88b   :  { %5454 = vmatprep.subr.bf16.mxu1 %v5671_v1 }
 0x88e   :  { %5456 = vmatpush3.bf16.msra.mxu1 %v5978_v39 }
 0x88f   :  { %5457 = vmatprep.subr.bf16.mxu1 %v5671_v1 }
 0x892   :  { %5459 = vmatpush3.bf16.msra.mxu1 %v5988_v42 }
 0x893   :  { %5460 = vmatprep.subr.bf16.mxu1 %v5671_v1 }
 0x896   :  { %5462 = vmatpush3.bf16.msra.mxu1 %v6019_v0 }
 0x897   :  { %5158 = vmatprep.subr.mxu1 %v5673_v2 }
 0x95c   :  { %v1098_v16 = vpop.f32.mrb[6].mxu1 }
 0x95d   :  { %v1099_v19 = vadd.f32 %v4786_v15, %v1098_v16  ;;  %v5106_v20 = vpop.f32.mrb[7].mxu1 }
 0x95f   :  { %v1102_v17 = vadd.f32 %v1099_v19, %v5823_v50  ;;  %v60_v50 = vld [vmem:[%s6662_s6 + $0x10] sm:$0xff] }
 0x960   :  { %v5959_v31 = vpack.c.bf16 %v61_v30, %v60_v50  ;;  %v1300_v30 = vsub.s32 2, %v5993_v49  ;;  %v4820_v49 = vld [vmem:[%s6659_s0 + $0x10] sm:$0xff] }
 0x961   :  { %v1104_v21 = vsel %vm1103_vm9, %v1102_v17, 0.0 }
 0x962   :  { %1105 = vadd.xlane.f32.xlu0 %v1104_v21  ;;  %5450 = vmatpush3.bf16.msra.mxu0 %v5959_v31  ;;  %v4741_v21 = vld [vmem:[%s6660_s3 + $0x28] sm:$0xff]  ;;  %v6058_v35 = vrot.slane %v72_v52, %v1300_v30 }
 0x963   :  { %5463 = vmatprep.subr.bf16.mxu0 %v5671_v1 }
 0x9ef   :  { %v1106_v22 = vpop.xlane.xlu0 %1105 }
 0x9f0   :  { %v1108_v23 = vmul.f32 0.03125, %v1106_v22  ;;  %v4742_v22 = vld [vmem:[%s6660_s3 + $0x30] sm:$0xff] }
 0x9f2   :  { %v1109_v24 = vsub.f32 %v1102_v17, %v1108_v23  ;;  %v6040_v23 = vpack.c.bf16 %v4742_v22, %v4741_v21 }
 0x9f4   :  { %v1110_v25 = vmul.f32 %v1109_v24, %v1109_v24 }
 0x9f6   :  { %v1111_v26 = vsel %vm1103_vm9, %v1110_v25, 0.0  ;;  %v4744_v25 = vld [vmem:[%s6660_s3 + $0x40] sm:$0xff] }
 0x9f7   :  { %1112 = vadd.xlane.f32.xlu1 %v1111_v26 }
 0xa84   :  { %v1113_v44 = vpop.xlane.xlu1 %1112 }
 0xa85   :  { %v1114_v45 = vmul.f32 0.03125, %v1113_v44 }
 0xa87   :  { %v1115_v48 = vadd.f32 1e-05, %v1114_v45  ;;  %v4792_v45 = vld [vmem:[%s6660_s3 + $0x48] ss:$0 sm:$0xff] }
 0xa89   :  { %5594 = vrsqrt.f32 %v1115_v48 }
 0xa93   :  { %v5595_v55 = vpop.eup %5594 }
 0xa94   :  { %v1117_v56 = vmul.f32 %v5595_v55, %v1109_v24  ;;  %v4743_v24 = vld [vmem:[%s6660_s3 + $0x38] sm:$0xff] }
 0xa95   :  { %v6050_v26 = vpack.c.bf16 %v4744_v25, %v4743_v24 }
 0xa96   :  { %v1122_v58 = vmul.f32 %v6002_v54, %v1117_v56 }
 0xa98   :  { %v1127_v59 = vadd.f32 %v6006_v57, %v1122_v58 }
 0xa9a   :  { %5116 = vmatmul.mubr.msk.f32.vlgmr.msra.gmra.mrb[14].mxu0 %vm268_vm3, %v1127_v59 }
 0xa9b   :  { %5145 = vmatprep.mubr.msk.f32.mxu0 %vm5672_vm0, %v5673_v2  ;;  %5465 = vmatpush3.bf16.msra.mxu0 %v6040_v23 }
 0xa9c   :  { %5466 = vmatprep.subr.bf16.mxu0 %v5671_v1 }
 0xa9f   :  { %5468 = vmatpush3.bf16.msra.mxu0 %v6050_v26 }
 0xaa0   :  { %5148 = vmatprep.subr.mxu0 %v5673_v2 }
 0xb6d   :  { %v1201_v4 = vpop.f32.mrb[14].mxu0 }
 0xb6e   :  { %v1202_v5 = vadd.f32 %v4788_v3, %v1201_v4  ;;  %v5117_v7 = vpop.f32.mrb[15].mxu0 }
 0xb70   :  { %v1205_v8 = vmax.f32 %v1202_v5, 0.0 }
 0xb72   :  { %5135 = vmatmul.mubr.msk.f32.vlgmr.msra.gmra.mrb[8].mxu1 %vm1210_vm10, %v1205_v8 }
 0xb73   :  { %5160 = vmatprep.mubr.msk.f32.mxu1 %vm5672_vm0, %v5673_v2 }
 0xc45   :  { %v1280_v10 = vpop.f32.mrb[8].mxu1 }
 0xc46   :  { %v1281_v11 = vadd.f32 %v4790_v9, %v1280_v10  ;;  %v5136_v12 = vpop.f32.mrb[9].mxu1 }
 0xc48   :  { %v1284_v13 = vadd.f32 %v1281_v11, %v1127_v59 }
 0xc4a   :  { %v1285_v14 = vsel %vm1103_vm9, %v1284_v13, 0.0 }
 0xc4b   :  { %1286 = vadd.xlane.f32.xlu0 %v1285_v14 }
 0xcd8   :  { %v1287_v15 = vpop.xlane.xlu0 %1286 }
 0xcd9   :  { %v1288_v16 = vmul.f32 0.03125, %v1287_v15 }
 0xcdb   :  { %v1289_v19 = vsub.f32 %v1284_v13, %v1288_v16 }
 0xcdd   :  { %v1290_v20 = vmul.f32 %v1289_v19, %v1289_v19 }
 0xcdf   :  { %v1291_v17 = vsel %vm1103_vm9, %v1290_v20, 0.0 }
 0xce0   :  { %1292 = vadd.xlane.f32.xlu0 %v1291_v17 }
 0xd6d   :  { %v1293_v27 = vpop.xlane.xlu0 %1292 }
 0xd6e   :  { %v1294_v28 = vmul.f32 0.03125, %v1293_v27 }
 0xd70   :  { %v1295_v50 = vadd.f32 1e-05, %v1294_v28 }
 0xd72   :  { %5596 = vrsqrt.f32 %v1295_v50 }
 0xd7c   :  { %v5597_v36 = vpop.eup %5596 }
 0xd7d   :  { %v1297_v38 = vmul.f32 %v5597_v36, %v1289_v19 }
 0xd7f   :  { %v1302_v41 = vmul.f32 %v6058_v35, %v1297_v38 }
 0xd81   :  { %v6066_v44 = vadd.f32 %v6062_v40, %v1302_v41 }
 0xd83   :  { %5146 = vmatmul.mubr.msk.f32.vlgmr.msra.gmra.mrb[16].mxu0 %vm268_vm3, %v6066_v44 }
 0xd84   :  { %5150 = vmatprep.mubr.msk.f32.mxu0 %vm5672_vm0, %v5673_v2 }
 0xe56   :  { %v1381_v46 = vpop.f32.mrb[16].mxu0 }
 0xe57   :  { %v6075_v48 = vadd.f32 %v4792_v45, %v1381_v46  ;;  %v5147_v52 = vpop.f32.mrb[17].mxu0 }
 0xe59   :  { %1552 = vrot.lane.b32.xlu1 %v6075_v48, %s5676_s25  ;;  %1386 = vrot.lane.b32.xlu0 %v6075_v48, %s5675_s24 }
 0xe5d   :  { %1550 = vrot.lane.b32.xlu1 %v6075_v48, %s5677_s26  ;;  %1716 = vrot.lane.b32.xlu0 %v6075_v48, %s5678_s27 }
 0xe61   :  { %1718 = vrot.lane.b32.xlu1 %v6075_v48, %s5681_s30  ;;  %1882 = vrot.lane.b32.xlu0 %v6075_v48, %s5679_s28 }
 0xe65   :  { %1884 = vrot.lane.b32.xlu1 %v6075_v48, %s5682_s12 }
 0xecb   :  { %v1553_v55 = vpop.permute.xlu1 %1552  ;;  %v1387_v56 = vpop.permute.xlu0 %1386 }
 0xecc   :  { %5149 = vmatpush3.xpose.msk.msra.mxu0 %vm345_vm4, %v1387_v56  ;;  %5159 = vmatpush3.xpose.msk.msra.mxu1 %vm345_vm4, %v1553_v55 }
 0xecd   :  { %5168 = vmatprep.subr.mxu1 %v5673_v2  ;;  %5153 = vmatprep.subr.mxu0 %v5673_v2 }
 0xecf   :  { %v1551_v58 = vpop.permute.xlu1 %1550  ;;  %5151 = vmatmul.mubr.msk.f32.vlgmr.msra.gmra.mrb[18].mxu0 %vm345_vm4, %v6075_v48  ;;  %v1717_v61 = vpop.permute.xlu0 %1716 }
 0xed0   :  { %5161 = vmatmul.mubr.msk.f32.vlgmr.msra.gmra.mrb[10].mxu1 %vm345_vm4, %v1551_v58  ;;  %5155 = vmatprep.mubr.msk.f32.mxu0 %vm5672_vm0, %v5673_v2 }
 0xed1   :  { %5170 = vmatprep.mubr.msk.f32.mxu1 %vm5672_vm0, %v5673_v2 }
 0xed3   :  { %v1719_v59 = vpop.permute.xlu1 %1718  ;;  %v1883_v3 = vpop.permute.xlu0 %1882 }
 0xed4   :  { %5169 = vmatpush3.xpose.msk.msra.mxu1 %vm345_vm4, %v1719_v59 }
 0xed5   :  { %5178 = vmatprep.subr.mxu1 %v5673_v2 }
 0xed7   :  { %v1885_v62 = vpop.permute.xlu1 %1884  ;;  %5171 = vmatmul.mubr.msk.f32.vlgmr.msra.gmra.mrb[12].mxu1 %vm345_vm4, %v1717_v61 }
 0xed8   :  { %5179 = vmatpush3.xpose.msk.msra.mxu1 %vm345_vm4, %v1885_v62  ;;  %5180 = vmatprep.mubr.msk.f32.mxu1 %vm5672_vm0, %v5673_v2 }
 0xed9   :  { %5469 = vmatprep.subr.bf16.mxu1 %v5671_v1 }
 0xedb   :  { %5181 = vmatmul.mubr.msk.f32.vlgmr.msra.gmra.mrb[14].mxu1 %vm345_vm4, %v1883_v3 }
 0xedc   :  { %5196 = vmatprep.mubr.msk.f32.mxu1 %vm5672_vm0, %v5673_v2 }
 0xfa2   :  { %v1458_v4 = vpop.f32.mrb[18].mxu0 }
 0xfa3   :  { %v5152_v5 = vpop.f32.mrb[19].mxu0  ;;  %v1624_v7 = vpop.f32.mrb[10].mxu1  ;;  %v1462_v8 = vsel %vm420_vm5, %v1458_v4, -inf }
 0xfa4   :  { %v5162_v9 = vpop.f32.mrb[11].mxu1  ;;  %1463 = vmax.xlane.f32.xlu1 %v1462_v8  ;;  %v1628_v10 = vsel %vm420_vm5, %v1624_v7, -inf }
 0xfa5   :  { %1629 = vmax.xlane.f32.xlu0 %v1628_v10 }
 0xfaa   :  { %v1790_v11 = vpop.f32.mrb[12].mxu1 }
 0xfab   :  { %v5172_v12 = vpop.f32.mrb[13].mxu1  ;;  %v1794_v13 = vsel %vm420_vm5, %v1790_v11, -inf }
 0xfac   :  { %1795 = vmax.xlane.f32.xlu0 %v1794_v13 }
 0xfae   :  { %v1956_v14 = vpop.f32.mrb[14].mxu1 }
 0xfaf   :  { %v5182_v15 = vpop.f32.mrb[15].mxu1  ;;  %v1960_v16 = vsel %vm420_vm5, %v1956_v14, -inf }
 0xfb0   :  { %1961 = vmax.xlane.f32.xlu0 %v1960_v16 }
 0xfb5   :  { %1473 = vrot.lane.b32.xlu1 %v6075_v48, %s5680_s29 }
0x1031   :  { %v1464_v19 = vpop.xlane.xlu1 %1463 }
0x1032   :  { %v1465_v20 = vsub.f32 %v1458_v4, %v1464_v19  ;;  %v1630_v17 = vpop.xlane.xlu0 %1629  ;;  %v4746_v19 = vld [vmem:[%s6661_s4 + $0x28] sm:$0xff] }
0x1033   :  { %v1631_v21 = vsub.f32 %v1624_v7, %v1630_v17 }
0x1034   :  { %v1466_v22 = vmul.f32 1.442695, %v1465_v20  ;;  %v4747_v20 = vld [vmem:[%s6661_s4 + $0x30] sm:$0xff] }
0x1035   :  { %v1632_v24 = vmul.f32 1.442695, %v1631_v21  ;;  %v1474_v25 = vpop.permute.xlu1 %1473  ;;  %v6154_v17 = vpack.c.bf16 %v4747_v20, %v4746_v19  ;;  %v4748_v21 = vld [vmem:[%s6661_s4 + $0x38] sm:$0xff]  ;;  %v4756_v19 = vld [vmem:[%s6663_s7 + $0x48] sm:$0xff]  ;;  %v4757_v20 = vld [vmem:[%s6663_s7 + $0x50] sm:$0xff] }
0x1036   :  { %5598 = vpow2.f32 %v1466_v22  ;;  %5154 = vmatpush3.msk.msra.mxu0 %vm438_vm6, %v1474_v25  ;;  %v4749_v22 = vld [vmem:[%s6661_s4 + $0x40] sm:$0xff] }
0x1037   :  { %5600 = vpow2.f32 %v1632_v24  ;;  %5163 = vmatprep.subr.mxu0 %v5673_v2  ;;  %5471 = vmatpush3.bf16.msra.mxu1 %v6154_v17  ;;  %v6164_v24 = vpack.c.bf16 %v4749_v22, %v4748_v21  ;;  %v4758_v21 = vld [vmem:[%s6663_s7 + $0x58] sm:$0xff]  ;;  %v6212_v22 = vpack.c.bf16 %v4757_v20, %v4756_v19 }
0x1038   :  { %5472 = vmatprep.subr.bf16.mxu1 %v5671_v1 }
0x1039   :  { %v1796_v27 = vpop.xlane.xlu0 %1795 }
0x103a   :  { %v1797_v28 = vsub.f32 %v1790_v11, %v1796_v27 }
0x103b   :  { %5474 = vmatpush3.bf16.msra.mxu1 %v6164_v24 }
0x103c   :  { %v1798_v50 = vmul.f32 1.442695, %v1797_v28  ;;  %5481 = vmatprep.subr.bf16.mxu1 %v5671_v1 }
0x103d   :  { %v1962_v36 = vpop.xlane.xlu0 %1961 }
0x103e   :  { %5602 = vpow2.f32 %v1798_v50  ;;  %v1963_v38 = vsub.f32 %v1956_v14, %v1962_v36 }
0x1040   :  { %v5599_v41 = vpop.eup %5598  ;;  %v1964_v45 = vmul.f32 1.442695, %v1963_v38 }
0x1041   :  { %v5601_v46 = vpop.eup %5600  ;;  %v1468_v52 = vsel %vm420_vm5, %v5599_v41, 0.0 }
0x1042   :  { %5604 = vpow2.f32 %v1964_v45  ;;  %1469 = vadd.xlane.f32.xlu1 %v1468_v52  ;;  %v1634_v55 = vsel %vm420_vm5, %v5601_v46, 0.0 }
0x1043   :  { %1635 = vadd.xlane.f32.xlu0 %v1634_v55 }
0x1048   :  { %v5603_v56 = vpop.eup %5602 }
0x1049   :  { %v1800_v58 = vsel %vm420_vm5, %v5603_v56, 0.0 }
0x104a   :  { %1801 = vadd.xlane.f32.xlu1 %v1800_v58 }
0x104c   :  { %v5605_v59 = vpop.eup %5604 }
0x104d   :  { %v1966_v61 = vsel %vm420_vm5, %v5605_v59, 0.0 }
0x104e   :  { %1967 = vadd.xlane.f32.xlu0 %v1966_v61  ;;  %v4810_v61 = vld [vmem:[%s6661_s4 + $0x48] ss:$0 sm:$0xff] }
0x105b   :  { %1805 = vrot.lane.b32.xlu1 %v6075_v48, %s6681_s13  ;;  %s6686_s13 = smov 4  }
0x105f   :  { %1971 = vrot.lane.b32.xlu1 %v6075_v48, %s6679_s15 }
0x1064   :  { %1639 = vrot.lane.b32.xlu0 %v6075_v48, %s6677_s14 }
0x10cf   :  { %v1470_v62 = vpop.xlane.xlu1 %1469 }
0x10d0   :  { %5606 = vrcp.f32 %v1470_v62  ;;  %v1636_v3 = vpop.xlane.xlu0 %1635 }
0x10d1   :  { %5608 = vrcp.f32 %v1636_v3 }
0x10d7   :  { %v1802_v4 = vpop.xlane.xlu1 %1801 }
0x10d8   :  { %5610 = vrcp.f32 %v1802_v4 }
0x10da   :  { %v5607_v5 = vpop.eup %5606 }
0x10db   :  { %v1472_v7 = vmul.f32 %v5607_v5, %v5599_v41  ;;  %v1968_v8 = vpop.xlane.xlu0 %1967  ;;  %v5609_v9 = vpop.eup %5608 }
0x10dc   :  { %5612 = vrcp.f32 %v1968_v8  ;;  %v1638_v10 = vmul.f32 %v5609_v9, %v5601_v46  ;;  %v1806_v11 = vpop.permute.xlu1 %1805 }
0x10dd   :  { %5156 = vmatmul.mubr.msk.f32.vlgmr.msra.gmra.mrb[20].mxu0 %vm434_vm7, %v1472_v7 }
0x10de   :  { %5165 = vmatprep.mubr.msk.f32.mxu0 %vm5672_vm0, %v5673_v2 }
0x10df   :  { %v1640_v12 = vpop.permute.xlu0 %1639 }
0x10e0   :  { %5164 = vmatpush3.msk.msra.mxu0 %vm438_vm6, %v1640_v12  ;;  %v1972_v14 = vpop.permute.xlu1 %1971 }
0x10e1   :  { %5166 = vmatmul.mubr.msk.f32.vlgmr.msra.gmra.mrb[22].mxu0 %vm434_vm7, %v1638_v10  ;;  %5173 = vmatprep.subr.mxu0 %v5673_v2 }
0x10e2   :  { %v5611_v48 = vpop.eup %5610  ;;  %5174 = vmatpush3.msk.msra.mxu0 %vm438_vm6, %v1806_v11  ;;  %5175 = vmatprep.mubr.msk.f32.mxu0 %vm5672_vm0, %v5673_v2 }
0x10e3   :  { %v1804_v13 = vmul.f32 %v5611_v48, %v5603_v56  ;;  %5183 = vmatprep.subr.mxu0 %v5673_v2  ;;  %v4751_v48 = vld [vmem:[%s6662_s6 + $0x28] sm:$0xff] }
0x10e5   :  { %5176 = vmatmul.mubr.msk.f32.vlgmr.msra.gmra.mrb[24].mxu0 %vm434_vm7, %v1804_v13  ;;  %v4752_v13 = vld [vmem:[%s6662_s6 + $0x30] sm:$0xff] }
0x10e6   :  { %v5613_v15 = vpop.eup %5612  ;;  %5184 = vmatpush3.msk.msra.mxu0 %vm438_vm6, %v1972_v14  ;;  %5185 = vmatprep.mubr.msk.f32.mxu0 %vm5672_vm0, %v5673_v2  ;;  %v6189_v14 = vpack.c.bf16 %v4752_v13, %v4751_v48 }
0x10e7   :  { %v1970_v16 = vmul.f32 %v5613_v15, %v5605_v59  ;;  %5475 = vmatprep.subr.bf16.mxu0 %v5671_v1  ;;  %v4754_v15 = vld [vmem:[%s6662_s6 + $0x40] sm:$0xff] }
0x10e9   :  { %5186 = vmatmul.mubr.msk.f32.vlgmr.msra.gmra.mrb[26].mxu0 %vm434_vm7, %v1970_v16 }
0x10ea   :  { %5207 = vmatprep.mubr.msk.f32.mxu0 %vm5672_vm0, %v5673_v2  ;;  %5477 = vmatpush3.bf16.msra.mxu0 %v6189_v14 }
0x10eb   :  { %5478 = vmatprep.subr.bf16.mxu0 %v5671_v1 }
0x11b0   :  { %v1546_v25 = vpop.f32.mrb[20].mxu0 }
0x11b1   :  { %v5157_v27 = vpop.f32.mrb[21].mxu0 }
0x11b4   :  { %v1712_v28 = vpop.f32.mrb[22].mxu0 }
0x11b5   :  { %2049 = vrot.lane.b32.xlu1 %v1712_v28, %s6683_s21  ;;  %v5167_v50 = vpop.f32.mrb[23].mxu0  ;;  %v4760_v28 = vld [vmem:[%s6663_s7 + $0x68] sm:$0xff] }
0x11b6   :  { %v4761_v50 = vld [vmem:[%s6663_s7 + $0x70] sm:$0xff] }
0x11b8   :  { %v1878_v36 = vpop.f32.mrb[24].mxu0 }
0x11b9   :  { %2053 = vrot.lane.b32.xlu0 %v1878_v36, %s6684_s22  ;;  %v5177_v38 = vpop.f32.mrb[25].mxu0  ;;  %v6228_v36 = vpack.c.bf16 %v4761_v50, %v4760_v28 }
0x11bc   :  { %v2044_v41 = vpop.f32.mrb[26].mxu0 }
0x11bd   :  { %2057 = vrot.lane.b32.xlu1 %v2044_v41, %s6685_s23  ;;  %v5187_v45 = vpop.f32.mrb[27].mxu0 }
0x1227   :  { %v2050_v46 = vpop.permute.xlu1 %2049 }
0x1228   :  { %v2060_v55 = vsel %vm345_vm4, %v1546_v25, %v2050_v46  ;;  %v4759_v25 = vld [vmem:[%s6663_s7 + $0x60] sm:$0xff] }
0x1229   :  { %v6218_v27 = vpack.c.bf16 %v4759_v25, %v4758_v21  ;;  %v4765_v46 = vld [vmem:[%s6664_s5 + $0x4] sm:$0xf]  ;;  %v4823_v25 = vld [vmem:[%s6657_s1 + $0x18] sm:$0xff]  ;;  %s6688_s5 = smov 40  }
0x122b   :  { %v2054_v52 = vpop.permute.xlu0 %2053 }
0x122c   :  { %v2061_v56 = vsel %vm190_vm2, %v2060_v55, %v2054_v52  ;;  %v6238_v52 = vrot.slane %v4765_v46, %v1120_v51  ;;  %v4762_v51 = vld [vmem:[%s6663_s7 + $0x78] sm:$0xff] }
0x122f   :  { %v2058_v58 = vpop.permute.xlu1 %2057 }
0x1230   :  { %v2062_v59 = vsel %vm1023_vm8, %v2061_v56, %v2058_v58  ;;  %v6242_v58 = vrot.slane %v4765_v46, %v1125_v53  ;;  %v6262_v53 = vld [vmem:[%s6662_s6 + $0x48] ss:$0 sm:$0xff] }
0x1231   :  { %5197 = vmatmul.mubr.msk.f32.vlgmr.msra.gmra.mrb[16].mxu1 %vm268_vm3, %v2062_v59 }
0x1232   :  { %5226 = vmatprep.mubr.msk.f32.mxu1 %vm5672_vm0, %v5673_v2  ;;  %5483 = vmatpush3.bf16.msra.mxu1 %v6212_v22 }
0x1233   :  { %5484 = vmatprep.subr.bf16.mxu1 %v5671_v1 }
0x1236   :  { %5486 = vmatpush3.bf16.msra.mxu1 %v6218_v27 }
0x1237   :  { %5487 = vmatprep.subr.bf16.mxu1 %v5671_v1 }
0x123a   :  { %5489 = vmatpush3.bf16.msra.mxu1 %v6228_v36 }
0x123b   :  { %5490 = vmatprep.subr.bf16.mxu1 %v5671_v1 }
0x1304   :  { %v2136_v62 = vpop.f32.mrb[16].mxu1 }
0x1305   :  { %v2137_v3 = vadd.f32 %v4810_v61, %v2136_v62  ;;  %v5198_v4 = vpop.f32.mrb[17].mxu1  ;;  %v4763_v62 = vld [vmem:[%s6663_s7 + $0x80] sm:$0xff] }
0x1307   :  { %v2140_v5 = vadd.f32 %v2137_v3, %v6066_v44  ;;  %v4753_v44 = vld [vmem:[%s6662_s6 + $0x38] sm:$0xff]  ;;  %v6255_v3 = vpack.c.bf16 %v4763_v62, %v4762_v51  ;;  %v4822_v62 = vld [vmem:[%s6657_s1 + $0x10] sm:$0xff] }
0x1308   :  { %v6199_v16 = vpack.c.bf16 %v4754_v15, %v4753_v44 }
0x1309   :  { %v2141_v7 = vsel %vm1103_vm9, %v2140_v5, 0.0  ;;  %5492 = vmatpush3.bf16.msra.mxu1 %v6255_v3 }
0x130a   :  { %2142 = vadd.xlane.f32.xlu0 %v2141_v7  ;;  %5480 = vmatpush3.bf16.msra.mxu0 %v6199_v16 }
0x130b   :  { %5229 = vmatprep.subr.mxu0 %v5673_v2  ;;  %5252 = vmatprep.subr.mxu1 %v5673_v2 }
0x1397   :  { %v2143_v8 = vpop.xlane.xlu0 %2142 }
0x1398   :  { %v2144_v9 = vmul.f32 0.03125, %v2143_v8 }
0x139a   :  { %v2145_v10 = vsub.f32 %v2140_v5, %v2144_v9  ;;  %v6271_v9 = vld [vmem:[%s6663_s7 + $0x88] ss:$0 sm:$0xff] }
0x139c   :  { %v2146_v11 = vmul.f32 %v2145_v10, %v2145_v10 }
0x139e   :  { %v2147_v12 = vsel %vm1103_vm9, %v2146_v11, 0.0 }
0x139f   :  { %2148 = vadd.xlane.f32.xlu1 %v2147_v12 }
0x13b0   :  { %2528 = vrot.lane.b32.xlu1 %v4823_v25, %s6686_s13 }
0x142c   :  { %v2149_v38 = vpop.xlane.xlu1 %2148 }
0x142d   :  { %v2150_v41 = vmul.f32 0.03125, %v2149_v38 }
0x142f   :  { %v2151_v45 = vadd.f32 1e-05, %v2150_v41  ;;  %v6282_v41 = vrot.slane %v4765_v46, %v1300_v30  ;;  %v4821_v30 = vld [vmem:[%s6659_s0 + $0x18] sm:$0xff] }
0x1431   :  { %5614 = vrsqrt.f32 %v2151_v45 }
0x143b   :  { %v5615_v55 = vpop.eup %5614 }
0x143c   :  { %v2153_v56 = vmul.f32 %v5615_v55, %v2145_v10 }
0x143e   :  { %v2158_v59 = vmul.f32 %v6238_v52, %v2153_v56  ;;  %v6286_v56 = vrot.slane %v4765_v46, %v1305_v32  ;;  %v2489_v32 = vsel %vm107_vm1, %v4820_v49, 0.0  ;;  %v2490_v46 = vsel %vm107_vm1, %v4821_v30, 0.0 }
0x1440   :  { %v2163_v61 = vadd.f32 %v6242_v58, %v2158_v59 }
0x1442   :  { %5208 = vmatmul.mubr.msk.f32.vlgmr.msra.gmra.mrb[28].mxu0 %vm268_vm3, %v2163_v61 }
0x1443   :  { %5231 = vmatprep.mubr.msk.f32.mxu0 %vm5672_vm0, %v5673_v2 }
0x1515   :  { %v2237_v4 = vpop.f32.mrb[28].mxu0 }
0x1516   :  { %v2238_v5 = vadd.f32 %v6262_v53, %v2237_v4  ;;  %v5209_v7 = vpop.f32.mrb[29].mxu0  ;;  %v2491_v4 = vadd.f32 %v2490_v46, %v2489_v32 }
0x1518   :  { %v2241_v8 = vmax.f32 %v2238_v5, 0.0  ;;  %v2492_v5 = vrot.slane %v2491_v4, 4 }
0x151a   :  { %5227 = vmatmul.mubr.msk.f32.vlgmr.msra.gmra.mrb[18].mxu1 %vm1210_vm10, %v2241_v8  ;;  %v2493_v7 = vadd.f32 %v2492_v5, %v2491_v4 }
0x151b   :  { %5254 = vmatprep.mubr.msk.f32.mxu1 %vm5672_vm0, %v5673_v2 }
0x151c   :  { %v2494_v8 = vrot.slane %v2493_v7, 2 }
0x15ed   :  { %v2315_v10 = vpop.f32.mrb[18].mxu1 }
0x15ee   :  { %v2316_v11 = vadd.f32 %v6271_v9, %v2315_v10  ;;  %v5228_v12 = vpop.f32.mrb[19].mxu1  ;;  %v2495_v10 = vadd.f32 %v2494_v8, %v2493_v7  ;;  %v2529_v8 = vpop.permute.xlu1 %2528 }
0x15f0   :  { %v2319_v48 = vadd.f32 %v2316_v11, %v2163_v61  ;;  %v2496_v11 = vrot.slane %v2495_v10, 1 }
0x15f2   :  { %v2320_v13 = vsel %vm1103_vm9, %v2319_v48, 0.0  ;;  %v2497_v12 = vadd.f32 %v2496_v11, %v2495_v10 }
0x15f3   :  { %2321 = vadd.xlane.f32.xlu0 %v2320_v13 }
0x1680   :  { %v2322_v44 = vpop.xlane.xlu0 %2321 }
0x1681   :  { %v2323_v15 = vmul.f32 0.03125, %v2322_v44 }
0x1683   :  { %v2324_v19 = vsub.f32 %v2319_v48, %v2323_v15  ;;  %v6303_v48 = vmul.f32 0.0625, %v2497_v12 }
0x1685   :  { %v2325_v20 = vmul.f32 %v2324_v19, %v2324_v19  ;;  %v2499_v13 = vsub.f32 %v4820_v49, %v6303_v48  ;;  %v2500_v44 = vsub.f32 %v4821_v30, %v6303_v48 }
0x1687   :  { %v2326_v21 = vsel %vm1103_vm9, %v2325_v20, 0.0  ;;  %v2501_v15 = vmul.f32 %v2499_v13, %v2499_v13 }
0x1688   :  { %2327 = vadd.xlane.f32.xlu0 %v2326_v21 }
0x1689   :  { %v2503_v20 = vsel %vm107_vm1, %v2501_v15, 0.0 }
0x1715   :  { %v2328_v28 = vpop.xlane.xlu0 %2327 }
0x1716   :  { %v2329_v50 = vmul.f32 0.03125, %v2328_v28 }
0x1718   :  { %v2330_v38 = vadd.f32 1e-05, %v2329_v50 }
0x171a   :  { %5616 = vrsqrt.f32 %v2330_v38 }
0x1724   :  { %v5617_v45 = vpop.eup %5616 }
0x1725   :  { %v2332_v55 = vmul.f32 %v5617_v45, %v2324_v19  ;;  %v2502_v19 = vmul.f32 %v2500_v44, %v2500_v44 }
0x1727   :  { %v2337_v59 = vmul.f32 %v6282_v41, %v2332_v55  ;;  %v2504_v21 = vsel %vm107_vm1, %v2502_v19, 0.0  ;;  %v43_v19 = vld [vmem:[%s6665_s9] sm:$0xff] }
0x1728   :  { %v2505_v25 = vadd.f32 %v2504_v21, %v2503_v20 }
0x1729   :  { %v2342_v61 = vadd.f32 %v6286_v56, %v2337_v59 }
0x172a   :  { %v2506_v28 = vrot.slane %v2505_v25, 4 }
0x172b   :  { %v2344_v51 = vsel %vm2343_vm11, %v2342_v61, 0.0 }
0x172c   :  { %2345 = vadd.xlane.f32.xlu0 %v2344_v51  ;;  %v2507_v50 = vadd.f32 %v2506_v28, %v2505_v25 }
0x172e   :  { %v2508_v38 = vrot.slane %v2507_v50, 2 }
0x1730   :  { %v2509_v45 = vadd.f32 %v2508_v38, %v2507_v50  ;;  %v6334_v50 = vld [vmem:[%s6666_s8] ss:$0 sm:$0xff] }
0x1732   :  { %v2510_v55 = vrot.slane %v2509_v45, 1 }
0x1734   :  { %v2511_v59 = vadd.f32 %v2510_v55, %v2509_v45  ;;  %v6339_v45 = vld [vmem:[%s6666_s8 + $0x1] ss:$0 sm:$0xff] }
0x1736   :  { %v2512_v51 = vmul.f32 0.0625, %v2511_v59 }
0x1742   :  { %2526 = vrot.lane.b32.xlu0 %v4822_v62, %s6686_s13  ;;  %v6309_v62 = vadd.f32 1e-05, %v2512_v51  ;;  %s6689_s13 = smov 56  }
0x1744   :  { %5618 = vrsqrt.f32 %v6309_v62  ;;  %vm2516_vm14 = vcmp.eq.f32.partialorder %v6309_v62, inf  ;;  %vm2518_vm15 = vcmp.eq.f32.partialorder %v6309_v62, 0.0 }
0x174e   :  { %v6312_v49 = vpop.eup %5618 }
0x174f   :  { %v2522_v46 = vmul.f32 %v6312_v49, %v2499_v13  ;;  %v2523_v5 = vmul.f32 %v6312_v49, %v2500_v44  ;;  %v45_v13 = vld [vmem:[%s6665_s9 + $0x10] sm:$0xff]  ;;  %v46_v44 = vld [vmem:[%s6665_s9 + $0x18] sm:$0xff] }
0x1751   :  { %v2533_v15 = vsel %vm107_vm1, %v2523_v5, %v2529_v8 }
0x17b9   :  { %v2346_v30 = vpop.xlane.xlu0 %2345 }
0x17ba   :  { %v2347_v32 = vmul.f32 0.03125, %v2346_v30 }
0x17bc   :  { %v2348_v4 = vsub.f32 %v2342_v61, %v2347_v32  ;;  %v44_v61 = vld [vmem:[%s6665_s9 + $0x8] sm:$0xff] }
0x17bd   :  { %v2527_v7 = vpop.permute.xlu0 %2526 }
0x17be   :  { %v2349_v10 = vmul.f32 %v2348_v4, %v2348_v4  ;;  %v2532_v11 = vsel %vm107_vm1, %v2522_v46, %v2527_v7  ;;  %v5665_v7 = vld [vmem:[%s6660_s3 + $0x20] ss:$0 sm:$0xff] }
0x17bf   :  { %2534 = vxpose.xlu0.b32.start [1/2] (short) (narrow) %v2532_v11, 8 }
0x17c0   :  { %v2350_v12 = vsel %vm2343_vm11, %v2349_v10, 0.0 }
0x17c1   :  { %2351 = vadd.xlane.f32.xlu1 %v2350_v12 }
0x17c3   :  { %2535 = vxpose.xlu0.b32.end [2/2] (short) (narrow) %v2533_v15, 8 }
0x17f4   :  { %2372 = vxpose.xlu1.b32.start [1/4] (short) (narrow) %v43_v19, 8 }
0x17f8   :  { %2373 = vxpose.xlu1.b32.cont [2/4] (short) (narrow) %v44_v61, 8 }
0x17fc   :  { %2374 = vxpose.xlu1.b32.cont [3/4] (short) (narrow) %v45_v13, 8 }
0x1800   :  { %2375 = vxpose.xlu1.b32.end [4/4] (short) (narrow) %v46_v44, 8 }
0x183f   :  { %v2550_v30 = vpop.trf.xlu0 }
0x184e   :  { %v2352_v20 = vpop.xlane.xlu1 %2351 }
0x184f   :  { %v2353_v21 = vmul.f32 0.03125, %v2352_v20 }
0x1851   :  { %v2354_v25 = vadd.f32 1e-05, %v2353_v21 }
0x1853   :  { %5620 = vrsqrt.f32 %v2354_v25 }
0x185d   :  { %v5621_v28 = vpop.eup %5620 }
0x185e   :  { %v2356_v38 = vmul.f32 %v5621_v28, %v2348_v4  ;;  %v5664_v4 = vld [vmem:[%s6658_s2 + $0x10] ss:$0 sm:$0xff]  ;;  %s6687_s2 = smov 48  }
0x1860   :  { %v2361_v55 = vmul.f32 %v6334_v50, %v2356_v38 }
0x1862   :  { %v2366_v59 = vadd.f32 %v6339_v45, %v2361_v55 }
0x1864   :  { %5230 = vmatpush3.xpose.msk.msra.mxu0 %vm268_vm3, %v2366_v59 }
0x1865   :  { %5493 = vmatprep.subr.bf16.mxu0 %v5671_v1 }
0x1874   :  { %v6345_v51 = vpop.trf.xlu1 }
0x1875   :  { %5232 = vmatmul.mubr.msk.f32.vlgmr.msra.gmra.mrb[30].mxu0 %vm268_vm3, %v6345_v51 }
0x1876   :  { %5495 = vmatpush3.bf16.msra.mxu0 %v5767_v6  ;;  %5238 = vmatprep.mubr.msk.f32.mxu0 %vm5672_vm0, %v5673_v2 }
0x1877   :  { %5496 = vmatprep.subr.bf16.mxu0 %v5671_v1 }
0x1879   :  { %5239 = vmatmul.mubr.msk.f32.vlgmr.msra.gmra.mrb[32].mxu0 %vm190_vm2, %v2550_v30 }
0x187a   :  { %5498 = vmatpush3.bf16.msra.mxu0 %v5803_v43  ;;  %5249 = vmatprep.mubr.msk.f32.mxu0 %vm5672_vm0, %v5673_v2 }
0x187b   :  { %5499 = vmatprep.subr.bf16.mxu0 %v5671_v1 }
0x187e   :  { %5501 = vmatpush3.bf16.msra.mxu0 %v5816_v47 }
0x187f   :  { %5257 = vmatprep.subr.mxu0 %v5673_v2 }
0x1948   :  { %v6360_v6 = vpop.f32.mrb[30].mxu0 }
0x1949   :  { %v5233_v32 = vpop.f32.mrb[31].mxu0 }
0x194c   :  { %v2635_v46 = vpop.f32.mrb[32].mxu0 }
0x194d   :  { %v6365_v5 = vadd.f32 %v5664_v4, %v2635_v46  ;;  %v5240_v43 = vpop.f32.mrb[33].mxu0 }
0x194f   :  { %5250 = vmatmul.mubr.msk.f32.vlgmr.msra.gmra.mrb[34].mxu0 %vm268_vm3, %v6365_v5 }
0x1950   :  { %5259 = vmatprep.mubr.msk.f32.mxu0 %vm5672_vm0, %v5673_v2 }
0x1a22   :  { %v2708_v47 = vpop.f32.mrb[34].mxu0 }
0x1a23   :  { %v6374_v8 = vadd.f32 %v5665_v7, %v2708_v47  ;;  %v5251_v10 = vpop.f32.mrb[35].mxu0 }
0x1a25   :  { %2879 = vrot.lane.b32.xlu1 %v6374_v8, %s5676_s25  ;;  %2713 = vrot.lane.b32.xlu0 %v6374_v8, %s5675_s24 }
0x1a29   :  { %3045 = vrot.lane.b32.xlu1 %v6374_v8, %s5681_s30  ;;  %2877 = vrot.lane.b32.xlu0 %v6374_v8, %s5677_s26 }
0x1a2d   :  { %3211 = vrot.lane.b32.xlu1 %v6374_v8, %s5682_s12  ;;  %3043 = vrot.lane.b32.xlu0 %v6374_v8, %s5678_s27 }
0x1a31   :  { %3209 = vrot.lane.b32.xlu0 %v6374_v8, %s5679_s28 }
0x1a97   :  { %v2880_v11 = vpop.permute.xlu1 %2879  ;;  %v2714_v12 = vpop.permute.xlu0 %2713 }
0x1a98   :  { %5253 = vmatpush3.xpose.msk.msra.mxu1 %vm345_vm4, %v2714_v12 }
0x1a99   :  { %5262 = vmatprep.subr.mxu1 %v5673_v2 }
0x1a9b   :  { %5255 = vmatmul.mubr.msk.f32.vlgmr.msra.gmra.mrb[20].mxu1 %vm345_vm4, %v6374_v8  ;;  %v2878_v15 = vpop.permute.xlu0 %2877  ;;  %v3046_v19 = vpop.permute.xlu1 %3045 }
0x1a9c   :  { %5263 = vmatpush3.xpose.msk.msra.mxu1 %vm345_vm4, %v2880_v11  ;;  %5264 = vmatprep.mubr.msk.f32.mxu1 %vm5672_vm0, %v5673_v2 }
0x1a9d   :  { %5272 = vmatprep.subr.mxu1 %v5673_v2 }
0x1a9f   :  { %5265 = vmatmul.mubr.msk.f32.vlgmr.msra.gmra.mrb[22].mxu1 %vm345_vm4, %v2878_v15  ;;  %v3044_v61 = vpop.permute.xlu0 %3043  ;;  %v3212_v13 = vpop.permute.xlu1 %3211 }
0x1aa0   :  { %5273 = vmatpush3.xpose.msk.msra.mxu1 %vm345_vm4, %v3046_v19  ;;  %5274 = vmatprep.mubr.msk.f32.mxu1 %vm5672_vm0, %v5673_v2 }
0x1aa1   :  { %5282 = vmatprep.subr.mxu1 %v5673_v2 }
0x1aa3   :  { %5275 = vmatmul.mubr.msk.f32.vlgmr.msra.gmra.mrb[24].mxu1 %vm345_vm4, %v3044_v61  ;;  %v3210_v44 = vpop.permute.xlu0 %3209 }
0x1aa4   :  { %5283 = vmatpush3.xpose.msk.msra.mxu1 %vm345_vm4, %v3212_v13  ;;  %5284 = vmatprep.mubr.msk.f32.mxu1 %vm5672_vm0, %v5673_v2 }
0x1aa5   :  { %5502 = vmatprep.subr.bf16.mxu1 %v5671_v1 }
0x1aa7   :  { %5285 = vmatmul.mubr.msk.f32.vlgmr.msra.gmra.mrb[26].mxu1 %vm345_vm4, %v3210_v44 }
0x1aa8   :  { %5504 = vmatpush3.bf16.msra.mxu1 %v5913_v60  ;;  %5300 = vmatprep.mubr.msk.f32.mxu1 %vm5672_vm0, %v5673_v2 }
0x1aa9   :  { %5505 = vmatprep.subr.bf16.mxu1 %v5671_v1 }
0x1aac   :  { %5507 = vmatpush3.bf16.msra.mxu1 %v5923_v63 }
0x1aad   :  { %5514 = vmatprep.subr.bf16.mxu1 %v5671_v1 }
0x1b6e   :  { %v2785_v20 = vpop.f32.mrb[20].mxu1 }
0x1b6f   :  { %v5256_v21 = vpop.f32.mrb[21].mxu1  ;;  %v2789_v25 = vsel %vm420_vm5, %v2785_v20, -inf }
0x1b70   :  { %2790 = vmax.xlane.f32.xlu1 %v2789_v25 }
0x1b72   :  { %v2951_v28 = vpop.f32.mrb[22].mxu1 }
0x1b73   :  { %v5266_v38 = vpop.f32.mrb[23].mxu1  ;;  %v2955_v55 = vsel %vm420_vm5, %v2951_v28, -inf }
0x1b74   :  { %2956 = vmax.xlane.f32.xlu0 %v2955_v55 }
0x1b76   :  { %v3117_v60 = vpop.f32.mrb[24].mxu1 }
0x1b77   :  { %v5276_v59 = vpop.f32.mrb[25].mxu1  ;;  %v3121_v30 = vsel %vm420_vm5, %v3117_v60, -inf }
0x1b78   :  { %3122 = vmax.xlane.f32.xlu0 %v3121_v30 }
0x1b7a   :  { %v3283_v32 = vpop.f32.mrb[26].mxu1 }
0x1b7b   :  { %v5286_v46 = vpop.f32.mrb[27].mxu1  ;;  %v3287_v63 = vsel %vm420_vm5, %v3283_v32, -inf }
0x1b7c   :  { %3288 = vmax.xlane.f32.xlu0 %v3287_v63 }
0x1b81   :  { %2800 = vrot.lane.b32.xlu1 %v6374_v8, %s5680_s29 }
0x1bfd   :  { %v2791_v4 = vpop.xlane.xlu1 %2790 }
0x1bfe   :  { %v2792_v43 = vsub.f32 %v2785_v20, %v2791_v4 }
0x1c00   :  { %v2793_v47 = vmul.f32 1.442695, %v2792_v43 }
0x1c01   :  { %v2801_v7 = vpop.permute.xlu1 %2800  ;;  %v2957_v10 = vpop.xlane.xlu0 %2956 }
0x1c02   :  { %5622 = vpow2.f32 %v2793_v47  ;;  %v2958_v11 = vsub.f32 %v2951_v28, %v2957_v10  ;;  %5258 = vmatpush3.msk.msra.mxu0 %vm438_vm6, %v2801_v7 }
0x1c03   :  { %5267 = vmatprep.subr.mxu0 %v5673_v2 }
0x1c04   :  { %v2959_v12 = vmul.f32 1.442695, %v2958_v11 }
0x1c05   :  { %v3123_v15 = vpop.xlane.xlu0 %3122 }
0x1c06   :  { %5624 = vpow2.f32 %v2959_v12  ;;  %v3124_v19 = vsub.f32 %v3117_v60, %v3123_v15 }
0x1c08   :  { %v3125_v61 = vmul.f32 1.442695, %v3124_v19 }
0x1c09   :  { %v3289_v13 = vpop.xlane.xlu0 %3288 }
0x1c0a   :  { %5626 = vpow2.f32 %v3125_v61  ;;  %v3290_v44 = vsub.f32 %v3283_v32, %v3289_v13 }
0x1c0c   :  { %v5623_v21 = vpop.eup %5622  ;;  %v3291_v25 = vmul.f32 1.442695, %v3290_v44 }
0x1c0d   :  { %v2795_v20 = vsel %vm420_vm5, %v5623_v21, 0.0 }
0x1c0e   :  { %5628 = vpow2.f32 %v3291_v25  ;;  %2796 = vadd.xlane.f32.xlu1 %v2795_v20 }
0x1c10   :  { %v5625_v38 = vpop.eup %5624 }
0x1c11   :  { %v2961_v28 = vsel %vm420_vm5, %v5625_v38, 0.0 }
0x1c12   :  { %2962 = vadd.xlane.f32.xlu0 %v2961_v28 }
0x1c14   :  { %v5627_v55 = vpop.eup %5626 }
0x1c15   :  { %v3127_v59 = vsel %vm420_vm5, %v5627_v55, 0.0 }
0x1c16   :  { %3128 = vadd.xlane.f32.xlu1 %v3127_v59 }
0x1c18   :  { %v5629_v30 = vpop.eup %5628 }
0x1c19   :  { %v3293_v60 = vsel %vm420_vm5, %v5629_v30, 0.0 }
0x1c1a   :  { %3294 = vadd.xlane.f32.xlu0 %v3293_v60 }
0x1c27   :  { %3132 = vrot.lane.b32.xlu1 %v6374_v8, %s6687_s2 }
0x1c2b   :  { %3298 = vrot.lane.b32.xlu1 %v6374_v8, %s6688_s5 }
0x1c30   :  { %2966 = vrot.lane.b32.xlu0 %v6374_v8, %s6689_s13 }
0x1c9b   :  { %v2797_v32 = vpop.xlane.xlu1 %2796 }
0x1c9c   :  { %5630 = vrcp.f32 %v2797_v32 }
0x1c9f   :  { %v2963_v46 = vpop.xlane.xlu0 %2962 }
0x1ca0   :  { %5632 = vrcp.f32 %v2963_v46 }
0x1ca3   :  { %v3129_v63 = vpop.xlane.xlu1 %3128 }
0x1ca4   :  { %5634 = vrcp.f32 %v3129_v63 }
0x1ca6   :  { %v5631_v4 = vpop.eup %5630 }
0x1ca7   :  { %v2799_v43 = vmul.f32 %v5631_v4, %v5623_v21  ;;  %v3295_v47 = vpop.xlane.xlu0 %3294  ;;  %v3133_v11 = vpop.permute.xlu1 %3132 }
0x1ca8   :  { %5636 = vrcp.f32 %v3295_v47 }
0x1ca9   :  { %5260 = vmatmul.mubr.msk.f32.vlgmr.msra.gmra.mrb[36].mxu0 %vm434_vm7, %v2799_v43 }
0x1caa   :  { %v5633_v7 = vpop.eup %5632  ;;  %5269 = vmatprep.mubr.msk.f32.mxu0 %vm5672_vm0, %v5673_v2 }
0x1cab   :  { %v2965_v10 = vmul.f32 %v5633_v7, %v5625_v38  ;;  %v2967_v12 = vpop.permute.xlu0 %2966  ;;  %v3299_v19 = vpop.permute.xlu1 %3298 }
0x1cac   :  { %5268 = vmatpush3.msk.msra.mxu0 %vm438_vm6, %v2967_v12 }
0x1cad   :  { %5270 = vmatmul.mubr.msk.f32.vlgmr.msra.gmra.mrb[38].mxu0 %vm434_vm7, %v2965_v10  ;;  %5277 = vmatprep.subr.mxu0 %v5673_v2 }
0x1cae   :  { %v5635_v8 = vpop.eup %5634  ;;  %5278 = vmatpush3.msk.msra.mxu0 %vm438_vm6, %v3133_v11  ;;  %5279 = vmatprep.mubr.msk.f32.mxu0 %vm5672_vm0, %v5673_v2 }
0x1caf   :  { %v3131_v15 = vmul.f32 %v5635_v8, %v5627_v55  ;;  %5287 = vmatprep.subr.mxu0 %v5673_v2 }
0x1cb1   :  { %5280 = vmatmul.mubr.msk.f32.vlgmr.msra.gmra.mrb[40].mxu0 %vm434_vm7, %v3131_v15 }
0x1cb2   :  { %v5637_v61 = vpop.eup %5636  ;;  %5288 = vmatpush3.msk.msra.mxu0 %vm438_vm6, %v3299_v19  ;;  %5289 = vmatprep.mubr.msk.f32.mxu0 %vm5672_vm0, %v5673_v2 }
0x1cb3   :  { %v3297_v13 = vmul.f32 %v5637_v61, %v5629_v30  ;;  %5508 = vmatprep.subr.bf16.mxu0 %v5671_v1 }
0x1cb5   :  { %5290 = vmatmul.mubr.msk.f32.vlgmr.msra.gmra.mrb[42].mxu0 %vm434_vm7, %v3297_v13 }
0x1cb6   :  { %5510 = vmatpush3.bf16.msra.mxu0 %v5949_v29  ;;  %5311 = vmatprep.mubr.msk.f32.mxu0 %vm5672_vm0, %v5673_v2 }
0x1cb7   :  { %5511 = vmatprep.subr.bf16.mxu0 %v5671_v1 }
0x1cba   :  { %5513 = vmatpush3.bf16.msra.mxu0 %v5959_v31 }
0x1cbb   :  { %5526 = vmatprep.subr.bf16.mxu0 %v5671_v1 }
0x1d7c   :  { %v2873_v44 = vpop.f32.mrb[36].mxu0 }
0x1d7d   :  { %v5261_v21 = vpop.f32.mrb[37].mxu0 }
0x1d80   :  { %v3039_v25 = vpop.f32.mrb[38].mxu0 }
0x1d81   :  { %3376 = vrot.lane.b32.xlu1 %v3039_v25, %s6683_s21  ;;  %v5271_v20 = vpop.f32.mrb[39].mxu0 }
0x1d84   :  { %v3205_v38 = vpop.f32.mrb[40].mxu0 }
0x1d85   :  { %3380 = vrot.lane.b32.xlu0 %v3205_v38, %s6684_s22  ;;  %v5281_v28 = vpop.f32.mrb[41].mxu0 }
0x1d88   :  { %v3371_v29 = vpop.f32.mrb[42].mxu0 }
0x1d89   :  { %3384 = vrot.lane.b32.xlu1 %v3371_v29, %s6685_s23  ;;  %v5291_v55 = vpop.f32.mrb[43].mxu0 }
0x1df3   :  { %v3377_v59 = vpop.permute.xlu1 %3376 }
0x1df4   :  { %v3387_v31 = vsel %vm345_vm4, %v2873_v44, %v3377_v59 }
0x1df7   :  { %v3381_v30 = vpop.permute.xlu0 %3380 }
0x1df8   :  { %v3388_v60 = vsel %vm190_vm2, %v3387_v31, %v3381_v30 }
0x1dfb   :  { %v3385_v32 = vpop.permute.xlu1 %3384 }
0x1dfc   :  { %v3389_v46 = vsel %vm1023_vm8, %v3388_v60, %v3385_v32 }
0x1dfd   :  { %5301 = vmatmul.mubr.msk.f32.vlgmr.msra.gmra.mrb[28].mxu1 %vm268_vm3, %v3389_v46 }
0x1dfe   :  { %5516 = vmatpush3.bf16.msra.mxu1 %v5972_v37  ;;  %5330 = vmatprep.mubr.msk.f32.mxu1 %vm5672_vm0, %v5673_v2  ;;  %v5666_v37 = vld [vmem:[%s6661_s4 + $0x20] ss:$0 sm:$0xff] }
0x1dff   :  { %5517 = vmatprep.subr.bf16.mxu1 %v5671_v1 }
0x1e02   :  { %5519 = vmatpush3.bf16.msra.mxu1 %v5978_v39 }
0x1e03   :  { %5520 = vmatprep.subr.bf16.mxu1 %v5671_v1 }
0x1e06   :  { %5522 = vmatpush3.bf16.msra.mxu1 %v5988_v42 }
0x1e07   :  { %5523 = vmatprep.subr.bf16.mxu1 %v5671_v1 }
0x1e0a   :  { %5525 = vmatpush3.bf16.msra.mxu1 %v6019_v0 }
0x1e0b   :  { %5354 = vmatprep.subr.mxu1 %v5673_v2 }
0x1ed0   :  { %v3459_v63 = vpop.f32.mrb[28].mxu1 }
0x1ed1   :  { %v3460_v4 = vadd.f32 %v5666_v37, %v3459_v63  ;;  %v5302_v43 = vpop.f32.mrb[29].mxu1 }
0x1ed3   :  { %v3463_v47 = vadd.f32 %v3460_v4, %v6365_v5 }
0x1ed5   :  { %v3464_v39 = vsel %vm1103_vm9, %v3463_v47, 0.0 }
0x1ed6   :  { %3465 = vadd.xlane.f32.xlu0 %v3464_v39 }
0x1f63   :  { %v3466_v7 = vpop.xlane.xlu0 %3465 }
0x1f64   :  { %v3467_v42 = vmul.f32 0.03125, %v3466_v7  ;;  %v5669_v7 = vld [vmem:[%s6660_s3 + $0x48] ss:$0 sm:$0xff] }
0x1f66   :  { %v3468_v10 = vsub.f32 %v3463_v47, %v3467_v42 }
0x1f68   :  { %v3469_v11 = vmul.f32 %v3468_v10, %v3468_v10 }
0x1f6a   :  { %v3470_v0 = vsel %vm1103_vm9, %v3469_v11, 0.0 }
0x1f6b   :  { %3471 = vadd.xlane.f32.xlu1 %v3470_v0 }
0x1ff8   :  { %v3472_v12 = vpop.xlane.xlu1 %3471 }
0x1ff9   :  { %v3473_v8 = vmul.f32 0.03125, %v3472_v12 }
0x1ffb   :  { %v3474_v15 = vadd.f32 1e-05, %v3473_v8 }
0x1ffd   :  { %5638 = vrsqrt.f32 %v3474_v15 }
0x2007   :  { %v5639_v19 = vpop.eup %5638 }
0x2008   :  { %v3476_v61 = vmul.f32 %v5639_v19, %v3468_v10 }
0x200a   :  { %v3477_v13 = vmul.f32 %v3476_v61, %v6002_v54  ;;  %v5667_v54 = vld [vmem:[%s6662_s6 + $0x20] ss:$0 sm:$0xff] }
0x200c   :  { %v3478_v5 = vadd.f32 %v3477_v13, %v6006_v57 }
0x200e   :  { %5312 = vmatmul.mubr.msk.f32.vlgmr.msra.gmra.mrb[44].mxu0 %vm268_vm3, %v3478_v5 }
0x200f   :  { %5528 = vmatpush3.bf16.msra.mxu0 %v6040_v23  ;;  %5341 = vmatprep.mubr.msk.f32.mxu0 %vm5672_vm0, %v5673_v2 }
0x2010   :  { %5529 = vmatprep.subr.bf16.mxu0 %v5671_v1 }
0x2013   :  { %5531 = vmatpush3.bf16.msra.mxu0 %v6050_v26  ;;  %v5668_v26 = vld [vmem:[%s6663_s7 + $0x40] ss:$0 sm:$0xff] }
0x2014   :  { %5344 = vmatprep.subr.mxu0 %v5673_v2 }
0x20e1   :  { %v3548_v44 = vpop.f32.mrb[44].mxu0 }
0x20e2   :  { %v3549_v21 = vadd.f32 %v5667_v54, %v3548_v44  ;;  %v5313_v57 = vpop.f32.mrb[45].mxu0 }
0x20e4   :  { %v3552_v25 = vmax.f32 %v3549_v21, 0.0 }
0x20e6   :  { %5331 = vmatmul.mubr.msk.f32.vlgmr.msra.gmra.mrb[30].mxu1 %vm1210_vm10, %v3552_v25 }
0x20e7   :  { %5356 = vmatprep.mubr.msk.f32.mxu1 %vm5672_vm0, %v5673_v2 }
0x21b9   :  { %v3622_v23 = vpop.f32.mrb[30].mxu1 }
0x21ba   :  { %v3623_v20 = vadd.f32 %v5668_v26, %v3622_v23  ;;  %v5332_v38 = vpop.f32.mrb[31].mxu1 }
0x21bc   :  { %v3626_v28 = vadd.f32 %v3623_v20, %v3478_v5 }
0x21be   :  { %v3627_v29 = vsel %vm1103_vm9, %v3626_v28, 0.0 }
0x21bf   :  { %3628 = vadd.xlane.f32.xlu0 %v3627_v29 }
0x224c   :  { %v3629_v55 = vpop.xlane.xlu0 %3628 }
0x224d   :  { %v3630_v59 = vmul.f32 0.03125, %v3629_v55 }
0x224f   :  { %v3631_v30 = vsub.f32 %v3626_v28, %v3630_v59 }
0x2251   :  { %v3632_v31 = vmul.f32 %v3631_v30, %v3631_v30 }
0x2253   :  { %v3633_v60 = vsel %vm1103_vm9, %v3632_v31, 0.0 }
0x2254   :  { %3634 = vadd.xlane.f32.xlu0 %v3633_v60 }
0x22e1   :  { %v3635_v32 = vpop.xlane.xlu0 %3634 }
0x22e2   :  { %v3636_v46 = vmul.f32 0.03125, %v3635_v32 }
0x22e4   :  { %v3637_v63 = vadd.f32 1e-05, %v3636_v46 }
0x22e6   :  { %5640 = vrsqrt.f32 %v3637_v63 }
0x22f0   :  { %v5641_v37 = vpop.eup %5640 }
0x22f1   :  { %v3639_v4 = vmul.f32 %v5641_v37, %v3631_v30 }
0x22f3   :  { %v3640_v43 = vmul.f32 %v3639_v4, %v6058_v35 }
0x22f5   :  { %v6500_v47 = vadd.f32 %v3640_v43, %v6062_v40 }
0x22f7   :  { %5342 = vmatmul.mubr.msk.f32.vlgmr.msra.gmra.mrb[46].mxu0 %vm268_vm3, %v6500_v47 }
0x22f8   :  { %5346 = vmatprep.mubr.msk.f32.mxu0 %vm5672_vm0, %v5673_v2 }
0x23ca   :  { %v3711_v39 = vpop.f32.mrb[46].mxu0 }
0x23cb   :  { %v6509_v42 = vadd.f32 %v5669_v7, %v3711_v39  ;;  %v5343_v10 = vpop.f32.mrb[47].mxu0 }
0x23cd   :  { %3882 = vrot.lane.b32.xlu1 %v6509_v42, %s5676_s25  ;;  %3716 = vrot.lane.b32.xlu0 %v6509_v42, %s5675_s24 }
0x23d1   :  { %3880 = vrot.lane.b32.xlu1 %v6509_v42, %s5677_s26  ;;  %4046 = vrot.lane.b32.xlu0 %v6509_v42, %s5678_s27 }
0x23d5   :  { %4048 = vrot.lane.b32.xlu1 %v6509_v42, %s5681_s30  ;;  %4212 = vrot.lane.b32.xlu0 %v6509_v42, %s5679_s28 }
0x23d9   :  { %4214 = vrot.lane.b32.xlu1 %v6509_v42, %s5682_s12 }
0x243f   :  { %v3883_v35 = vpop.permute.xlu1 %3882  ;;  %v3717_v40 = vpop.permute.xlu0 %3716 }
0x2440   :  { %5345 = vmatpush3.xpose.msk.msra.mxu0 %vm345_vm4, %v3717_v40  ;;  %5355 = vmatpush3.xpose.msk.msra.mxu1 %vm345_vm4, %v3883_v35 }
0x2441   :  { %5364 = vmatprep.subr.mxu1 %v5673_v2  ;;  %5349 = vmatprep.subr.mxu0 %v5673_v2 }
0x2443   :  { %v3881_v11 = vpop.permute.xlu1 %3880  ;;  %5347 = vmatmul.mubr.msk.f32.vlgmr.msra.gmra.mrb[48].mxu0 %vm345_vm4, %v6509_v42  ;;  %v4047_v12 = vpop.permute.xlu0 %4046 }
0x2444   :  { %5357 = vmatmul.mubr.msk.f32.vlgmr.msra.gmra.mrb[32].mxu1 %vm345_vm4, %v3881_v11  ;;  %5351 = vmatprep.mubr.msk.f32.mxu0 %vm5672_vm0, %v5673_v2 }
0x2445   :  { %5366 = vmatprep.mubr.msk.f32.mxu1 %vm5672_vm0, %v5673_v2 }
0x2447   :  { %v4049_v0 = vpop.permute.xlu1 %4048  ;;  %v4213_v15 = vpop.permute.xlu0 %4212 }
0x2448   :  { %5365 = vmatpush3.xpose.msk.msra.mxu1 %vm345_vm4, %v4049_v0 }
0x2449   :  { %5374 = vmatprep.subr.mxu1 %v5673_v2 }
0x244b   :  { %v4215_v8 = vpop.permute.xlu1 %4214  ;;  %5367 = vmatmul.mubr.msk.f32.vlgmr.msra.gmra.mrb[34].mxu1 %vm345_vm4, %v4047_v12 }
0x244c   :  { %5375 = vmatpush3.xpose.msk.msra.mxu1 %vm345_vm4, %v4215_v8  ;;  %5376 = vmatprep.mubr.msk.f32.mxu1 %vm5672_vm0, %v5673_v2 }
0x244d   :  { %5532 = vmatprep.subr.bf16.mxu1 %v5671_v1 }
0x244f   :  { %5377 = vmatmul.mubr.msk.f32.vlgmr.msra.gmra.mrb[36].mxu1 %vm345_vm4, %v4213_v15 }
0x2450   :  { %5534 = vmatpush3.bf16.msra.mxu1 %v6154_v17  ;;  %5392 = vmatprep.mubr.msk.f32.mxu1 %vm5672_vm0, %v5673_v2 }
0x2451   :  { %5535 = vmatprep.subr.bf16.mxu1 %v5671_v1 }
0x2454   :  { %5537 = vmatpush3.bf16.msra.mxu1 %v6164_v24 }
0x2455   :  { %5544 = vmatprep.subr.bf16.mxu1 %v5671_v1 }
0x2516   :  { %v3788_v19 = vpop.f32.mrb[48].mxu0 }
0x2517   :  { %v5348_v61 = vpop.f32.mrb[49].mxu0  ;;  %v3954_v13 = vpop.f32.mrb[32].mxu1  ;;  %v3792_v5 = vsel %vm420_vm5, %v3788_v19, -inf }
0x2518   :  { %v5358_v44 = vpop.f32.mrb[33].mxu1  ;;  %3793 = vmax.xlane.f32.xlu1 %v3792_v5  ;;  %v3958_v54 = vsel %vm420_vm5, %v3954_v13, -inf }
0x2519   :  { %3959 = vmax.xlane.f32.xlu0 %v3958_v54 }
0x251e   :  { %v4120_v17 = vpop.f32.mrb[34].mxu1 }
0x251f   :  { %v5368_v21 = vpop.f32.mrb[35].mxu1  ;;  %v4124_v57 = vsel %vm420_vm5, %v4120_v17, -inf }
0x2520   :  { %4125 = vmax.xlane.f32.xlu0 %v4124_v57 }
0x2522   :  { %v4286_v25 = vpop.f32.mrb[36].mxu1 }
0x2523   :  { %v5378_v23 = vpop.f32.mrb[37].mxu1  ;;  %v4290_v24 = vsel %vm420_vm5, %v4286_v25, -inf }
0x2524   :  { %4291 = vmax.xlane.f32.xlu0 %v4290_v24 }
0x2529   :  { %3803 = vrot.lane.b32.xlu1 %v6509_v42, %s5680_s29 }
0x25a5   :  { %v3794_v26 = vpop.xlane.xlu1 %3793 }
0x25a6   :  { %v3795_v20 = vsub.f32 %v3788_v19, %v3794_v26  ;;  %v3960_v38 = vpop.xlane.xlu0 %3959 }
0x25a7   :  { %v3961_v28 = vsub.f32 %v3954_v13, %v3960_v38 }
0x25a8   :  { %v3796_v29 = vmul.f32 1.442695, %v3795_v20 }
0x25a9   :  { %v3962_v55 = vmul.f32 1.442695, %v3961_v28  ;;  %v3804_v59 = vpop.permute.xlu1 %3803 }
0x25aa   :  { %5642 = vpow2.f32 %v3796_v29  ;;  %5350 = vmatpush3.msk.msra.mxu0 %vm438_vm6, %v3804_v59 }
0x25ab   :  { %5644 = vpow2.f32 %v3962_v55  ;;  %5359 = vmatprep.subr.mxu0 %v5673_v2 }
0x25ad   :  { %v4126_v30 = vpop.xlane.xlu0 %4125 }
0x25ae   :  { %v4127_v31 = vsub.f32 %v4120_v17, %v4126_v30 }
0x25b0   :  { %v4128_v60 = vmul.f32 1.442695, %v4127_v31 }
0x25b1   :  { %v4292_v32 = vpop.xlane.xlu0 %4291 }
0x25b2   :  { %5646 = vpow2.f32 %v4128_v60  ;;  %v4293_v46 = vsub.f32 %v4286_v25, %v4292_v32 }
0x25b4   :  { %v5643_v63 = vpop.eup %5642  ;;  %v4294_v37 = vmul.f32 1.442695, %v4293_v46 }
0x25b5   :  { %v5645_v4 = vpop.eup %5644  ;;  %v3798_v43 = vsel %vm420_vm5, %v5643_v63, 0.0 }
0x25b6   :  { %5648 = vpow2.f32 %v4294_v37  ;;  %3799 = vadd.xlane.f32.xlu1 %v3798_v43  ;;  %v3964_v39 = vsel %vm420_vm5, %v5645_v4, 0.0 }
0x25b7   :  { %3965 = vadd.xlane.f32.xlu0 %v3964_v39 }
0x25bc   :  { %v5647_v7 = vpop.eup %5646 }
0x25bd   :  { %v4130_v10 = vsel %vm420_vm5, %v5647_v7, 0.0 }
0x25be   :  { %4131 = vadd.xlane.f32.xlu1 %v4130_v10 }
0x25c0   :  { %v5649_v35 = vpop.eup %5648 }
0x25c1   :  { %v4296_v40 = vsel %vm420_vm5, %v5649_v35, 0.0 }
0x25c2   :  { %4297 = vadd.xlane.f32.xlu0 %v4296_v40 }
0x25cf   :  { %4135 = vrot.lane.b32.xlu1 %v6509_v42, %s6687_s2 }
0x25d3   :  { %4301 = vrot.lane.b32.xlu1 %v6509_v42, %s6688_s5 }
0x25d8   :  { %3969 = vrot.lane.b32.xlu0 %v6509_v42, %s6689_s13 }
0x2643   :  { %v3800_v11 = vpop.xlane.xlu1 %3799 }
0x2644   :  { %5650 = vrcp.f32 %v3800_v11  ;;  %v3966_v0 = vpop.xlane.xlu0 %3965 }
0x2645   :  { %5652 = vrcp.f32 %v3966_v0 }
0x264b   :  { %v4132_v12 = vpop.xlane.xlu1 %4131 }
0x264c   :  { %5654 = vrcp.f32 %v4132_v12 }
0x264e   :  { %v5651_v8 = vpop.eup %5650 }
0x264f   :  { %v3802_v15 = vmul.f32 %v5651_v8, %v5643_v63  ;;  %v4298_v19 = vpop.xlane.xlu0 %4297  ;;  %v5653_v61 = vpop.eup %5652 }
0x2650   :  { %5656 = vrcp.f32 %v4298_v19  ;;  %v3968_v13 = vmul.f32 %v5653_v61, %v5645_v4  ;;  %v4136_v5 = vpop.permute.xlu1 %4135 }
0x2651   :  { %5352 = vmatmul.mubr.msk.f32.vlgmr.msra.gmra.mrb[50].mxu0 %vm434_vm7, %v3802_v15 }
0x2652   :  { %5361 = vmatprep.mubr.msk.f32.mxu0 %vm5672_vm0, %v5673_v2 }
0x2653   :  { %v3970_v44 = vpop.permute.xlu0 %3969 }
0x2654   :  { %5360 = vmatpush3.msk.msra.mxu0 %vm438_vm6, %v3970_v44  ;;  %v4302_v17 = vpop.permute.xlu1 %4301 }
0x2655   :  { %5362 = vmatmul.mubr.msk.f32.vlgmr.msra.gmra.mrb[52].mxu0 %vm434_vm7, %v3968_v13  ;;  %5369 = vmatprep.subr.mxu0 %v5673_v2 }
0x2656   :  { %v5655_v42 = vpop.eup %5654  ;;  %5370 = vmatpush3.msk.msra.mxu0 %vm438_vm6, %v4136_v5  ;;  %5371 = vmatprep.mubr.msk.f32.mxu0 %vm5672_vm0, %v5673_v2 }
0x2657   :  { %v4134_v54 = vmul.f32 %v5655_v42, %v5647_v7  ;;  %5379 = vmatprep.subr.mxu0 %v5673_v2 }
0x2659   :  { %5372 = vmatmul.mubr.msk.f32.vlgmr.msra.gmra.mrb[54].mxu0 %vm434_vm7, %v4134_v54 }
0x265a   :  { %v5657_v21 = vpop.eup %5656  ;;  %5380 = vmatpush3.msk.msra.mxu0 %vm438_vm6, %v4302_v17  ;;  %5381 = vmatprep.mubr.msk.f32.mxu0 %vm5672_vm0, %v5673_v2 }
0x265b   :  { %v4300_v57 = vmul.f32 %v5657_v21, %v5649_v35  ;;  %5538 = vmatprep.subr.bf16.mxu0 %v5671_v1 }
0x265d   :  { %5382 = vmatmul.mubr.msk.f32.vlgmr.msra.gmra.mrb[56].mxu0 %vm434_vm7, %v4300_v57 }
0x265e   :  { %5540 = vmatpush3.bf16.msra.mxu0 %v6189_v14  ;;  %5403 = vmatprep.mubr.msk.f32.mxu0 %vm5672_vm0, %v5673_v2 }
0x265f   :  { %5541 = vmatprep.subr.bf16.mxu0 %v5671_v1 }
0x2662   :  { %5543 = vmatpush3.bf16.msra.mxu0 %v6199_v16 }
0x2663   :  { %5425 = vmatprep.subr.mxu0 %v5673_v2 }
0x2724   :  { %v3876_v25 = vpop.f32.mrb[50].mxu0 }
0x2725   :  { %v5353_v23 = vpop.f32.mrb[51].mxu0 }
0x2728   :  { %v4042_v24 = vpop.f32.mrb[52].mxu0 }
0x2729   :  { %4379 = vrot.lane.b32.xlu1 %v4042_v24, %s6683_s21  ;;  %v5363_v26 = vpop.f32.mrb[53].mxu0 }
0x272a   :  { %v47_v26 = vld [vmem:[%s6667_s10] sm:$0xff] }
0x272c   :  { %v4208_v20 = vpop.f32.mrb[54].mxu0 }
0x272d   :  { %4383 = vrot.lane.b32.xlu0 %v4208_v20, %s6684_s22  ;;  %v5373_v38 = vpop.f32.mrb[55].mxu0 }
0x2730   :  { %v4374_v14 = vpop.f32.mrb[56].mxu0 }
0x2731   :  { %4387 = vrot.lane.b32.xlu1 %v4374_v14, %s6685_s23  ;;  %v5383_v28 = vpop.f32.mrb[57].mxu0  ;;  %v135_v14 = vmul.f32 %v5791_v34, %v5788_v33 }
0x279b   :  { %v4380_v29 = vpop.permute.xlu1 %4379 }
0x279c   :  { %v4390_v16 = vsel %vm345_vm4, %v3876_v25, %v4380_v29 }
0x279f   :  { %v4384_v55 = vpop.permute.xlu0 %4383 }
0x27a0   :  { %v4391_v59 = vsel %vm190_vm2, %v4390_v16, %v4384_v55 }
0x27a3   :  { %v4388_v30 = vpop.permute.xlu1 %4387 }
0x27a4   :  { %v4392_v31 = vsel %vm1023_vm8, %v4391_v59, %v4388_v30 }
0x27a5   :  { %5393 = vmatmul.mubr.msk.f32.vlgmr.msra.gmra.mrb[38].mxu1 %vm268_vm3, %v4392_v31 }
0x27a6   :  { %5546 = vmatpush3.bf16.msra.mxu1 %v6212_v22  ;;  %5422 = vmatprep.mubr.msk.f32.mxu1 %vm5672_vm0, %v5673_v2  ;;  %v5670_v22 = vld [vmem:[%s6661_s4 + $0x48] ss:$0 sm:$0xff] }
0x27a7   :  { %5547 = vmatprep.subr.bf16.mxu1 %v5671_v1 }
0x27aa   :  { %5549 = vmatpush3.bf16.msra.mxu1 %v6218_v27 }
0x27ab   :  { %5550 = vmatprep.subr.bf16.mxu1 %v5671_v1 }
0x27ae   :  { %5552 = vmatpush3.bf16.msra.mxu1 %v6228_v36 }
0x27af   :  { %5553 = vmatprep.subr.bf16.mxu1 %v5671_v1 }
0x27b2   :  { %5555 = vmatpush3.bf16.msra.mxu1 %v6255_v3 }
0x2878   :  { %v4462_v60 = vpop.f32.mrb[38].mxu1 }
0x2879   :  { %v4463_v32 = vadd.f32 %v5670_v22, %v4462_v60  ;;  %v5394_v46 = vpop.f32.mrb[39].mxu1 }
0x287b   :  { %v4466_v63 = vadd.f32 %v4463_v32, %v6500_v47 }
0x287d   :  { %v4467_v37 = vsel %vm1103_vm9, %v4466_v63, 0.0 }
0x287e   :  { %4468 = vadd.xlane.f32.xlu0 %v4467_v37 }
0x290b   :  { %v4469_v27 = vpop.xlane.xlu0 %4468 }
0x290c   :  { %v4470_v4 = vmul.f32 0.03125, %v4469_v27 }
0x290e   :  { %v4471_v43 = vsub.f32 %v4466_v63, %v4470_v4 }
0x2910   :  { %v4472_v36 = vmul.f32 %v4471_v43, %v4471_v43 }
0x2912   :  { %v4473_v1 = vsel %vm1103_vm9, %v4472_v36, 0.0 }
0x2913   :  { %4474 = vadd.xlane.f32.xlu1 %v4473_v1 }
0x29a0   :  { %v4475_v3 = vpop.xlane.xlu1 %4474 }
0x29a1   :  { %v4476_v39 = vmul.f32 0.03125, %v4475_v3 }
0x29a3   :  { %v4477_v7 = vadd.f32 1e-05, %v4476_v39 }
0x29a5   :  { %5658 = vrsqrt.f32 %v4477_v7 }
0x29af   :  { %v5659_v10 = vpop.eup %5658 }
0x29b0   :  { %v4479_v35 = vmul.f32 %v5659_v10, %v4471_v43 }
0x29b2   :  { %v4480_v40 = vmul.f32 %v4479_v35, %v6238_v52 }
0x29b4   :  { %v4481_v47 = vadd.f32 %v4480_v40, %v6242_v58 }
0x29b6   :  { %5404 = vmatmul.mubr.msk.f32.vlgmr.msra.gmra.mrb[58].mxu0 %vm268_vm3, %v4481_v47 }
0x29b7   :  { %5427 = vmatprep.mubr.msk.f32.mxu0 %vm5672_vm0, %v5673_v2 }
0x2a89   :  { %v4551_v11 = vpop.f32.mrb[58].mxu0 }
0x2a8a   :  { %v4552_v0 = vadd.f32 %v6262_v53, %v4551_v11  ;;  %v5405_v12 = vpop.f32.mrb[59].mxu0  ;;  %v5689_v53 = vmov 0  }
0x2a8b   :  { %5575 = vset.pattern.permute.xlu0 %v5689_v53 }
0x2a8c   :  { %v4555_v8 = vmax.f32 %v4552_v0, 0.0 }
0x2a8e   :  { %5423 = vmatmul.mubr.msk.f32.vlgmr.msra.gmra.mrb[40].mxu1 %vm1210_vm10, %v4555_v8 }
0x2b61   :  { %v4625_v15 = vpop.f32.mrb[40].mxu1 }
0x2b62   :  { %v4626_v19 = vadd.f32 %v6271_v9, %v4625_v15  ;;  %v5424_v61 = vpop.f32.mrb[41].mxu1 }
0x2b64   :  { %v4629_v13 = vadd.f32 %v4626_v19, %v4481_v47 }
0x2b66   :  { %v4630_v52 = vsel %vm1103_vm9, %v4629_v13, 0.0 }
0x2b67   :  { %4631 = vadd.xlane.f32.xlu0 %v4630_v52 }
0x2bf4   :  { %v4632_v58 = vpop.xlane.xlu0 %4631 }
0x2bf5   :  { %v4633_v5 = vmul.f32 0.03125, %v4632_v58 }
0x2bf7   :  { %v4634_v44 = vsub.f32 %v4629_v13, %v4633_v5 }
0x2bf9   :  { %v4635_v42 = vmul.f32 %v4634_v44, %v4634_v44 }
0x2bfb   :  { %v4636_v2 = vsel %vm1103_vm9, %v4635_v42, 0.0 }
0x2bfc   :  { %4637 = vadd.xlane.f32.xlu0 %v4636_v2 }
0x2c89   :  { %v4638_v54 = vpop.xlane.xlu0 %4637 }
0x2c8a   :  { %v4639_v17 = vmul.f32 0.03125, %v4638_v54 }
0x2c8c   :  { %v4640_v21 = vadd.f32 1e-05, %v4639_v17 }
0x2c8e   :  { %5660 = vrsqrt.f32 %v4640_v21 }
0x2c98   :  { %v5661_v57 = vpop.eup %5660 }
0x2c99   :  { %v4642_v9 = vmul.f32 %v5661_v57, %v4634_v44 }
0x2c9b   :  { %v4643_v25 = vmul.f32 %v4642_v9, %v6282_v41  ;;  %v139_v41 = vand.u32 2147483648, %v5788_v33 }
0x2c9d   :  { %v4644_v23 = vadd.f32 %v4643_v25, %v6286_v56  ;;  %v137_v56 = vsel %vm136_vm12, %v5788_v33, %v135_v14 }
0x2c9e   :  { %v140_v59 = vsel %vm138_vm13, %v139_v41, %v137_v56 }
0x2c9f   :  { %v4645_v24 = vsel %vm2343_vm11, %v4644_v23, 0.0 }
0x2ca0   :  { %4646 = vadd.xlane.f32.xlu0 %v4645_v24 }
0x2cb6   :  { %2369 = vperm.xlu0 %5575, %v47_v26  }
0x2d2d   :  { %v4647_v20 = vpop.xlane.xlu0 %4646 }
0x2d2e   :  { %v4648_v38 = vmul.f32 0.03125, %v4647_v20 }
0x2d30   :  { %v4649_v28 = vsub.f32 %v4644_v23, %v4648_v38 }
0x2d32   :  { %v4650_v29 = vmul.f32 %v4649_v28, %v4649_v28 }
0x2d34   :  { %v4651_v55 = vsel %vm2343_vm11, %v4650_v29, 0.0 }
0x2d35   :  { %4652 = vadd.xlane.f32.xlu1 %v4651_v55  ;;  %v2370_v16 = vpop.permute.xlu0 %2369 }
0x2d36   :  { %v2477_v30 = vadd.f32 %v6360_v6, %v2370_v16  ;;  %v2519_v6 = vand.u32 2147483648, %v6309_v62 }
0x2d38   :  { %v2480_v31 = vmul.f32 %v2477_v30, %v140_v59 }
0x2d3a   :  { %v2481_v34 = vadd.f32 %v2480_v31, %v5782_v18  ;;  %v2515_v18 = vmul.f32 %v6312_v49, %v6309_v62 }
0x2d3c   :  { %2482 = vst.msk [vmem:[%s6668_s11] sm:$0xff] %vm107_vm1, %v2481_v34  ;;  %v2517_v27 = vsel %vm2516_vm14, %v6309_v62, %v2515_v18 }
0x2d3d   :  { %v2520_v4 = vsel %vm2518_vm15, %v2519_v6, %v2517_v27 }
0x2dc2   :  { %v4653_v60 = vpop.xlane.xlu1 %4652 }
0x2dc3   :  { %v4654_v22 = vmul.f32 0.03125, %v4653_v60 }
0x2dc5   :  { %v4655_v32 = vadd.f32 1e-05, %v4654_v22 }
0x2dc7   :  { %5662 = vrsqrt.f32 %v4655_v32 }
0x2dd1   :  { %v5663_v33 = vpop.eup %5662 }
0x2dd2   :  { %v4657_v46 = vmul.f32 %v5663_v33, %v4649_v28 }
0x2dd4   :  { %v4658_v63 = vmul.f32 %v6334_v50, %v4657_v46 }
0x2dd6   :  { %v4659_v37 = vadd.f32 %v6339_v45, %v4658_v63 }
0x2dd8   :  { %5426 = vmatpush3.xpose.msk.msra.mxu0 %vm268_vm3, %v4659_v37 }
0x2ddb   :  { %5428 = vmatmul.mubr.msk.f32.vlgmr.msra.gmra.mrb[60].mxu0 %vm268_vm3, %v6345_v51 }
0x2eae   :  { %v4729_v50 = vpop.f32.mrb[60].mxu0 }
0x2eaf   :  { %v4730_v43 = vadd.f32 %v4729_v50, %v2370_v16  ;;  %v5429_v45 = vpop.f32.mrb[61].mxu0 }
0x2eb1   :  { %v4733_v36 = vmul.f32 %v4730_v43, %v2520_v4 }
0x2eb3   :  { %v4734_v1 = vadd.f32 %v4733_v36, %v6303_v48 }
0x2eb5   :  { %4867 = vst.msk [vmem:[%s6668_s11 + $0x8] sm:$0xff] %vm107_vm1, %v4734_v1 }

</bundles_post_ra>
